<compile_context>
chip_gen: v7x
topology: tpu7x:2x2x1
jax: 0.10.0
libtpu: 0.0.40
codegen_flags: <defaults>
</compile_context>

<pallas_src>
import functools
import math

import jax
import jax.numpy as jnp
from jax.experimental import pallas as pl
from jax.experimental.pallas import tpu as pltpu

_BF16 = jnp.bfloat16
_VMEM_LIMIT = 48 * 1024 * 1024   # < v7x 64 MiB physical; plenty for the tiles used


def _cparams(sem):
    return pltpu.CompilerParams(dimension_semantics=sem,
                                vmem_limit_bytes=_VMEM_LIMIT)


# ----------------------------------------------------------------------------
# small helpers
# ----------------------------------------------------------------------------
def _round_up(n, m):
    return ((n + m - 1) // m) * m


def _time_tile(n, target=256):
    """Time tile: 256 for long sequences, otherwise the whole (8-aligned) axis."""
    if n >= target:
        return target
    return _round_up(max(n, 1), 8)


def _pick_div(n, max_tile, align):
    """Largest tile <= max_tile dividing n, multiple of `align`; else full n."""
    if n <= max_tile:
        return n
    t = (max_tile // align) * align
    while t >= align:
        if n % t == 0:
            return t
        t -= align
    return n


def _fit_len(a, length):
    """Pad (with zeros) or slice axis 1 of (B, T, C) to exactly `length`."""
    cur = a.shape[1]
    if cur == length:
        return a
    if cur > length:
        return a[:, :length]
    return jnp.pad(a, ((0, 0), (0, length - cur), (0, 0)))


def _gelu(x):
    # tanh-approximate GELU: one EUP tanh instead of the erf polynomial.
    c = 0.7978845608028654  # sqrt(2/pi)
    return 0.5 * x * (1.0 + jnp.tanh(c * (x + 0.044715 * x * x * x)))


def _layer_norm(x, g, b, eps=1e-5):
    m = jnp.mean(x, axis=-1, keepdims=True)
    c = x - m
    v = jnp.mean(c * c, axis=-1, keepdims=True)
    return c * jax.lax.rsqrt(v + eps) * g + b


# ----------------------------------------------------------------------------
# Conv1d (k=3) + GELU: one generic kernel over three identically-tiled shifted
# input views (t0/t1/t2).  The wrapper builds the views (stride 1 or 2), so the
# kernel sees only (1, tt, C_in) blocks -- nothing full-length stays in VMEM.
# ----------------------------------------------------------------------------
def _conv3_kernel(t0_ref, t1_ref, t2_ref, w_ref, b_ref, o_ref):
    acc = jnp.dot(t0_ref[0], w_ref[0], preferred_element_type=jnp.float32)
    acc = acc + jnp.dot(t1_ref[0], w_ref[1], preferred_element_type=jnp.float32)
    acc = acc + jnp.dot(t2_ref[0], w_ref[2], preferred_element_type=jnp.float32)
    o_ref[0] = _gelu(acc + b_ref[...]).astype(o_ref.dtype)


def conv3_gelu(t0, t1, t2, w_bf16, b, tt):
    B, Tp, c_in = t0.shape
    c_out = w_bf16.shape[2]
    tap_spec = pl.BlockSpec((1, tt, c_in), lambda bi, ti: (bi, ti, 0))
    return pl.pallas_call(
        _conv3_kernel,
        out_shape=jax.ShapeDtypeStruct((B, Tp, c_out), _BF16),
        grid=(B, Tp // tt),
        in_specs=[
            tap_spec, tap_spec, tap_spec,
            pl.BlockSpec((3, c_in, c_out), lambda bi, ti: (0, 0, 0)),
            pl.BlockSpec((1, c_out), lambda bi, ti: (0, 0)),
        ],
        out_specs=pl.BlockSpec((1, tt, c_out), lambda bi, ti: (bi, ti, 0)),
        compiler_params=_cparams(("parallel", "parallel")),
    )(t0, t1, t2, w_bf16, b)


# ----------------------------------------------------------------------------
# Residual attention block = 3 pallas_calls
# ----------------------------------------------------------------------------
def _qkv_kernel(x_ref, g_ref, bln_ref, wq_ref, bq_ref, wk_ref, wv_ref, bv_ref,
                q_ref, k_ref, v_ref):
    # pre-LN + three full-width projections; d^-0.5 already folded into wq/bq.
    xn = _layer_norm(x_ref[0].astype(jnp.float32), g_ref[...], bln_ref[...])
    xn = xn.astype(_BF16)
    q = jnp.dot(xn, wq_ref[...], preferred_element_type=jnp.float32) + bq_ref[...]
    q_ref[0] = q.astype(_BF16)
    k = jnp.dot(xn, wk_ref[...], preferred_element_type=jnp.float32)
    k_ref[0] = k.astype(_BF16)
    v = jnp.dot(xn, wv_ref[...], preferred_element_type=jnp.float32) + bv_ref[...]
    v_ref[0] = v.astype(_BF16)


def _attn_kernel(x_ref, q_ref, k_ref, v_ref, wo_ref, bo_ref, o_ref, ho_ref,
                 *, n_head, t_valid):
    # grid = (B, q_tiles).  K/V blocks cover the whole (padded) sequence and are
    # grid-invariant per batch.  Heads are a static inner loop over lane slices;
    # per-head outputs land in ho_ref (bf16, lane offsets h*D) and one fused
    # (tq,C)@(C,C) out-projection + residual finishes the tile.
    # TODO(synk): for sequences much longer than Whisper's 1500, stream K/V in
    # time blocks with an online softmax instead of keeping them resident.
    Tp = k_ref.shape[1]
    C = q_ref.shape[2]
    D = C // n_head
    need_mask = Tp > t_valid
    if need_mask:
        col = jax.lax.broadcasted_iota(jnp.int32, (1, Tp), 1)
        kbias = jnp.where(col >= t_valid, -1e30, 0.0).astype(jnp.float32)

    for h in range(n_head):                      # static unroll
        sl = pl.ds(h * D, D)
        qh = q_ref[0, :, sl]                     # (tq, D) bf16, pre-scaled
        kh = k_ref[0, :, sl]                     # (Tp, D) bf16
        s = jax.lax.dot_general(qh, kh, (((1,), (1,)), ((), ())),
                                preferred_element_type=jnp.float32)   # (tq, Tp)
        if need_mask:
            s = s + kbias
        m = jnp.max(s, axis=-1, keepdims=True)
        e = jnp.exp(s - m)
        p = e * pl.reciprocal(jnp.sum(e, axis=-1, keepdims=True), approx=True)
        oh = jnp.dot(p.astype(_BF16), v_ref[0, :, sl],
                     preferred_element_type=jnp.float32)              # (tq, D)
        ho_ref[:, sl] = oh.astype(_BF16)

    out = x_ref[0].astype(jnp.float32) + bo_ref[...] + jnp.dot(
        ho_ref[...], wo_ref[...], preferred_element_type=jnp.float32)
    o_ref[0] = out.astype(o_ref.dtype)


def _mlp_kernel(x_ref, g_ref, bln_ref, w1_ref, b1_ref, w2_ref, b2_ref, o_ref,
                xn_ref, acc_ref):
    # grid = (B, t_tiles, hidden_tiles); hidden axis is the reduction axis.
    hh = pl.program_id(2)

    @pl.when(hh == 0)
    def _():
        xv = x_ref[0].astype(jnp.float32)
        xn_ref[...] = _layer_norm(xv, g_ref[...], bln_ref[...]).astype(_BF16)
        acc_ref[...] = xv + b2_ref[...]          # residual + final bias

    h1 = jnp.dot(xn_ref[...], w1_ref[...],
                 preferred_element_type=jnp.float32) + b1_ref[...]
    h1 = _gelu(h1)
    acc_ref[...] += jnp.dot(h1.astype(_BF16), w2_ref[...],
                            preferred_element_type=jnp.float32)

    @pl.when(hh == pl.num_programs(2) - 1)
    def _():
        o_ref[0] = acc_ref[...].astype(o_ref.dtype)


def residual_block(x, p, n_head, t_valid, tt, h_tile):
    B, Tp, C = x.shape
    nt = Tp // tt

    # ---- 1) pre-LN q/k/v projection (lane-dense (B, Tp, C) bf16 outputs) ----
    q, k, v = pl.pallas_call(
        _qkv_kernel,
        out_shape=tuple(jax.ShapeDtypeStruct((B, Tp, C), _BF16) for _ in range(3)),
        grid=(B, nt),
        in_specs=[
            pl.BlockSpec((1, tt, C), lambda b, t: (b, t, 0)),
            pl.BlockSpec((1, C), lambda b, t: (0, 0)),
            pl.BlockSpec((1, C), lambda b, t: (0, 0)),
            pl.BlockSpec((C, C), lambda b, t: (0, 0)),
            pl.BlockSpec((1, C), lambda b, t: (0, 0)),
            pl.BlockSpec((C, C), lambda b, t: (0, 0)),
            pl.BlockSpec((C, C), lambda b, t: (0, 0)),
            pl.BlockSpec((1, C), lambda b, t: (0, 0)),
        ],
        out_specs=tuple(pl.BlockSpec((1, tt, C), lambda b, t: (b, t, 0))
                        for _ in range(3)),
        compiler_params=_cparams(("parallel", "parallel")),
    )(x, p['ln1_g'], p['ln1_b'], p['wq'], p['bq'], p['wk'], p['wv'], p['bv'])

    # ---- 2) attention core + fused out-projection + residual ----
    attn_fn = functools.partial(_attn_kernel, n_head=n_head, t_valid=t_valid)
    x = pl.pallas_call(
        attn_fn,
        out_shape=jax.ShapeDtypeStruct((B, Tp, C), _BF16),
        grid=(B, nt),
        in_specs=[
            pl.BlockSpec((1, tt, C), lambda b, t: (b, t, 0)),   # residual x
            pl.BlockSpec((1, tt, C), lambda b, t: (b, t, 0)),   # q tile
            pl.BlockSpec((1, Tp, C), lambda b, t: (b, 0, 0)),   # K (whole seq)
            pl.BlockSpec((1, Tp, C), lambda b, t: (b, 0, 0)),   # V (whole seq)
            pl.BlockSpec((C, C), lambda b, t: (0, 0)),          # wo
            pl.BlockSpec((1, C), lambda b, t: (0, 0)),          # bo
        ],
        out_specs=pl.BlockSpec((1, tt, C), lambda b, t: (b, t, 0)),
        scratch_shapes=[pltpu.VMEM((tt, C), _BF16)],
        compiler_params=_cparams(("parallel", "parallel")),
    )(x, q, k, v, p['wo'], p['bo'])

    # ---- 3) pre-LN MLP with hidden-dim tiling + residual ----
    H4 = p['w1'].shape[1]
    th = _pick_div(H4, h_tile, 128)
    nh = H4 // th
    x = pl.pallas_call(
        _mlp_kernel,
        out_shape=jax.ShapeDtypeStruct((B, Tp, C), _BF16),
        grid=(B, nt, nh),
        in_specs=[
            pl.BlockSpec((1, tt, C), lambda b, t, hh: (b, t, 0)),
            pl.BlockSpec((1, C), lambda b, t, hh: (0, 0)),
            pl.BlockSpec((1, C), lambda b, t, hh: (0, 0)),
            pl.BlockSpec((C, th), lambda b, t, hh: (0, hh)),
            pl.BlockSpec((1, th), lambda b, t, hh: (0, hh)),
            pl.BlockSpec((th, C), lambda b, t, hh: (hh, 0)),
            pl.BlockSpec((1, C), lambda b, t, hh: (0, 0)),
        ],
        out_specs=pl.BlockSpec((1, tt, C), lambda b, t, hh: (b, t, 0)),
        scratch_shapes=[pltpu.VMEM((tt, C), _BF16),
                        pltpu.VMEM((tt, C), jnp.float32)],
        compiler_params=_cparams(("parallel", "parallel", "arbitrary")),
    )(x, p['ln2_g'], p['ln2_b'], p['w1'], p['b1'], p['w2'], p['b2'])
    return x


# ----------------------------------------------------------------------------
# ln_post kernel (tiled over batch and time, f32 output)
# ----------------------------------------------------------------------------
def _layernorm_kernel(x_ref, g_ref, b_ref, o_ref):
    o_ref[0] = _layer_norm(x_ref[0].astype(jnp.float32),
                           g_ref[...], b_ref[...]).astype(o_ref.dtype)


def layer_norm_call(x, g, b, tt):
    B, Tp, C = x.shape
    return pl.pallas_call(
        _layernorm_kernel,
        out_shape=jax.ShapeDtypeStruct((B, Tp, C), jnp.float32),
        grid=(B, Tp // tt),
        in_specs=[
            pl.BlockSpec((1, tt, C), lambda b, t: (b, t, 0)),
            pl.BlockSpec((1, C), lambda b, t: (0, 0)),
            pl.BlockSpec((1, C), lambda b, t: (0, 0)),
        ],
        out_specs=pl.BlockSpec((1, tt, C), lambda b, t: (b, t, 0)),
        compiler_params=_cparams(("parallel", "parallel")),
    )(x, g, b)


# ----------------------------------------------------------------------------
# positional embedding / params / one-time weight preparation / full forward
# ----------------------------------------------------------------------------
def sinusoids(length, channels, max_timescale=10000.0):
    assert channels % 2 == 0
    inc = math.log(max_timescale) / (channels // 2 - 1)
    inv = jnp.exp(-inc * jnp.arange(channels // 2, dtype=jnp.float32))
    t = jnp.arange(length, dtype=jnp.float32)[:, None] * inv[None, :]
    return jnp.concatenate([jnp.sin(t), jnp.cos(t)], axis=1)


def init_params(key, n_mels, n_state, n_layer):
    def nrm(k, shape, scale=0.05):
        return scale * jax.random.normal(k, shape, dtype=jnp.float32)

    ks = iter(jax.random.split(key, 4 + 11 * n_layer))
    params = {
        'conv1_w': nrm(next(ks), (3, n_mels, n_state)),
        'conv1_b': nrm(next(ks), (n_state,)),
        'conv2_w': nrm(next(ks), (3, n_state, n_state)),
        'conv2_b': nrm(next(ks), (n_state,)),
        'ln_post_g': jnp.ones((n_state,), jnp.float32),
        'ln_post_b': jnp.zeros((n_state,), jnp.float32),
        'blocks': [],
    }
    for _ in range(n_layer):
        blk = {
            'ln1_g': jnp.ones((n_state,), jnp.float32),
            'ln1_b': jnp.zeros((n_state,), jnp.float32),
            'wq': nrm(next(ks), (n_state, n_state)), 'bq': nrm(next(ks), (n_state,)),
            'wk': nrm(next(ks), (n_state, n_state)),
            'wv': nrm(next(ks), (n_state, n_state)), 'bv': nrm(next(ks), (n_state,)),
            'wo': nrm(next(ks), (n_state, n_state)), 'bo': nrm(next(ks), (n_state,)),
            'ln2_g': jnp.ones((n_state,), jnp.float32),
            'ln2_b': jnp.zeros((n_state,), jnp.float32),
            'w1': nrm(next(ks), (n_state, 4 * n_state)),
            'b1': nrm(next(ks), (4 * n_state,)),
            'w2': nrm(next(ks), (4 * n_state, n_state)),
            'b2': nrm(next(ks), (n_state,)),
        }
        params['blocks'].append(blk)
    return params


def prepare_params(params, n_head):
    """One-time weight preparation (hoisted out of the forward pass):
    bf16 casts, softmax-scale folding into wq/bq, bias reshapes and n_mels->128
    padding of the conv1 input channels."""
    c1w = params['conv1_w']
    n_mels, C = c1w.shape[1], c1w.shape[2]
    D = C // n_head
    scale = float(D) ** -0.5
    cin_p = _round_up(n_mels, 128)
    c1w = jnp.pad(c1w, ((0, 0), (0, cin_p - n_mels), (0, 0)))

    def r1(v):
        return jnp.asarray(v, jnp.float32).reshape(1, -1)

    pp = {
        'conv1_w': c1w.astype(_BF16),
        'conv1_b': r1(params['conv1_b']),
        'conv2_w': params['conv2_w'].astype(_BF16),
        'conv2_b': r1(params['conv2_b']),
        'ln_post_g': r1(params['ln_post_g']),
        'ln_post_b': r1(params['ln_post_b']),
        'blocks': [],
    }
    for blk in params['blocks']:
        pp['blocks'].append({
            'ln1_g': r1(blk['ln1_g']), 'ln1_b': r1(blk['ln1_b']),
            'wq': (blk['wq'] * scale).astype(_BF16), 'bq': r1(blk['bq'] * scale),
            'wk': blk['wk'].astype(_BF16),
            'wv': blk['wv'].astype(_BF16), 'bv': r1(blk['bv']),
            'wo': blk['wo'].astype(_BF16), 'bo': r1(blk['bo']),
            'ln2_g': r1(blk['ln2_g']), 'ln2_b': r1(blk['ln2_b']),
            'w1': blk['w1'].astype(_BF16), 'b1': r1(blk['b1']),
            'w2': blk['w2'].astype(_BF16), 'b2': r1(blk['b2']),
        })
    return pp


def audio_encoder_forward(x_mel, pp, *, n_head, t_tile=256, h_tile=512):
    # x_mel: (batch, n_mels, T) -- PyTorch NCW input of AudioEncoder.forward.
    B, n_mels, T_in = x_mel.shape
    C = pp['conv2_w'].shape[2]
    cin_p = pp['conv1_w'].shape[1]

    # channels-last bf16, mel channels zero-padded to a 128 multiple
    x = jnp.transpose(x_mel, (0, 2, 1)).astype(_BF16)
    x = jnp.pad(x, ((0, 0), (0, 0), (0, cin_p - n_mels)))

    # ---- conv1 (k=3, stride=1, pad=1) + GELU ----
    T1 = T_in
    tt1 = _time_tile(T1, t_tile)
    T1p = _round_up(T1, tt1)
    xp = jnp.pad(x, ((0, 0), (1, T1p + 1 - T1), (0, 0)))        # length T1p + 2
    h = conv3_gelu(xp[:, 0:T1p], xp[:, 1:T1p + 1], xp[:, 2:T1p + 2],
                   pp['conv1_w'], pp['conv1_b'], tt1)            # (B, T1p, C) bf16

    # ---- conv2 (k=3, stride=2, pad=1) + GELU -> padded transformer length ----
    n_ctx = (T1 - 1) // 2 + 1
    tt = _time_tile(n_ctx, t_tile)
    Tp = _round_up(n_ctx, tt)
    xp2 = jnp.pad(h[:, :T1], ((0, 0), (1, 1), (0, 0)))           # (B, T1+2, C)
    xe = _fit_len(xp2[:, 0::2], Tp + 1)
    xo = _fit_len(xp2[:, 1::2], Tp)
    x = conv3_gelu(xe[:, :Tp], xo, xe[:, 1:Tp + 1],
                   pp['conv2_w'], pp['conv2_b'], tt)             # (B, Tp, C) bf16

    # ---- positional embedding (zero for padded rows) ----
    pos = sinusoids(n_ctx, C)
    pos = jnp.pad(pos, ((0, Tp - n_ctx), (0, 0)))
    x = (x.astype(jnp.float32) + pos[None]).astype(_BF16)

    # ---- transformer blocks (padded keys masked inside the attention kernel) ----
    all_x = []
    n_pool = n_ctx // 20
    for bp in pp['blocks']:
        x = residual_block(x, bp, n_head, n_ctx, tt, h_tile)
        # avg_pool2d(kernel=(20,1), stride=(20,1))[0] == 20-wide time mean, batch 0
        pooled = x[0, :n_pool * 20].astype(jnp.float32)
        pooled = pooled.reshape(n_pool, 20, C).mean(axis=1)
        all_x.append(pooled)

    xf = layer_norm_call(x, pp['ln_post_g'], pp['ln_post_b'], tt)
    return xf[:, :n_ctx], jnp.stack(all_x, axis=0)


if __name__ == "__main__":
    # small but shape-consistent config; T_in=90 -> n_ctx=45 so the time-padding
    # (45 -> 48) and padded-key masking paths are actually exercised.
    B, n_mels, T_in = 2, 8, 90
    n_state, n_head, n_layer = 64, 4, 2

    key = jax.random.PRNGKey(0)
    kx, kp = jax.random.split(key)
    x_mel = jax.random.normal(kx, (B, n_mels, T_in), dtype=jnp.float32)
    params = init_params(kp, n_mels, n_state, n_layer)
    pp = prepare_params(params, n_head)          # one-time weight prep (hoisted)

    fwd = jax.jit(functools.partial(audio_encoder_forward, n_head=n_head))
    out, all_x = fwd(x_mel, pp)
    jax.block_until_ready((out, all_x))

    n_ctx = (T_in - 1) // 2 + 1                  # 45
    assert out.shape == (B, n_ctx, n_state), out.shape
    assert all_x.shape == (n_layer, n_ctx // 20, n_state), all_x.shape
    assert bool(jnp.all(jnp.isfinite(out))) and bool(jnp.all(jnp.isfinite(all_x)))
    print("KERNEL_OK")
</pallas_src>

<mosaic_0001>
module attributes {stable_mosaic.version = 11 : i64} {
  func.func @_conv3_kernel(%arg0: i32, %arg1: i32, %arg2: memref<1x96x128xbf16, #tpu.memory_space<vmem>>, %arg3: memref<1x96x128xbf16, #tpu.memory_space<vmem>>, %arg4: memref<1x96x128xbf16, #tpu.memory_space<vmem>>, %arg5: memref<3x128x64xbf16, #tpu.memory_space<vmem>>, %arg6: memref<1x64xf32, #tpu.memory_space<vmem>>, %arg7: memref<1x96x64xbf16, #tpu.memory_space<vmem>>) attributes {dimension_semantics = [#tpu.dimension_semantics<parallel>, #tpu.dimension_semantics<parallel>], iteration_bounds = array<i64: 2, 1>, scalar_prefetch = 0 : i64, scratch_operands = 0 : i64, tpu.core_type = #tpu.core_type<tc>, window_params = [{transform_indices = @transform_0, window_bounds = array<i64: 1, 96, 128>}, {transform_indices = @transform_1, window_bounds = array<i64: 1, 96, 128>}, {transform_indices = @transform_2, window_bounds = array<i64: 1, 96, 128>}, {pipeline_mode = #tpu.pipeline_mode<synchronous>, transform_indices = @transform_3, window_bounds = array<i64: 3, 128, 64>}, {pipeline_mode = #tpu.pipeline_mode<synchronous>, transform_indices = @transform_4, window_bounds = array<i64: 1, 64>}, {transform_indices = @transform_5, window_bounds = array<i64: 1, 96, 64>}]} {
    %c0 = arith.constant 0 : index
    %c0_0 = arith.constant 0 : index
    %c0_1 = arith.constant 0 : index
    %0 = vector.load %arg2[%c0, %c0_0, %c0_1] : memref<1x96x128xbf16, #tpu.memory_space<vmem>>, vector<1x96x128xbf16>
    %1 = vector.shape_cast %0 : vector<1x96x128xbf16> to vector<96x128xbf16>
    %c0_2 = arith.constant 0 : index
    %c0_3 = arith.constant 0 : index
    %c0_4 = arith.constant 0 : index
    %2 = vector.load %arg5[%c0_2, %c0_3, %c0_4] : memref<3x128x64xbf16, #tpu.memory_space<vmem>>, vector<1x128x64xbf16>
    %3 = vector.shape_cast %2 : vector<1x128x64xbf16> to vector<128x64xbf16>
    %cst = arith.constant dense<0.000000e+00> : vector<96x64xf32>
    %4 = tpu.matmul %1, %3, %cst {dimension_numbers = #tpu.dot_dimension_numbers<[1], [0], [0], [1], [0, 0, 1, 1], [], []>} : vector<96x128xbf16>, vector<128x64xbf16>, vector<96x64xf32> -> vector<96x64xf32>
    %c0_5 = arith.constant 0 : index
    %c0_6 = arith.constant 0 : index
    %c0_7 = arith.constant 0 : index
    %5 = vector.load %arg3[%c0_5, %c0_6, %c0_7] : memref<1x96x128xbf16, #tpu.memory_space<vmem>>, vector<1x96x128xbf16>
    %6 = vector.shape_cast %5 : vector<1x96x128xbf16> to vector<96x128xbf16>
    %c1 = arith.constant 1 : index
    %c0_8 = arith.constant 0 : index
    %c0_9 = arith.constant 0 : index
    %7 = vector.load %arg5[%c1, %c0_8, %c0_9] : memref<3x128x64xbf16, #tpu.memory_space<vmem>>, vector<1x128x64xbf16>
    %8 = vector.shape_cast %7 : vector<1x128x64xbf16> to vector<128x64xbf16>
    %cst_10 = arith.constant dense<0.000000e+00> : vector<96x64xf32>
    %9 = tpu.matmul %6, %8, %cst_10 {dimension_numbers = #tpu.dot_dimension_numbers<[1], [0], [0], [1], [0, 0, 1, 1], [], []>} : vector<96x128xbf16>, vector<128x64xbf16>, vector<96x64xf32> -> vector<96x64xf32>
    %10 = arith.addf %4, %9 : vector<96x64xf32>
    %c0_11 = arith.constant 0 : index
    %c0_12 = arith.constant 0 : index
    %c0_13 = arith.constant 0 : index
    %11 = vector.load %arg4[%c0_11, %c0_12, %c0_13] : memref<1x96x128xbf16, #tpu.memory_space<vmem>>, vector<1x96x128xbf16>
    %12 = vector.shape_cast %11 : vector<1x96x128xbf16> to vector<96x128xbf16>
    %c2 = arith.constant 2 : index
    %c0_14 = arith.constant 0 : index
    %c0_15 = arith.constant 0 : index
    %13 = vector.load %arg5[%c2, %c0_14, %c0_15] : memref<3x128x64xbf16, #tpu.memory_space<vmem>>, vector<1x128x64xbf16>
    %14 = vector.shape_cast %13 : vector<1x128x64xbf16> to vector<128x64xbf16>
    %cst_16 = arith.constant dense<0.000000e+00> : vector<96x64xf32>
    %15 = tpu.matmul %12, %14, %cst_16 {dimension_numbers = #tpu.dot_dimension_numbers<[1], [0], [0], [1], [0, 0, 1, 1], [], []>} : vector<96x128xbf16>, vector<128x64xbf16>, vector<96x64xf32> -> vector<96x64xf32>
    %16 = arith.addf %10, %15 : vector<96x64xf32>
    %c0_17 = arith.constant 0 : index
    %c0_18 = arith.constant 0 : index
    %17 = vector.load %arg6[%c0_17, %c0_18] : memref<1x64xf32, #tpu.memory_space<vmem>>, vector<1x64xf32>
    %18 = vector.broadcast %17 : vector<1x64xf32> to vector<96x64xf32>
    %19 = arith.addf %16, %18 : vector<96x64xf32>
    %cst_19 = arith.constant 5.000000e-01 : f32
    %20 = vector.broadcast %cst_19 : f32 to vector<96x64xf32>
    %21 = arith.mulf %20, %19 : vector<96x64xf32>
    %cst_20 = arith.constant 4.471500e-02 : f32
    %22 = vector.broadcast %cst_20 : f32 to vector<96x64xf32>
    %23 = arith.mulf %22, %19 : vector<96x64xf32>
    %24 = arith.mulf %23, %19 : vector<96x64xf32>
    %25 = arith.mulf %24, %19 : vector<96x64xf32>
    %26 = arith.addf %19, %25 : vector<96x64xf32>
    %cst_21 = arith.constant 0.797884583 : f32
    %27 = vector.broadcast %cst_21 : f32 to vector<96x64xf32>
    %28 = arith.mulf %27, %26 : vector<96x64xf32>
    %29 = math.tanh %28 : vector<96x64xf32>
    %cst_22 = arith.constant 1.000000e+00 : f32
    %30 = vector.broadcast %cst_22 : f32 to vector<96x64xf32>
    %31 = arith.addf %30, %29 : vector<96x64xf32>
    %32 = arith.mulf %21, %31 : vector<96x64xf32>
    %33 = arith.truncf %32 : vector<96x64xf32> to vector<96x64xbf16>
    %c0_23 = arith.constant 0 : index
    %c0_24 = arith.constant 0 : index
    %c0_25 = arith.constant 0 : index
    %34 = vector.load %arg7[%c0_23, %c0_24, %c0_25] : memref<1x96x64xbf16, #tpu.memory_space<vmem>>, vector<1x96x64xbf16>
    %35 = vector.shape_cast %34 : vector<1x96x64xbf16> to vector<96x64xbf16>
    %36 = vector.shape_cast %33 : vector<96x64xbf16> to vector<1x96x64xbf16>
    tpu.vector_store %arg7[%c0_23, %c0_24, %c0_25], %36 {strides = array<i32>} : memref<1x96x64xbf16, #tpu.memory_space<vmem>>, vector<1x96x64xbf16>,
    return
  }
  func.func @transform_0(%arg0: i32, %arg1: i32) -> (i32, i32, i32) {
    %c0_i32 = arith.constant 0 : i32
    %c0_i32_0 = arith.constant 0 : i32
    return %arg0, %arg1, %c0_i32 : i32, i32, i32
  }
  func.func @transform_1(%arg0: i32, %arg1: i32) -> (i32, i32, i32) {
    %c0_i32 = arith.constant 0 : i32
    %c0_i32_0 = arith.constant 0 : i32
    return %arg0, %arg1, %c0_i32 : i32, i32, i32
  }
  func.func @transform_2(%arg0: i32, %arg1: i32) -> (i32, i32, i32) {
    %c0_i32 = arith.constant 0 : i32
    %c0_i32_0 = arith.constant 0 : i32
    return %arg0, %arg1, %c0_i32 : i32, i32, i32
  }
  func.func @transform_3(%arg0: i32, %arg1: i32) -> (i32, i32, i32) {
    %c0_i32 = arith.constant 0 : i32
    %c0_i32_0 = arith.constant 0 : i32
    %c0_i32_1 = arith.constant 0 : i32
    %c0_i32_2 = arith.constant 0 : i32
    return %c0_i32, %c0_i32_0, %c0_i32_1 : i32, i32, i32
  }
  func.func @transform_4(%arg0: i32, %arg1: i32) -> (i32, i32) {
    %c0_i32 = arith.constant 0 : i32
    %c0_i32_0 = arith.constant 0 : i32
    %c0_i32_1 = arith.constant 0 : i32
    return %c0_i32, %c0_i32_0 : i32, i32
  }
  func.func @transform_5(%arg0: i32, %arg1: i32) -> (i32, i32, i32) {
    %c0_i32 = arith.constant 0 : i32
    %c0_i32_0 = arith.constant 0 : i32
    return %arg0, %arg1, %c0_i32 : i32, i32, i32
  }
}

module attributes {stable_mosaic.version = 11 : i64} {
  func.func @_conv3_kernel(%arg0: i32, %arg1: i32, %arg2: memref<1x48x64xbf16, #tpu.memory_space<vmem>>, %arg3: memref<1x48x64xbf16, #tpu.memory_space<vmem>>, %arg4: memref<1x48x64xbf16, #tpu.memory_space<vmem>>, %arg5: memref<3x64x64xbf16, #tpu.memory_space<vmem>>, %arg6: memref<1x64xf32, #tpu.memory_space<vmem>>, %arg7: memref<1x48x64xbf16, #tpu.memory_space<vmem>>) attributes {dimension_semantics = [#tpu.dimension_semantics<parallel>, #tpu.dimension_semantics<parallel>], iteration_bounds = array<i64: 2, 1>, scalar_prefetch = 0 : i64, scratch_operands = 0 : i64, tpu.core_type = #tpu.core_type<tc>, window_params = [{transform_indices = @transform_0, window_bounds = array<i64: 1, 48, 64>}, {transform_indices = @transform_1, window_bounds = array<i64: 1, 48, 64>}, {transform_indices = @transform_2, window_bounds = array<i64: 1, 48, 64>}, {pipeline_mode = #tpu.pipeline_mode<synchronous>, transform_indices = @transform_3, window_bounds = array<i64: 3, 64, 64>}, {pipeline_mode = #tpu.pipeline_mode<synchronous>, transform_indices = @transform_4, window_bounds = array<i64: 1, 64>}, {transform_indices = @transform_5, window_bounds = array<i64: 1, 48, 64>}]} {
    %c0 = arith.constant 0 : index
    %c0_0 = arith.constant 0 : index
    %c0_1 = arith.constant 0 : index
    %0 = vector.load %arg2[%c0, %c0_0, %c0_1] : memref<1x48x64xbf16, #tpu.memory_space<vmem>>, vector<1x48x64xbf16>
    %1 = vector.shape_cast %0 : vector<1x48x64xbf16> to vector<48x64xbf16>
    %c0_2 = arith.constant 0 : index
    %c0_3 = arith.constant 0 : index
    %c0_4 = arith.constant 0 : index
    %2 = vector.load %arg5[%c0_2, %c0_3, %c0_4] : memref<3x64x64xbf16, #tpu.memory_space<vmem>>, vector<1x64x64xbf16>
    %3 = vector.shape_cast %2 : vector<1x64x64xbf16> to vector<64x64xbf16>
    %cst = arith.constant dense<0.000000e+00> : vector<48x64xf32>
    %4 = tpu.matmul %1, %3, %cst {dimension_numbers = #tpu.dot_dimension_numbers<[1], [0], [0], [1], [0, 0, 1, 1], [], []>} : vector<48x64xbf16>, vector<64x64xbf16>, vector<48x64xf32> -> vector<48x64xf32>
    %c0_5 = arith.constant 0 : index
    %c0_6 = arith.constant 0 : index
    %c0_7 = arith.constant 0 : index
    %5 = vector.load %arg3[%c0_5, %c0_6, %c0_7] : memref<1x48x64xbf16, #tpu.memory_space<vmem>>, vector<1x48x64xbf16>
    %6 = vector.shape_cast %5 : vector<1x48x64xbf16> to vector<48x64xbf16>
    %c1 = arith.constant 1 : index
    %c0_8 = arith.constant 0 : index
    %c0_9 = arith.constant 0 : index
    %7 = vector.load %arg5[%c1, %c0_8, %c0_9] : memref<3x64x64xbf16, #tpu.memory_space<vmem>>, vector<1x64x64xbf16>
    %8 = vector.shape_cast %7 : vector<1x64x64xbf16> to vector<64x64xbf16>
    %cst_10 = arith.constant dense<0.000000e+00> : vector<48x64xf32>
    %9 = tpu.matmul %6, %8, %cst_10 {dimension_numbers = #tpu.dot_dimension_numbers<[1], [0], [0], [1], [0, 0, 1, 1], [], []>} : vector<48x64xbf16>, vector<64x64xbf16>, vector<48x64xf32> -> vector<48x64xf32>
    %10 = arith.addf %4, %9 : vector<48x64xf32>
    %c0_11 = arith.constant 0 : index
    %c0_12 = arith.constant 0 : index
    %c0_13 = arith.constant 0 : index
    %11 = vector.load %arg4[%c0_11, %c0_12, %c0_13] : memref<1x48x64xbf16, #tpu.memory_space<vmem>>, vector<1x48x64xbf16>
    %12 = vector.shape_cast %11 : vector<1x48x64xbf16> to vector<48x64xbf16>
    %c2 = arith.constant 2 : index
    %c0_14 = arith.constant 0 : index
    %c0_15 = arith.constant 0 : index
    %13 = vector.load %arg5[%c2, %c0_14, %c0_15] : memref<3x64x64xbf16, #tpu.memory_space<vmem>>, vector<1x64x64xbf16>
    %14 = vector.shape_cast %13 : vector<1x64x64xbf16> to vector<64x64xbf16>
    %cst_16 = arith.constant dense<0.000000e+00> : vector<48x64xf32>
    %15 = tpu.matmul %12, %14, %cst_16 {dimension_numbers = #tpu.dot_dimension_numbers<[1], [0], [0], [1], [0, 0, 1, 1], [], []>} : vector<48x64xbf16>, vector<64x64xbf16>, vector<48x64xf32> -> vector<48x64xf32>
    %16 = arith.addf %10, %15 : vector<48x64xf32>
    %c0_17 = arith.constant 0 : index
    %c0_18 = arith.constant 0 : index
    %17 = vector.load %arg6[%c0_17, %c0_18] : memref<1x64xf32, #tpu.memory_space<vmem>>, vector<1x64xf32>
    %18 = vector.broadcast %17 : vector<1x64xf32> to vector<48x64xf32>
    %19 = arith.addf %16, %18 : vector<48x64xf32>
    %cst_19 = arith.constant 5.000000e-01 : f32
    %20 = vector.broadcast %cst_19 : f32 to vector<48x64xf32>
    %21 = arith.mulf %20, %19 : vector<48x64xf32>
    %cst_20 = arith.constant 4.471500e-02 : f32
    %22 = vector.broadcast %cst_20 : f32 to vector<48x64xf32>
    %23 = arith.mulf %22, %19 : vector<48x64xf32>
    %24 = arith.mulf %23, %19 : vector<48x64xf32>
    %25 = arith.mulf %24, %19 : vector<48x64xf32>
    %26 = arith.addf %19, %25 : vector<48x64xf32>
    %cst_21 = arith.constant 0.797884583 : f32
    %27 = vector.broadcast %cst_21 : f32 to vector<48x64xf32>
    %28 = arith.mulf %27, %26 : vector<48x64xf32>
    %29 = math.tanh %28 : vector<48x64xf32>
    %cst_22 = arith.constant 1.000000e+00 : f32
    %30 = vector.broadcast %cst_22 : f32 to vector<48x64xf32>
    %31 = arith.addf %30, %29 : vector<48x64xf32>
    %32 = arith.mulf %21, %31 : vector<48x64xf32>
    %33 = arith.truncf %32 : vector<48x64xf32> to vector<48x64xbf16>
    %c0_23 = arith.constant 0 : index
    %c0_24 = arith.constant 0 : index
    %c0_25 = arith.constant 0 : index
    %34 = vector.load %arg7[%c0_23, %c0_24, %c0_25] : memref<1x48x64xbf16, #tpu.memory_space<vmem>>, vector<1x48x64xbf16>
    %35 = vector.shape_cast %34 : vector<1x48x64xbf16> to vector<48x64xbf16>
    %36 = vector.shape_cast %33 : vector<48x64xbf16> to vector<1x48x64xbf16>
    tpu.vector_store %arg7[%c0_23, %c0_24, %c0_25], %36 {strides = array<i32>} : memref<1x48x64xbf16, #tpu.memory_space<vmem>>, vector<1x48x64xbf16>,
    return
  }
  func.func @transform_0(%arg0: i32, %arg1: i32) -> (i32, i32, i32) {
    %c0_i32 = arith.constant 0 : i32
    %c0_i32_0 = arith.constant 0 : i32
    return %arg0, %arg1, %c0_i32 : i32, i32, i32
  }
  func.func @transform_1(%arg0: i32, %arg1: i32) -> (i32, i32, i32) {
    %c0_i32 = arith.constant 0 : i32
    %c0_i32_0 = arith.constant 0 : i32
    return %arg0, %arg1, %c0_i32 : i32, i32, i32
  }
  func.func @transform_2(%arg0: i32, %arg1: i32) -> (i32, i32, i32) {
    %c0_i32 = arith.constant 0 : i32
    %c0_i32_0 = arith.constant 0 : i32
    return %arg0, %arg1, %c0_i32 : i32, i32, i32
  }
  func.func @transform_3(%arg0: i32, %arg1: i32) -> (i32, i32, i32) {
    %c0_i32 = arith.constant 0 : i32
    %c0_i32_0 = arith.constant 0 : i32
    %c0_i32_1 = arith.constant 0 : i32
    %c0_i32_2 = arith.constant 0 : i32
    return %c0_i32, %c0_i32_0, %c0_i32_1 : i32, i32, i32
  }
  func.func @transform_4(%arg0: i32, %arg1: i32) -> (i32, i32) {
    %c0_i32 = arith.constant 0 : i32
    %c0_i32_0 = arith.constant 0 : i32
    %c0_i32_1 = arith.constant 0 : i32
    return %c0_i32, %c0_i32_0 : i32, i32
  }
  func.func @transform_5(%arg0: i32, %arg1: i32) -> (i32, i32, i32) {
    %c0_i32 = arith.constant 0 : i32
    %c0_i32_0 = arith.constant 0 : i32
    return %arg0, %arg1, %c0_i32 : i32, i32, i32
  }
}

module attributes {stable_mosaic.version = 11 : i64} {
  func.func @_qkv_kernel(%arg0: i32, %arg1: i32, %arg2: memref<1x48x64xbf16, #tpu.memory_space<vmem>>, %arg3: memref<1x64xf32, #tpu.memory_space<vmem>>, %arg4: memref<1x64xf32, #tpu.memory_space<vmem>>, %arg5: memref<64x64xbf16, #tpu.memory_space<vmem>>, %arg6: memref<1x64xf32, #tpu.memory_space<vmem>>, %arg7: memref<64x64xbf16, #tpu.memory_space<vmem>>, %arg8: memref<64x64xbf16, #tpu.memory_space<vmem>>, %arg9: memref<1x64xf32, #tpu.memory_space<vmem>>, %arg10: memref<1x48x64xbf16, #tpu.memory_space<vmem>>, %arg11: memref<1x48x64xbf16, #tpu.memory_space<vmem>>, %arg12: memref<1x48x64xbf16, #tpu.memory_space<vmem>>) attributes {dimension_semantics = [#tpu.dimension_semantics<parallel>, #tpu.dimension_semantics<parallel>], iteration_bounds = array<i64: 2, 1>, scalar_prefetch = 0 : i64, scratch_operands = 0 : i64, tpu.core_type = #tpu.core_type<tc>, window_params = [{transform_indices = @transform_0, window_bounds = array<i64: 1, 48, 64>}, {pipeline_mode = #tpu.pipeline_mode<synchronous>, transform_indices = @transform_1, window_bounds = array<i64: 1, 64>}, {pipeline_mode = #tpu.pipeline_mode<synchronous>, transform_indices = @transform_2, window_bounds = array<i64: 1, 64>}, {pipeline_mode = #tpu.pipeline_mode<synchronous>, transform_indices = @transform_3, window_bounds = array<i64: 64, 64>}, {pipeline_mode = #tpu.pipeline_mode<synchronous>, transform_indices = @transform_4, window_bounds = array<i64: 1, 64>}, {pipeline_mode = #tpu.pipeline_mode<synchronous>, transform_indices = @transform_5, window_bounds = array<i64: 64, 64>}, {pipeline_mode = #tpu.pipeline_mode<synchronous>, transform_indices = @transform_6, window_bounds = array<i64: 64, 64>}, {pipeline_mode = #tpu.pipeline_mode<synchronous>, transform_indices = @transform_7, window_bounds = array<i64: 1, 64>}, {transform_indices = @transform_8, window_bounds = array<i64: 1, 48, 64>}, {transform_indices = @transform_9, window_bounds = array<i64: 1, 48, 64>}, {transform_indices = @transform_10, window_bounds = array<i64: 1, 48, 64>}]} {
    %c0 = arith.constant 0 : index
    %c0_0 = arith.constant 0 : index
    %c0_1 = arith.constant 0 : index
    %0 = vector.load %arg2[%c0, %c0_0, %c0_1] : memref<1x48x64xbf16, #tpu.memory_space<vmem>>, vector<1x48x64xbf16>
    %1 = vector.shape_cast %0 : vector<1x48x64xbf16> to vector<48x64xbf16>
    %2 = arith.extf %1 : vector<48x64xbf16> to vector<48x64xf32>
    %c0_2 = arith.constant 0 : index
    %c0_3 = arith.constant 0 : index
    %3 = vector.load %arg3[%c0_2, %c0_3] : memref<1x64xf32, #tpu.memory_space<vmem>>, vector<1x64xf32>
    %c0_4 = arith.constant 0 : index
    %c0_5 = arith.constant 0 : index
    %4 = vector.load %arg4[%c0_4, %c0_5] : memref<1x64xf32, #tpu.memory_space<vmem>>, vector<1x64xf32>
    %cst = arith.constant dense<0.000000e+00> : vector<48xf32>
    %5 = vector.multi_reduction <add>, %2, %cst [1] : vector<48x64xf32> to vector<48xf32>
    %6 = vector.shape_cast %5 : vector<48xf32> to vector<48x1xf32>
    %cst_6 = arith.constant 6.400000e+01 : f32
    %7 = vector.broadcast %cst_6 : f32 to vector<48x1xf32>
    %8 = arith.divf %6, %7 : vector<48x1xf32>
    %9 = vector.broadcast %8 : vector<48x1xf32> to vector<48x64xf32>
    %10 = arith.subf %2, %9 : vector<48x64xf32>
    %11 = arith.mulf %10, %10 : vector<48x64xf32>
    %cst_7 = arith.constant dense<0.000000e+00> : vector<48xf32>
    %12 = vector.multi_reduction <add>, %11, %cst_7 [1] : vector<48x64xf32> to vector<48xf32>
    %13 = vector.shape_cast %12 : vector<48xf32> to vector<48x1xf32>
    %cst_8 = arith.constant 6.400000e+01 : f32
    %14 = vector.broadcast %cst_8 : f32 to vector<48x1xf32>
    %15 = arith.divf %13, %14 : vector<48x1xf32>
    %cst_9 = arith.constant 9.99999974E-6 : f32
    %16 = vector.broadcast %cst_9 : f32 to vector<48x1xf32>
    %17 = arith.addf %15, %16 : vector<48x1xf32>
    %18 = math.rsqrt %17 : vector<48x1xf32>
    %19 = vector.broadcast %18 : vector<48x1xf32> to vector<48x64xf32>
    %20 = arith.mulf %10, %19 : vector<48x64xf32>
    %21 = vector.broadcast %3 : vector<1x64xf32> to vector<48x64xf32>
    %22 = arith.mulf %20, %21 : vector<48x64xf32>
    %23 = vector.broadcast %4 : vector<1x64xf32> to vector<48x64xf32>
    %24 = arith.addf %22, %23 : vector<48x64xf32>
    %25 = arith.truncf %24 : vector<48x64xf32> to vector<48x64xbf16>
    %c0_10 = arith.constant 0 : index
    %c0_11 = arith.constant 0 : index
    %26 = vector.load %arg5[%c0_10, %c0_11] : memref<64x64xbf16, #tpu.memory_space<vmem>>, vector<64x64xbf16>
    %cst_12 = arith.constant dense<0.000000e+00> : vector<48x64xf32>
    %27 = tpu.matmul %25, %26, %cst_12 {dimension_numbers = #tpu.dot_dimension_numbers<[1], [0], [0], [1], [0, 0, 1, 1], [], []>} : vector<48x64xbf16>, vector<64x64xbf16>, vector<48x64xf32> -> vector<48x64xf32>
    %c0_13 = arith.constant 0 : index
    %c0_14 = arith.constant 0 : index
    %28 = vector.load %arg6[%c0_13, %c0_14] : memref<1x64xf32, #tpu.memory_space<vmem>>, vector<1x64xf32>
    %29 = vector.broadcast %28 : vector<1x64xf32> to vector<48x64xf32>
    %30 = arith.addf %27, %29 : vector<48x64xf32>
    %31 = arith.truncf %30 : vector<48x64xf32> to vector<48x64xbf16>
    %c0_15 = arith.constant 0 : index
    %c0_16 = arith.constant 0 : index
    %c0_17 = arith.constant 0 : index
    %32 = vector.load %arg10[%c0_15, %c0_16, %c0_17] : memref<1x48x64xbf16, #tpu.memory_space<vmem>>, vector<1x48x64xbf16>
    %33 = vector.shape_cast %32 : vector<1x48x64xbf16> to vector<48x64xbf16>
    %34 = vector.shape_cast %31 : vector<48x64xbf16> to vector<1x48x64xbf16>
    tpu.vector_store %arg10[%c0_15, %c0_16, %c0_17], %34 {strides = array<i32>} : memref<1x48x64xbf16, #tpu.memory_space<vmem>>, vector<1x48x64xbf16>,
    %c0_18 = arith.constant 0 : index
    %c0_19 = arith.constant 0 : index
    %35 = vector.load %arg7[%c0_18, %c0_19] : memref<64x64xbf16, #tpu.memory_space<vmem>>, vector<64x64xbf16>
    %cst_20 = arith.constant dense<0.000000e+00> : vector<48x64xf32>
    %36 = tpu.matmul %25, %35, %cst_20 {dimension_numbers = #tpu.dot_dimension_numbers<[1], [0], [0], [1], [0, 0, 1, 1], [], []>} : vector<48x64xbf16>, vector<64x64xbf16>, vector<48x64xf32> -> vector<48x64xf32>
    %37 = arith.truncf %36 : vector<48x64xf32> to vector<48x64xbf16>
    %c0_21 = arith.constant 0 : index
    %c0_22 = arith.constant 0 : index
    %c0_23 = arith.constant 0 : index
    %38 = vector.load %arg11[%c0_21, %c0_22, %c0_23] : memref<1x48x64xbf16, #tpu.memory_space<vmem>>, vector<1x48x64xbf16>
    %39 = vector.shape_cast %38 : vector<1x48x64xbf16> to vector<48x64xbf16>
    %40 = vector.shape_cast %37 : vector<48x64xbf16> to vector<1x48x64xbf16>
    tpu.vector_store %arg11[%c0_21, %c0_22, %c0_23], %40 {strides = array<i32>} : memref<1x48x64xbf16, #tpu.memory_space<vmem>>, vector<1x48x64xbf16>,
    %c0_24 = arith.constant 0 : index
    %c0_25 = arith.constant 0 : index
    %41 = vector.load %arg8[%c0_24, %c0_25] : memref<64x64xbf16, #tpu.memory_space<vmem>>, vector<64x64xbf16>
    %cst_26 = arith.constant dense<0.000000e+00> : vector<48x64xf32>
    %42 = tpu.matmul %25, %41, %cst_26 {dimension_numbers = #tpu.dot_dimension_numbers<[1], [0], [0], [1], [0, 0, 1, 1], [], []>} : vector<48x64xbf16>, vector<64x64xbf16>, vector<48x64xf32> -> vector<48x64xf32>
    %c0_27 = arith.constant 0 : index
    %c0_28 = arith.constant 0 : index
    %43 = vector.load %arg9[%c0_27, %c0_28] : memref<1x64xf32, #tpu.memory_space<vmem>>, vector<1x64xf32>
    %44 = vector.broadcast %43 : vector<1x64xf32> to vector<48x64xf32>
    %45 = arith.addf %42, %44 : vector<48x64xf32>
    %46 = arith.truncf %45 : vector<48x64xf32> to vector<48x64xbf16>
    %c0_29 = arith.constant 0 : index
    %c0_30 = arith.constant 0 : index
    %c0_31 = arith.constant 0 : index
    %47 = vector.load %arg12[%c0_29, %c0_30, %c0_31] : memref<1x48x64xbf16, #tpu.memory_space<vmem>>, vector<1x48x64xbf16>
    %48 = vector.shape_cast %47 : vector<1x48x64xbf16> to vector<48x64xbf16>
    %49 = vector.shape_cast %46 : vector<48x64xbf16> to vector<1x48x64xbf16>
    tpu.vector_store %arg12[%c0_29, %c0_30, %c0_31], %49 {strides = array<i32>} : memref<1x48x64xbf16, #tpu.memory_space<vmem>>, vector<1x48x64xbf16>,
    return
  }
  func.func @transform_0(%arg0: i32, %arg1: i32) -> (i32, i32, i32) {
    %c0_i32 = arith.constant 0 : i32
    %c0_i32_0 = arith.constant 0 : i32
    return %arg0, %arg1, %c0_i32 : i32, i32, i32
  }
  func.func @transform_1(%arg0: i32, %arg1: i32) -> (i32, i32) {
    %c0_i32 = arith.constant 0 : i32
    %c0_i32_0 = arith.constant 0 : i32
    %c0_i32_1 = arith.constant 0 : i32
    return %c0_i32, %c0_i32_0 : i32, i32
  }
  func.func @transform_2(%arg0: i32, %arg1: i32) -> (i32, i32) {
    %c0_i32 = arith.constant 0 : i32
    %c0_i32_0 = arith.constant 0 : i32
    %c0_i32_1 = arith.constant 0 : i32
    return %c0_i32, %c0_i32_0 : i32, i32
  }
  func.func @transform_3(%arg0: i32, %arg1: i32) -> (i32, i32) {
    %c0_i32 = arith.constant 0 : i32
    %c0_i32_0 = arith.constant 0 : i32
    %c0_i32_1 = arith.constant 0 : i32
    return %c0_i32, %c0_i32_0 : i32, i32
  }
  func.func @transform_4(%arg0: i32, %arg1: i32) -> (i32, i32) {
    %c0_i32 = arith.constant 0 : i32
    %c0_i32_0 = arith.constant 0 : i32
    %c0_i32_1 = arith.constant 0 : i32
    return %c0_i32, %c0_i32_0 : i32, i32
  }
  func.func @transform_5(%arg0: i32, %arg1: i32) -> (i32, i32) {
    %c0_i32 = arith.constant 0 : i32
    %c0_i32_0 = arith.constant 0 : i32
    %c0_i32_1 = arith.constant 0 : i32
    return %c0_i32, %c0_i32_0 : i32, i32
  }
  func.func @transform_6(%arg0: i32, %arg1: i32) -> (i32, i32) {
    %c0_i32 = arith.constant 0 : i32
    %c0_i32_0 = arith.constant 0 : i32
    %c0_i32_1 = arith.constant 0 : i32
    return %c0_i32, %c0_i32_0 : i32, i32
  }
  func.func @transform_7(%arg0: i32, %arg1: i32) -> (i32, i32) {
    %c0_i32 = arith.constant 0 : i32
    %c0_i32_0 = arith.constant 0 : i32
    %c0_i32_1 = arith.constant 0 : i32
    return %c0_i32, %c0_i32_0 : i32, i32
  }
  func.func @transform_8(%arg0: i32, %arg1: i32) -> (i32, i32, i32) {
    %c0_i32 = arith.constant 0 : i32
    %c0_i32_0 = arith.constant 0 : i32
    return %arg0, %arg1, %c0_i32 : i32, i32, i32
  }
  func.func @transform_9(%arg0: i32, %arg1: i32) -> (i32, i32, i32) {
    %c0_i32 = arith.constant 0 : i32
    %c0_i32_0 = arith.constant 0 : i32
    return %arg0, %arg1, %c0_i32 : i32, i32, i32
  }
  func.func @transform_10(%arg0: i32, %arg1: i32) -> (i32, i32, i32) {
    %c0_i32 = arith.constant 0 : i32
    %c0_i32_0 = arith.constant 0 : i32
    return %arg0, %arg1, %c0_i32 : i32, i32, i32
  }
}

module attributes {stable_mosaic.version = 11 : i64} {
  func.func @_attn_kernel(%arg0: i32, %arg1: i32, %arg2: memref<1x48x64xbf16, #tpu.memory_space<vmem>>, %arg3: memref<1x48x64xbf16, #tpu.memory_space<vmem>>, %arg4: memref<1x48x64xbf16, #tpu.memory_space<vmem>>, %arg5: memref<1x48x64xbf16, #tpu.memory_space<vmem>>, %arg6: memref<64x64xbf16, #tpu.memory_space<vmem>>, %arg7: memref<1x64xf32, #tpu.memory_space<vmem>>, %arg8: memref<1x48x64xbf16, #tpu.memory_space<vmem>>, %arg9: memref<48x64xbf16, #tpu.memory_space<vmem>>) attributes {dimension_semantics = [#tpu.dimension_semantics<parallel>, #tpu.dimension_semantics<parallel>], iteration_bounds = array<i64: 2, 1>, scalar_prefetch = 0 : i64, scratch_operands = 1 : i64, tpu.core_type = #tpu.core_type<tc>, window_params = [{transform_indices = @transform_0, window_bounds = array<i64: 1, 48, 64>}, {transform_indices = @transform_1, window_bounds = array<i64: 1, 48, 64>}, {transform_indices = @transform_2, window_bounds = array<i64: 1, 48, 64>}, {transform_indices = @transform_3, window_bounds = array<i64: 1, 48, 64>}, {pipeline_mode = #tpu.pipeline_mode<synchronous>, transform_indices = @transform_4, window_bounds = array<i64: 64, 64>}, {pipeline_mode = #tpu.pipeline_mode<synchronous>, transform_indices = @transform_5, window_bounds = array<i64: 1, 64>}, {transform_indices = @transform_6, window_bounds = array<i64: 1, 48, 64>}]} {
    %0 = tpu.iota {dimensions = array<i32: 1>} : vector<1x48xi32>
    %c45_i32 = arith.constant 45 : i32
    %1 = vector.broadcast %c45_i32 : i32 to vector<1x48xi32>
    %2 = arith.cmpi sge, %0, %1 : vector<1x48xi32>
    %cst = arith.constant -1.000000e+30 : f32
    %cst_0 = arith.constant 0.000000e+00 : f32
    %3 = vector.broadcast %cst : f32 to vector<1x48xf32>
    %4 = vector.broadcast %cst_0 : f32 to vector<1x48xf32>
    %5 = arith.select %2, %3, %4 : vector<1x48xi1>, vector<1x48xf32>
    %c0 = arith.constant 0 : index
    %c0_1 = arith.constant 0 : index
    %c0_2 = arith.constant 0 : index
    %6 = vector.load %arg3[%c0, %c0_1, %c0_2] : memref<1x48x64xbf16, #tpu.memory_space<vmem>>, vector<1x48x16xbf16>
    %7 = vector.shape_cast %6 : vector<1x48x16xbf16> to vector<48x16xbf16>
    %c0_3 = arith.constant 0 : index
    %c0_4 = arith.constant 0 : index
    %c0_5 = arith.constant 0 : index
    %8 = vector.load %arg4[%c0_3, %c0_4, %c0_5] : memref<1x48x64xbf16, #tpu.memory_space<vmem>>, vector<1x48x16xbf16>
    %9 = vector.shape_cast %8 : vector<1x48x16xbf16> to vector<48x16xbf16>
    %cst_6 = arith.constant dense<0.000000e+00> : vector<48x48xf32>
    %10 = tpu.matmul %7, %9, %cst_6 {dimension_numbers = #tpu.dot_dimension_numbers<[1], [1], [0], [0], [0, 0, 1, 0], [], []>} : vector<48x16xbf16>, vector<48x16xbf16>, vector<48x48xf32> -> vector<48x48xf32>
    %11 = vector.broadcast %5 : vector<1x48xf32> to vector<48x48xf32>
    %12 = arith.addf %10, %11 : vector<48x48xf32>
    %cst_7 = arith.constant dense<0xFF800000> : vector<48xf32>
    %13 = vector.multi_reduction <maximumf>, %12, %cst_7 [1] : vector<48x48xf32> to vector<48xf32>
    %14 = vector.shape_cast %13 : vector<48xf32> to vector<48x1xf32>
    %15 = vector.broadcast %14 : vector<48x1xf32> to vector<48x48xf32>
    %16 = arith.subf %12, %15 : vector<48x48xf32>
    %17 = math.exp %16 : vector<48x48xf32>
    %cst_8 = arith.constant dense<0.000000e+00> : vector<48xf32>
    %18 = vector.multi_reduction <add>, %17, %cst_8 [1] : vector<48x48xf32> to vector<48xf32>
    %19 = vector.shape_cast %18 : vector<48xf32> to vector<48x1xf32>
    %20 = tpu.reciprocal %19 {approx = true} : vector<48x1xf32> -> vector<48x1xf32>
    %21 = vector.broadcast %20 : vector<48x1xf32> to vector<48x48xf32>
    %22 = arith.mulf %17, %21 : vector<48x48xf32>
    %23 = arith.truncf %22 : vector<48x48xf32> to vector<48x48xbf16>
    %c0_9 = arith.constant 0 : index
    %c0_10 = arith.constant 0 : index
    %c0_11 = arith.constant 0 : index
    %24 = vector.load %arg5[%c0_9, %c0_10, %c0_11] : memref<1x48x64xbf16, #tpu.memory_space<vmem>>, vector<1x48x16xbf16>
    %25 = vector.shape_cast %24 : vector<1x48x16xbf16> to vector<48x16xbf16>
    %cst_12 = arith.constant dense<0.000000e+00> : vector<48x16xf32>
    %26 = tpu.matmul %23, %25, %cst_12 {dimension_numbers = #tpu.dot_dimension_numbers<[1], [0], [0], [1], [0, 0, 1, 1], [], []>} : vector<48x48xbf16>, vector<48x16xbf16>, vector<48x16xf32> -> vector<48x16xf32>
    %27 = arith.truncf %26 : vector<48x16xf32> to vector<48x16xbf16>
    %c0_13 = arith.constant 0 : index
    %c0_14 = arith.constant 0 : index
    %28 = vector.load %arg9[%c0_13, %c0_14] : memref<48x64xbf16, #tpu.memory_space<vmem>>, vector<48x16xbf16>
    tpu.vector_store %arg9[%c0_13, %c0_14], %27 {strides = array<i32>} : memref<48x64xbf16, #tpu.memory_space<vmem>>, vector<48x16xbf16>,
    %c0_15 = arith.constant 0 : index
    %c0_16 = arith.constant 0 : index
    %c16 = arith.constant 16 : index
    %29 = vector.load %arg3[%c0_15, %c0_16, %c16] : memref<1x48x64xbf16, #tpu.memory_space<vmem>>, vector<1x48x16xbf16>
    %30 = vector.shape_cast %29 : vector<1x48x16xbf16> to vector<48x16xbf16>
    %c0_17 = arith.constant 0 : index
    %c0_18 = arith.constant 0 : index
    %c16_19 = arith.constant 16 : index
    %31 = vector.load %arg4[%c0_17, %c0_18, %c16_19] : memref<1x48x64xbf16, #tpu.memory_space<vmem>>, vector<1x48x16xbf16>
    %32 = vector.shape_cast %31 : vector<1x48x16xbf16> to vector<48x16xbf16>
    %cst_20 = arith.constant dense<0.000000e+00> : vector<48x48xf32>
    %33 = tpu.matmul %30, %32, %cst_20 {dimension_numbers = #tpu.dot_dimension_numbers<[1], [1], [0], [0], [0, 0, 1, 0], [], []>} : vector<48x16xbf16>, vector<48x16xbf16>, vector<48x48xf32> -> vector<48x48xf32>
    %34 = vector.broadcast %5 : vector<1x48xf32> to vector<48x48xf32>
    %35 = arith.addf %33, %34 : vector<48x48xf32>
    %cst_21 = arith.constant dense<0xFF800000> : vector<48xf32>
    %36 = vector.multi_reduction <maximumf>, %35, %cst_21 [1] : vector<48x48xf32> to vector<48xf32>
    %37 = vector.shape_cast %36 : vector<48xf32> to vector<48x1xf32>
    %38 = vector.broadcast %37 : vector<48x1xf32> to vector<48x48xf32>
    %39 = arith.subf %35, %38 : vector<48x48xf32>
    %40 = math.exp %39 : vector<48x48xf32>
    %cst_22 = arith.constant dense<0.000000e+00> : vector<48xf32>
    %41 = vector.multi_reduction <add>, %40, %cst_22 [1] : vector<48x48xf32> to vector<48xf32>
    %42 = vector.shape_cast %41 : vector<48xf32> to vector<48x1xf32>
    %43 = tpu.reciprocal %42 {approx = true} : vector<48x1xf32> -> vector<48x1xf32>
    %44 = vector.broadcast %43 : vector<48x1xf32> to vector<48x48xf32>
    %45 = arith.mulf %40, %44 : vector<48x48xf32>
    %46 = arith.truncf %45 : vector<48x48xf32> to vector<48x48xbf16>
    %c0_23 = arith.constant 0 : index
    %c0_24 = arith.constant 0 : index
    %c16_25 = arith.constant 16 : index
    %47 = vector.load %arg5[%c0_23, %c0_24, %c16_25] : memref<1x48x64xbf16, #tpu.memory_space<vmem>>, vector<1x48x16xbf16>
    %48 = vector.shape_cast %47 : vector<1x48x16xbf16> to vector<48x16xbf16>
    %cst_26 = arith.constant dense<0.000000e+00> : vector<48x16xf32>
    %49 = tpu.matmul %46, %48, %cst_26 {dimension_numbers = #tpu.dot_dimension_numbers<[1], [0], [0], [1], [0, 0, 1, 1], [], []>} : vector<48x48xbf16>, vector<48x16xbf16>, vector<48x16xf32> -> vector<48x16xf32>
    %50 = arith.truncf %49 : vector<48x16xf32> to vector<48x16xbf16>
    %c0_27 = arith.constant 0 : index
    %c16_28 = arith.constant 16 : index
    %51 = vector.load %arg9[%c0_27, %c16_28] : memref<48x64xbf16, #tpu.memory_space<vmem>>, vector<48x16xbf16>
    tpu.vector_store %arg9[%c0_27, %c16_28], %50 {strides = array<i32>} : memref<48x64xbf16, #tpu.memory_space<vmem>>, vector<48x16xbf16>,
    %c0_29 = arith.constant 0 : index
    %c0_30 = arith.constant 0 : index
    %c32 = arith.constant 32 : index
    %52 = vector.load %arg3[%c0_29, %c0_30, %c32] : memref<1x48x64xbf16, #tpu.memory_space<vmem>>, vector<1x48x16xbf16>
    %53 = vector.shape_cast %52 : vector<1x48x16xbf16> to vector<48x16xbf16>
    %c0_31 = arith.constant 0 : index
    %c0_32 = arith.constant 0 : index
    %c32_33 = arith.constant 32 : index
    %54 = vector.load %arg4[%c0_31, %c0_32, %c32_33] : memref<1x48x64xbf16, #tpu.memory_space<vmem>>, vector<1x48x16xbf16>
    %55 = vector.shape_cast %54 : vector<1x48x16xbf16> to vector<48x16xbf16>
    %cst_34 = arith.constant dense<0.000000e+00> : vector<48x48xf32>
    %56 = tpu.matmul %53, %55, %cst_34 {dimension_numbers = #tpu.dot_dimension_numbers<[1], [1], [0], [0], [0, 0, 1, 0], [], []>} : vector<48x16xbf16>, vector<48x16xbf16>, vector<48x48xf32> -> vector<48x48xf32>
    %57 = vector.broadcast %5 : vector<1x48xf32> to vector<48x48xf32>
    %58 = arith.addf %56, %57 : vector<48x48xf32>
    %cst_35 = arith.constant dense<0xFF800000> : vector<48xf32>
    %59 = vector.multi_reduction <maximumf>, %58, %cst_35 [1] : vector<48x48xf32> to vector<48xf32>
    %60 = vector.shape_cast %59 : vector<48xf32> to vector<48x1xf32>
    %61 = vector.broadcast %60 : vector<48x1xf32> to vector<48x48xf32>
    %62 = arith.subf %58, %61 : vector<48x48xf32>
    %63 = math.exp %62 : vector<48x48xf32>
    %cst_36 = arith.constant dense<0.000000e+00> : vector<48xf32>
    %64 = vector.multi_reduction <add>, %63, %cst_36 [1] : vector<48x48xf32> to vector<48xf32>
    %65 = vector.shape_cast %64 : vector<48xf32> to vector<48x1xf32>
    %66 = tpu.reciprocal %65 {approx = true} : vector<48x1xf32> -> vector<48x1xf32>
    %67 = vector.broadcast %66 : vector<48x1xf32> to vector<48x48xf32>
    %68 = arith.mulf %63, %67 : vector<48x48xf32>
    %69 = arith.truncf %68 : vector<48x48xf32> to vector<48x48xbf16>
    %c0_37 = arith.constant 0 : index
    %c0_38 = arith.constant 0 : index
    %c32_39 = arith.constant 32 : index
    %70 = vector.load %arg5[%c0_37, %c0_38, %c32_39] : memref<1x48x64xbf16, #tpu.memory_space<vmem>>, vector<1x48x16xbf16>
    %71 = vector.shape_cast %70 : vector<1x48x16xbf16> to vector<48x16xbf16>
    %cst_40 = arith.constant dense<0.000000e+00> : vector<48x16xf32>
    %72 = tpu.matmul %69, %71, %cst_40 {dimension_numbers = #tpu.dot_dimension_numbers<[1], [0], [0], [1], [0, 0, 1, 1], [], []>} : vector<48x48xbf16>, vector<48x16xbf16>, vector<48x16xf32> -> vector<48x16xf32>
    %73 = arith.truncf %72 : vector<48x16xf32> to vector<48x16xbf16>
    %c0_41 = arith.constant 0 : index
    %c32_42 = arith.constant 32 : index
    %74 = vector.load %arg9[%c0_41, %c32_42] : memref<48x64xbf16, #tpu.memory_space<vmem>>, vector<48x16xbf16>
    tpu.vector_store %arg9[%c0_41, %c32_42], %73 {strides = array<i32>} : memref<48x64xbf16, #tpu.memory_space<vmem>>, vector<48x16xbf16>,
    %c0_43 = arith.constant 0 : index
    %c0_44 = arith.constant 0 : index
    %c48 = arith.constant 48 : index
    %75 = vector.load %arg3[%c0_43, %c0_44, %c48] : memref<1x48x64xbf16, #tpu.memory_space<vmem>>, vector<1x48x16xbf16>
    %76 = vector.shape_cast %75 : vector<1x48x16xbf16> to vector<48x16xbf16>
    %c0_45 = arith.constant 0 : index
    %c0_46 = arith.constant 0 : index
    %c48_47 = arith.constant 48 : index
    %77 = vector.load %arg4[%c0_45, %c0_46, %c48_47] : memref<1x48x64xbf16, #tpu.memory_space<vmem>>, vector<1x48x16xbf16>
    %78 = vector.shape_cast %77 : vector<1x48x16xbf16> to vector<48x16xbf16>
    %cst_48 = arith.constant dense<0.000000e+00> : vector<48x48xf32>
    %79 = tpu.matmul %76, %78, %cst_48 {dimension_numbers = #tpu.dot_dimension_numbers<[1], [1], [0], [0], [0, 0, 1, 0], [], []>} : vector<48x16xbf16>, vector<48x16xbf16>, vector<48x48xf32> -> vector<48x48xf32>
    %80 = vector.broadcast %5 : vector<1x48xf32> to vector<48x48xf32>
    %81 = arith.addf %79, %80 : vector<48x48xf32>
    %cst_49 = arith.constant dense<0xFF800000> : vector<48xf32>
    %82 = vector.multi_reduction <maximumf>, %81, %cst_49 [1] : vector<48x48xf32> to vector<48xf32>
    %83 = vector.shape_cast %82 : vector<48xf32> to vector<48x1xf32>
    %84 = vector.broadcast %83 : vector<48x1xf32> to vector<48x48xf32>
    %85 = arith.subf %81, %84 : vector<48x48xf32>
    %86 = math.exp %85 : vector<48x48xf32>
    %cst_50 = arith.constant dense<0.000000e+00> : vector<48xf32>
    %87 = vector.multi_reduction <add>, %86, %cst_50 [1] : vector<48x48xf32> to vector<48xf32>
    %88 = vector.shape_cast %87 : vector<48xf32> to vector<48x1xf32>
    %89 = tpu.reciprocal %88 {approx = true} : vector<48x1xf32> -> vector<48x1xf32>
    %90 = vector.broadcast %89 : vector<48x1xf32> to vector<48x48xf32>
    %91 = arith.mulf %86, %90 : vector<48x48xf32>
    %92 = arith.truncf %91 : vector<48x48xf32> to vector<48x48xbf16>
    %c0_51 = arith.constant 0 : index
    %c0_52 = arith.constant 0 : index
    %c48_53 = arith.constant 48 : index
    %93 = vector.load %arg5[%c0_51, %c0_52, %c48_53] : memref<1x48x64xbf16, #tpu.memory_space<vmem>>, vector<1x48x16xbf16>
    %94 = vector.shape_cast %93 : vector<1x48x16xbf16> to vector<48x16xbf16>
    %cst_54 = arith.constant dense<0.000000e+00> : vector<48x16xf32>
    %95 = tpu.matmul %92, %94, %cst_54 {dimension_numbers = #tpu.dot_dimension_numbers<[1], [0], [0], [1], [0, 0, 1, 1], [], []>} : vector<48x48xbf16>, vector<48x16xbf16>, vector<48x16xf32> -> vector<48x16xf32>
    %96 = arith.truncf %95 : vector<48x16xf32> to vector<48x16xbf16>
    %c0_55 = arith.constant 0 : index
    %c48_56 = arith.constant 48 : index
    %97 = vector.load %arg9[%c0_55, %c48_56] : memref<48x64xbf16, #tpu.memory_space<vmem>>, vector<48x16xbf16>
    tpu.vector_store %arg9[%c0_55, %c48_56], %96 {strides = array<i32>} : memref<48x64xbf16, #tpu.memory_space<vmem>>, vector<48x16xbf16>,
    %c0_57 = arith.constant 0 : index
    %c0_58 = arith.constant 0 : index
    %c0_59 = arith.constant 0 : index
    %98 = vector.load %arg2[%c0_57, %c0_58, %c0_59] : memref<1x48x64xbf16, #tpu.memory_space<vmem>>, vector<1x48x64xbf16>
    %99 = vector.shape_cast %98 : vector<1x48x64xbf16> to vector<48x64xbf16>
    %100 = arith.extf %99 : vector<48x64xbf16> to vector<48x64xf32>
    %c0_60 = arith.constant 0 : index
    %c0_61 = arith.constant 0 : index
    %101 = vector.load %arg7[%c0_60, %c0_61] : memref<1x64xf32, #tpu.memory_space<vmem>>, vector<1x64xf32>
    %102 = vector.broadcast %101 : vector<1x64xf32> to vector<48x64xf32>
    %103 = arith.addf %100, %102 : vector<48x64xf32>
    %c0_62 = arith.constant 0 : index
    %c0_63 = arith.constant 0 : index
    %104 = vector.load %arg9[%c0_62, %c0_63] : memref<48x64xbf16, #tpu.memory_space<vmem>>, vector<48x64xbf16>
    %c0_64 = arith.constant 0 : index
    %c0_65 = arith.constant 0 : index
    %105 = vector.load %arg6[%c0_64, %c0_65] : memref<64x64xbf16, #tpu.memory_space<vmem>>, vector<64x64xbf16>
    %cst_66 = arith.constant dense<0.000000e+00> : vector<48x64xf32>
    %106 = tpu.matmul %104, %105, %cst_66 {dimension_numbers = #tpu.dot_dimension_numbers<[1], [0], [0], [1], [0, 0, 1, 1], [], []>} : vector<48x64xbf16>, vector<64x64xbf16>, vector<48x64xf32> -> vector<48x64xf32>
    %107 = arith.addf %103, %106 : vector<48x64xf32>
    %108 = arith.truncf %107 : vector<48x64xf32> to vector<48x64xbf16>
    %c0_67 = arith.constant 0 : index
    %c0_68 = arith.constant 0 : index
    %c0_69 = arith.constant 0 : index
    %109 = vector.load %arg8[%c0_67, %c0_68, %c0_69] : memref<1x48x64xbf16, #tpu.memory_space<vmem>>, vector<1x48x64xbf16>
    %110 = vector.shape_cast %109 : vector<1x48x64xbf16> to vector<48x64xbf16>
    %111 = vector.shape_cast %108 : vector<48x64xbf16> to vector<1x48x64xbf16>
    tpu.vector_store %arg8[%c0_67, %c0_68, %c0_69], %111 {strides = array<i32>} : memref<1x48x64xbf16, #tpu.memory_space<vmem>>, vector<1x48x64xbf16>,
    return
  }
  func.func @transform_0(%arg0: i32, %arg1: i32) -> (i32, i32, i32) {
    %c0_i32 = arith.constant 0 : i32
    %c0_i32_0 = arith.constant 0 : i32
    return %arg0, %arg1, %c0_i32 : i32, i32, i32
  }
  func.func @transform_1(%arg0: i32, %arg1: i32) -> (i32, i32, i32) {
    %c0_i32 = arith.constant 0 : i32
    %c0_i32_0 = arith.constant 0 : i32
    return %arg0, %arg1, %c0_i32 : i32, i32, i32
  }
  func.func @transform_2(%arg0: i32, %arg1: i32) -> (i32, i32, i32) {
    %c0_i32 = arith.constant 0 : i32
    %c0_i32_0 = arith.constant 0 : i32
    %c0_i32_1 = arith.constant 0 : i32
    return %arg0, %c0_i32, %c0_i32_0 : i32, i32, i32
  }
  func.func @transform_3(%arg0: i32, %arg1: i32) -> (i32, i32, i32) {
    %c0_i32 = arith.constant 0 : i32
    %c0_i32_0 = arith.constant 0 : i32
    %c0_i32_1 = arith.constant 0 : i32
    return %arg0, %c0_i32, %c0_i32_0 : i32, i32, i32
  }
  func.func @transform_4(%arg0: i32, %arg1: i32) -> (i32, i32) {
    %c0_i32 = arith.constant 0 : i32
    %c0_i32_0 = arith.constant 0 : i32
    %c0_i32_1 = arith.constant 0 : i32
    return %c0_i32, %c0_i32_0 : i32, i32
  }
  func.func @transform_5(%arg0: i32, %arg1: i32) -> (i32, i32) {
    %c0_i32 = arith.constant 0 : i32
    %c0_i32_0 = arith.constant 0 : i32
    %c0_i32_1 = arith.constant 0 : i32
    return %c0_i32, %c0_i32_0 : i32, i32
  }
  func.func @transform_6(%arg0: i32, %arg1: i32) -> (i32, i32, i32) {
    %c0_i32 = arith.constant 0 : i32
    %c0_i32_0 = arith.constant 0 : i32
    return %arg0, %arg1, %c0_i32 : i32, i32, i32
  }
}

module attributes {stable_mosaic.version = 11 : i64} {
  func.func @_mlp_kernel(%arg0: i32, %arg1: i32, %arg2: i32, %arg3: memref<1x48x64xbf16, #tpu.memory_space<vmem>>, %arg4: memref<1x64xf32, #tpu.memory_space<vmem>>, %arg5: memref<1x64xf32, #tpu.memory_space<vmem>>, %arg6: memref<64x256xbf16, #tpu.memory_space<vmem>>, %arg7: memref<1x256xf32, #tpu.memory_space<vmem>>, %arg8: memref<256x64xbf16, #tpu.memory_space<vmem>>, %arg9: memref<1x64xf32, #tpu.memory_space<vmem>>, %arg10: memref<1x48x64xbf16, #tpu.memory_space<vmem>>, %arg11: memref<48x64xbf16, #tpu.memory_space<vmem>>, %arg12: memref<48x64xf32, #tpu.memory_space<vmem>>) attributes {dimension_semantics = [#tpu.dimension_semantics<parallel>, #tpu.dimension_semantics<parallel>, #tpu.dimension_semantics<arbitrary>], iteration_bounds = array<i64: 2, 1, 1>, scalar_prefetch = 0 : i64, scratch_operands = 2 : i64, tpu.core_type = #tpu.core_type<tc>, window_params = [{transform_indices = @transform_0, window_bounds = array<i64: 1, 48, 64>}, {pipeline_mode = #tpu.pipeline_mode<synchronous>, transform_indices = @transform_1, window_bounds = array<i64: 1, 64>}, {pipeline_mode = #tpu.pipeline_mode<synchronous>, transform_indices = @transform_2, window_bounds = array<i64: 1, 64>}, {transform_indices = @transform_3, window_bounds = array<i64: 64, 256>}, {transform_indices = @transform_4, window_bounds = array<i64: 1, 256>}, {transform_indices = @transform_5, window_bounds = array<i64: 256, 64>}, {pipeline_mode = #tpu.pipeline_mode<synchronous>, transform_indices = @transform_6, window_bounds = array<i64: 1, 64>}, {transform_indices = @transform_7, window_bounds = array<i64: 1, 48, 64>}]} {
    %c0_i32 = arith.constant 0 : i32
    %0 = arith.cmpi eq, %arg2, %c0_i32 : i32
    %1 = arith.extui %0 : i1 to i32
    %c0_i32_0 = arith.constant 0 : i32
    %2 = arith.cmpi ne, %1, %c0_i32_0 : i32
    scf.if %2 {
      %c0_19 = arith.constant 0 : index
      %c0_20 = arith.constant 0 : index
      %c0_21 = arith.constant 0 : index
      %31 = vector.load %arg3[%c0_19, %c0_20, %c0_21] : memref<1x48x64xbf16, #tpu.memory_space<vmem>>, vector<1x48x64xbf16>
      %32 = vector.shape_cast %31 : vector<1x48x64xbf16> to vector<48x64xbf16>
      %33 = arith.extf %32 : vector<48x64xbf16> to vector<48x64xf32>
      %c0_22 = arith.constant 0 : index
      %c0_23 = arith.constant 0 : index
      %34 = vector.load %arg4[%c0_22, %c0_23] : memref<1x64xf32, #tpu.memory_space<vmem>>, vector<1x64xf32>
      %c0_24 = arith.constant 0 : index
      %c0_25 = arith.constant 0 : index
      %35 = vector.load %arg5[%c0_24, %c0_25] : memref<1x64xf32, #tpu.memory_space<vmem>>, vector<1x64xf32>
      %cst_26 = arith.constant dense<0.000000e+00> : vector<48xf32>
      %36 = vector.multi_reduction <add>, %33, %cst_26 [1] : vector<48x64xf32> to vector<48xf32>
      %37 = vector.shape_cast %36 : vector<48xf32> to vector<48x1xf32>
      %cst_27 = arith.constant 6.400000e+01 : f32
      %38 = vector.broadcast %cst_27 : f32 to vector<48x1xf32>
      %39 = arith.divf %37, %38 : vector<48x1xf32>
      %40 = vector.broadcast %39 : vector<48x1xf32> to vector<48x64xf32>
      %41 = arith.subf %33, %40 : vector<48x64xf32>
      %42 = arith.mulf %41, %41 : vector<48x64xf32>
      %cst_28 = arith.constant dense<0.000000e+00> : vector<48xf32>
      %43 = vector.multi_reduction <add>, %42, %cst_28 [1] : vector<48x64xf32> to vector<48xf32>
      %44 = vector.shape_cast %43 : vector<48xf32> to vector<48x1xf32>
      %cst_29 = arith.constant 6.400000e+01 : f32
      %45 = vector.broadcast %cst_29 : f32 to vector<48x1xf32>
      %46 = arith.divf %44, %45 : vector<48x1xf32>
      %cst_30 = arith.constant 9.99999974E-6 : f32
      %47 = vector.broadcast %cst_30 : f32 to vector<48x1xf32>
      %48 = arith.addf %46, %47 : vector<48x1xf32>
      %49 = math.rsqrt %48 : vector<48x1xf32>
      %50 = vector.broadcast %49 : vector<48x1xf32> to vector<48x64xf32>
      %51 = arith.mulf %41, %50 : vector<48x64xf32>
      %52 = vector.broadcast %34 : vector<1x64xf32> to vector<48x64xf32>
      %53 = arith.mulf %51, %52 : vector<48x64xf32>
      %54 = vector.broadcast %35 : vector<1x64xf32> to vector<48x64xf32>
      %55 = arith.addf %53, %54 : vector<48x64xf32>
      %56 = arith.truncf %55 : vector<48x64xf32> to vector<48x64xbf16>
      %c0_31 = arith.constant 0 : index
      %c0_32 = arith.constant 0 : index
      %57 = vector.load %arg11[%c0_31, %c0_32] : memref<48x64xbf16, #tpu.memory_space<vmem>>, vector<48x64xbf16>
      tpu.vector_store %arg11[%c0_31, %c0_32], %56 {strides = array<i32>} : memref<48x64xbf16, #tpu.memory_space<vmem>>, vector<48x64xbf16>,
      %c0_33 = arith.constant 0 : index
      %c0_34 = arith.constant 0 : index
      %58 = vector.load %arg9[%c0_33, %c0_34] : memref<1x64xf32, #tpu.memory_space<vmem>>, vector<1x64xf32>
      %59 = vector.broadcast %58 : vector<1x64xf32> to vector<48x64xf32>
      %60 = arith.addf %33, %59 : vector<48x64xf32>
      %c0_35 = arith.constant 0 : index
      %c0_36 = arith.constant 0 : index
      %61 = vector.load %arg12[%c0_35, %c0_36] : memref<48x64xf32, #tpu.memory_space<vmem>>, vector<48x64xf32>
      tpu.vector_store %arg12[%c0_35, %c0_36], %60 {strides = array<i32>} : memref<48x64xf32, #tpu.memory_space<vmem>>, vector<48x64xf32>,
    } else {
    }
    %c0 = arith.constant 0 : index
    %c0_1 = arith.constant 0 : index
    %3 = vector.load %arg11[%c0, %c0_1] : memref<48x64xbf16, #tpu.memory_space<vmem>>, vector<48x64xbf16>
    %c0_2 = arith.constant 0 : index
    %c0_3 = arith.constant 0 : index
    %4 = vector.load %arg6[%c0_2, %c0_3] : memref<64x256xbf16, #tpu.memory_space<vmem>>, vector<64x256xbf16>
    %cst = arith.constant dense<0.000000e+00> : vector<48x256xf32>
    %5 = tpu.matmul %3, %4, %cst {dimension_numbers = #tpu.dot_dimension_numbers<[1], [0], [0], [1], [0, 0, 1, 1], [], []>} : vector<48x64xbf16>, vector<64x256xbf16>, vector<48x256xf32> -> vector<48x256xf32>
    %c0_4 = arith.constant 0 : index
    %c0_5 = arith.constant 0 : index
    %6 = vector.load %arg7[%c0_4, %c0_5] : memref<1x256xf32, #tpu.memory_space<vmem>>, vector<1x256xf32>
    %7 = vector.broadcast %6 : vector<1x256xf32> to vector<48x256xf32>
    %8 = arith.addf %5, %7 : vector<48x256xf32>
    %cst_6 = arith.constant 5.000000e-01 : f32
    %9 = vector.broadcast %cst_6 : f32 to vector<48x256xf32>
    %10 = arith.mulf %9, %8 : vector<48x256xf32>
    %cst_7 = arith.constant 4.471500e-02 : f32
    %11 = vector.broadcast %cst_7 : f32 to vector<48x256xf32>
    %12 = arith.mulf %11, %8 : vector<48x256xf32>
    %13 = arith.mulf %12, %8 : vector<48x256xf32>
    %14 = arith.mulf %13, %8 : vector<48x256xf32>
    %15 = arith.addf %8, %14 : vector<48x256xf32>
    %cst_8 = arith.constant 0.797884583 : f32
    %16 = vector.broadcast %cst_8 : f32 to vector<48x256xf32>
    %17 = arith.mulf %16, %15 : vector<48x256xf32>
    %18 = math.tanh %17 : vector<48x256xf32>
    %cst_9 = arith.constant 1.000000e+00 : f32
    %19 = vector.broadcast %cst_9 : f32 to vector<48x256xf32>
    %20 = arith.addf %19, %18 : vector<48x256xf32>
    %21 = arith.mulf %10, %20 : vector<48x256xf32>
    %c0_10 = arith.constant 0 : index
    %c0_11 = arith.constant 0 : index
    %22 = vector.load %arg12[%c0_10, %c0_11] : memref<48x64xf32, #tpu.memory_space<vmem>>, vector<48x64xf32>
    %23 = arith.truncf %21 : vector<48x256xf32> to vector<48x256xbf16>
    %c0_12 = arith.constant 0 : index
    %c0_13 = arith.constant 0 : index
    %24 = vector.load %arg8[%c0_12, %c0_13] : memref<256x64xbf16, #tpu.memory_space<vmem>>, vector<256x64xbf16>
    %cst_14 = arith.constant dense<0.000000e+00> : vector<48x64xf32>
    %25 = tpu.matmul %23, %24, %cst_14 {dimension_numbers = #tpu.dot_dimension_numbers<[1], [0], [0], [1], [0, 0, 1, 1], [], []>} : vector<48x256xbf16>, vector<256x64xbf16>, vector<48x64xf32> -> vector<48x64xf32>
    %26 = arith.addf %22, %25 : vector<48x64xf32>
    %c0_15 = arith.constant 0 : index
    %c0_16 = arith.constant 0 : index
    %27 = vector.load %arg12[%c0_15, %c0_16] : memref<48x64xf32, #tpu.memory_space<vmem>>, vector<48x64xf32>
    tpu.vector_store %arg12[%c0_15, %c0_16], %26 {strides = array<i32>} : memref<48x64xf32, #tpu.memory_space<vmem>>, vector<48x64xf32>,
    %c0_i32_17 = arith.constant 0 : i32
    %28 = arith.cmpi eq, %arg2, %c0_i32_17 : i32
    %29 = arith.extui %28 : i1 to i32
    %c0_i32_18 = arith.constant 0 : i32
    %30 = arith.cmpi ne, %29, %c0_i32_18 : i32
    scf.if %30 {
      %c0_19 = arith.constant 0 : index
      %c0_20 = arith.constant 0 : index
      %31 = vector.load %arg12[%c0_19, %c0_20] : memref<48x64xf32, #tpu.memory_space<vmem>>, vector<48x64xf32>
      %32 = arith.truncf %31 : vector<48x64xf32> to vector<48x64xbf16>
      %c0_21 = arith.constant 0 : index
      %c0_22 = arith.constant 0 : index
      %c0_23 = arith.constant 0 : index
      %33 = vector.load %arg10[%c0_21, %c0_22, %c0_23] : memref<1x48x64xbf16, #tpu.memory_space<vmem>>, vector<1x48x64xbf16>
      %34 = vector.shape_cast %33 : vector<1x48x64xbf16> to vector<48x64xbf16>
      %35 = vector.shape_cast %32 : vector<48x64xbf16> to vector<1x48x64xbf16>
      tpu.vector_store %arg10[%c0_21, %c0_22, %c0_23], %35 {strides = array<i32>} : memref<1x48x64xbf16, #tpu.memory_space<vmem>>, vector<1x48x64xbf16>,
    } else {
    }
    return
  }
  func.func @transform_0(%arg0: i32, %arg1: i32, %arg2: i32) -> (i32, i32, i32) {
    %c0_i32 = arith.constant 0 : i32
    %c0_i32_0 = arith.constant 0 : i32
    return %arg0, %arg1, %c0_i32 : i32, i32, i32
  }
  func.func @transform_1(%arg0: i32, %arg1: i32, %arg2: i32) -> (i32, i32) {
    %c0_i32 = arith.constant 0 : i32
    %c0_i32_0 = arith.constant 0 : i32
    %c0_i32_1 = arith.constant 0 : i32
    return %c0_i32, %c0_i32_0 : i32, i32
  }
  func.func @transform_2(%arg0: i32, %arg1: i32, %arg2: i32) -> (i32, i32) {
    %c0_i32 = arith.constant 0 : i32
    %c0_i32_0 = arith.constant 0 : i32
    %c0_i32_1 = arith.constant 0 : i32
    return %c0_i32, %c0_i32_0 : i32, i32
  }
  func.func @transform_3(%arg0: i32, %arg1: i32, %arg2: i32) -> (i32, i32) {
    %c0_i32 = arith.constant 0 : i32
    %c0_i32_0 = arith.constant 0 : i32
    return %c0_i32, %arg2 : i32, i32
  }
  func.func @transform_4(%arg0: i32, %arg1: i32, %arg2: i32) -> (i32, i32) {
    %c0_i32 = arith.constant 0 : i32
    %c0_i32_0 = arith.constant 0 : i32
    return %c0_i32, %arg2 : i32, i32
  }
  func.func @transform_5(%arg0: i32, %arg1: i32, %arg2: i32) -> (i32, i32) {
    %c0_i32 = arith.constant 0 : i32
    %c0_i32_0 = arith.constant 0 : i32
    return %arg2, %c0_i32 : i32, i32
  }
  func.func @transform_6(%arg0: i32, %arg1: i32, %arg2: i32) -> (i32, i32) {
    %c0_i32 = arith.constant 0 : i32
    %c0_i32_0 = arith.constant 0 : i32
    %c0_i32_1 = arith.constant 0 : i32
    return %c0_i32, %c0_i32_0 : i32, i32
  }
  func.func @transform_7(%arg0: i32, %arg1: i32, %arg2: i32) -> (i32, i32, i32) {
    %c0_i32 = arith.constant 0 : i32
    %c0_i32_0 = arith.constant 0 : i32
    return %arg0, %arg1, %c0_i32 : i32, i32, i32
  }
}

module attributes {stable_mosaic.version = 11 : i64} {
  func.func @_layernorm_kernel(%arg0: i32, %arg1: i32, %arg2: memref<1x48x64xbf16, #tpu.memory_space<vmem>>, %arg3: memref<1x64xf32, #tpu.memory_space<vmem>>, %arg4: memref<1x64xf32, #tpu.memory_space<vmem>>, %arg5: memref<1x48x64xf32, #tpu.memory_space<vmem>>) attributes {dimension_semantics = [#tpu.dimension_semantics<parallel>, #tpu.dimension_semantics<parallel>], iteration_bounds = array<i64: 2, 1>, scalar_prefetch = 0 : i64, scratch_operands = 0 : i64, tpu.core_type = #tpu.core_type<tc>, window_params = [{transform_indices = @transform_0, window_bounds = array<i64: 1, 48, 64>}, {pipeline_mode = #tpu.pipeline_mode<synchronous>, transform_indices = @transform_1, window_bounds = array<i64: 1, 64>}, {pipeline_mode = #tpu.pipeline_mode<synchronous>, transform_indices = @transform_2, window_bounds = array<i64: 1, 64>}, {transform_indices = @transform_3, window_bounds = array<i64: 1, 48, 64>}]} {
    %c0 = arith.constant 0 : index
    %c0_0 = arith.constant 0 : index
    %c0_1 = arith.constant 0 : index
    %0 = vector.load %arg2[%c0, %c0_0, %c0_1] : memref<1x48x64xbf16, #tpu.memory_space<vmem>>, vector<1x48x64xbf16>
    %1 = vector.shape_cast %0 : vector<1x48x64xbf16> to vector<48x64xbf16>
    %2 = arith.extf %1 : vector<48x64xbf16> to vector<48x64xf32>
    %c0_2 = arith.constant 0 : index
    %c0_3 = arith.constant 0 : index
    %3 = vector.load %arg3[%c0_2, %c0_3] : memref<1x64xf32, #tpu.memory_space<vmem>>, vector<1x64xf32>
    %c0_4 = arith.constant 0 : index
    %c0_5 = arith.constant 0 : index
    %4 = vector.load %arg4[%c0_4, %c0_5] : memref<1x64xf32, #tpu.memory_space<vmem>>, vector<1x64xf32>
    %cst = arith.constant dense<0.000000e+00> : vector<48xf32>
    %5 = vector.multi_reduction <add>, %2, %cst [1] : vector<48x64xf32> to vector<48xf32>
    %6 = vector.shape_cast %5 : vector<48xf32> to vector<48x1xf32>
    %cst_6 = arith.constant 6.400000e+01 : f32
    %7 = vector.broadcast %cst_6 : f32 to vector<48x1xf32>
    %8 = arith.divf %6, %7 : vector<48x1xf32>
    %9 = vector.broadcast %8 : vector<48x1xf32> to vector<48x64xf32>
    %10 = arith.subf %2, %9 : vector<48x64xf32>
    %11 = arith.mulf %10, %10 : vector<48x64xf32>
    %cst_7 = arith.constant dense<0.000000e+00> : vector<48xf32>
    %12 = vector.multi_reduction <add>, %11, %cst_7 [1] : vector<48x64xf32> to vector<48xf32>
    %13 = vector.shape_cast %12 : vector<48xf32> to vector<48x1xf32>
    %cst_8 = arith.constant 6.400000e+01 : f32
    %14 = vector.broadcast %cst_8 : f32 to vector<48x1xf32>
    %15 = arith.divf %13, %14 : vector<48x1xf32>
    %cst_9 = arith.constant 9.99999974E-6 : f32
    %16 = vector.broadcast %cst_9 : f32 to vector<48x1xf32>
    %17 = arith.addf %15, %16 : vector<48x1xf32>
    %18 = math.rsqrt %17 : vector<48x1xf32>
    %19 = vector.broadcast %18 : vector<48x1xf32> to vector<48x64xf32>
    %20 = arith.mulf %10, %19 : vector<48x64xf32>
    %21 = vector.broadcast %3 : vector<1x64xf32> to vector<48x64xf32>
    %22 = arith.mulf %20, %21 : vector<48x64xf32>
    %23 = vector.broadcast %4 : vector<1x64xf32> to vector<48x64xf32>
    %24 = arith.addf %22, %23 : vector<48x64xf32>
    %c0_10 = arith.constant 0 : index
    %c0_11 = arith.constant 0 : index
    %c0_12 = arith.constant 0 : index
    %25 = vector.load %arg5[%c0_10, %c0_11, %c0_12] : memref<1x48x64xf32, #tpu.memory_space<vmem>>, vector<1x48x64xf32>
    %26 = vector.shape_cast %25 : vector<1x48x64xf32> to vector<48x64xf32>
    %27 = vector.shape_cast %24 : vector<48x64xf32> to vector<1x48x64xf32>
    tpu.vector_store %arg5[%c0_10, %c0_11, %c0_12], %27 {strides = array<i32>} : memref<1x48x64xf32, #tpu.memory_space<vmem>>, vector<1x48x64xf32>,
    return
  }
  func.func @transform_0(%arg0: i32, %arg1: i32) -> (i32, i32, i32) {
    %c0_i32 = arith.constant 0 : i32
    %c0_i32_0 = arith.constant 0 : i32
    return %arg0, %arg1, %c0_i32 : i32, i32, i32
  }
  func.func @transform_1(%arg0: i32, %arg1: i32) -> (i32, i32) {
    %c0_i32 = arith.constant 0 : i32
    %c0_i32_0 = arith.constant 0 : i32
    %c0_i32_1 = arith.constant 0 : i32
    return %c0_i32, %c0_i32_0 : i32, i32
  }
  func.func @transform_2(%arg0: i32, %arg1: i32) -> (i32, i32) {
    %c0_i32 = arith.constant 0 : i32
    %c0_i32_0 = arith.constant 0 : i32
    %c0_i32_1 = arith.constant 0 : i32
    return %c0_i32, %c0_i32_0 : i32, i32
  }
  func.func @transform_3(%arg0: i32, %arg1: i32) -> (i32, i32, i32) {
    %c0_i32 = arith.constant 0 : i32
    %c0_i32_0 = arith.constant 0 : i32
    return %arg0, %arg1, %c0_i32 : i32, i32, i32
  }
}

</mosaic_0001>

<bundles_post_ra>
// kernel: audio_encoder_forward.9
= control target key start
LH: loop header
LB: loop body
LE: loop exit
PB: predicated region body
PF: predicated region fallthrough
CT: control target
= control target key end

     0   :  { %s1662_s18 = smov 0   ;;  %s1664_s19 = smov 0   ;;  %s1945_s0 = inlined_call_operand.vmem [shape: bf16[2,96,128], index: 0, kind: input, shape index: {}]   ;;  %s1946_s1 = inlined_call_operand.vmem [shape: bf16[2,96,128], index: 1, kind: input, shape index: {}]   ;;  %s1947_s2 = inlined_call_operand.vmem [shape: bf16[2,96,128], index: 2, kind: input, shape index: {}]   ;;  %s1948_s3 = inlined_call_operand.vmem [shape: bf16[3,128,64], index: 3, kind: input, shape index: {}]   ;;  %s1949_s4 = inlined_call_operand.vmem [shape: f32[1,64], index: 4, kind: input, shape index: {}]   ;;  %s1950_s5 = inlined_call_operand.vmem [shape: bf16[2,96,64], index: 5, kind: output, shape index: {}]  }
   0x1   :  { %s1666_s20 = smov 0  }
   0x2 LB: > { %s27_s21 = sadd.s32 1, %s1626_s19  ;;  %p1245_p0 = scmp.ge.s32.totalorder %s1630_s20, 1  ;;  %s1630_s20 = sphi %s1666_s20, %s15_s20   ;;  %s1626_s19 = sphi %s1664_s19, %s1952_s19   ;;  %s1622_s18 = sphi %s1662_s18, %s1951_s18  }
   0x3   : > { %p29_p1 = scmp.ge.s32.totalorder %s27_s21, 2  ;;  %p242_p2 = scmp.lt.s32.totalorder %s1630_s20, 3 }
   0x5   : > { %s1954_s21 = smov (%p29_p1, %s27_s21), 0  ;;  %p243_p3 = pnand %p1245_p0, %p242_p2 }
   0x6   : > { %v1542_v0 = vld [vmem:[%s1948_s3 + $0x40] sm:$0xff] (!%p243_p3)   ;;  %p297_p4 = scmp.lt.s32.totalorder (!%p243_p3), %s1622_s18, 1  ;;  %v1544_v2 = vld [vmem:[%s1948_s3 + $0x48] sm:$0xff] (!%p243_p3)   ;;  %v1546_v4 = vld [vmem:[%s1948_s3 + $0x50] sm:$0xff] (!%p243_p3)   ;;  %vm1105_vm0 = vcmask (!%p243_p3), 519168  }
   0x7   : > { %246 = sbr.rel (%p243_p3) target bundleno = 332 (0x14c), region = 40  ;;  %v1543_v1 = vld [vmem:[%s1948_s3] sm:$0xff] (!%p243_p3)   ;;  %1393 = vmatprep.subr.bf16.mxu1 (!%p243_p3), %v1542_v0  ;;  %v1545_v3 = vld [vmem:[%s1948_s3 + $0x8] sm:$0xff] (!%p243_p3)   ;;  %v1547_v5 = vld [vmem:[%s1948_s3 + $0x10] sm:$0xff] (!%p243_p3)  }
   0x8   : > { %1421 = vmatprep.subr.bf16.mxu0 (!%p243_p3), %v1543_v1  ;;  %1394 = vmatpush3.bf16.msra.mxu1 (!%p243_p3), %v1542_v0  ;;  %v1548_v6 = vld [vmem:[%s1948_s3 + $0x58] sm:$0xff] (!%p243_p3)   ;;  %v1550_v8 = vld [vmem:[%s1948_s3 + $0x60] sm:$0xff] (!%p243_p3)   ;;  %v1552_v10 = vld [vmem:[%s1948_s3 + $0x68] sm:$0xff] (!%p243_p3)  }
   0x9   : > { %1422 = vmatpush3.bf16.msra.mxu0 (!%p243_p3), %v1543_v1  ;;  %1395 = vmatprep.subr.bf16.mxu1 (!%p243_p3), %v1544_v2  ;;  %v1549_v7 = vld [vmem:[%s1948_s3 + $0x18] sm:$0xff] (!%p243_p3)   ;;  %v1551_v9 = vld [vmem:[%s1948_s3 + $0x20] sm:$0xff] (!%p243_p3)   ;;  %v1553_v12 = vld [vmem:[%s1948_s3 + $0x28] sm:$0xff] (!%p243_p3)  }
   0xa   : > { %1423 = vmatprep.subr.bf16.mxu0 (!%p243_p3), %v1545_v3  ;;  %v1554_v14 = vld [vmem:[%s1948_s3 + $0x70] sm:$0xff] (!%p243_p3)   ;;  %v1556_v16 = vld [vmem:[%s1948_s3 + $0x78] sm:$0xff] (!%p243_p3)   ;;  %v1561_v18 = vld [vmem:[%s1948_s3 + $0x80] sm:$0xff] (!%p243_p3)  }
   0xb   : > { %v1555_v15 = vld [vmem:[%s1948_s3 + $0x30] sm:$0xff] (!%p243_p3)   ;;  %v1557_v17 = vld [vmem:[%s1948_s3 + $0x38] sm:$0xff] (!%p243_p3)   ;;  %v1563_v21 = vld [vmem:[%s1948_s3 + $0x88] sm:$0xff] (!%p243_p3)  }
   0xc   : > { %1396 = vmatpush3.bf16.msra.mxu1 (!%p243_p3), %v1544_v2  ;;  %v1564_v24 = vld [vmem:[%s1948_s3 + $0x90] sm:$0xff] (!%p243_p3)   ;;  %v1567_v27 = vld [vmem:[%s1948_s3 + $0x98] sm:$0xff] (!%p243_p3)   ;;  %v1570_v30 = vld [vmem:[%s1948_s3 + $0xa0] sm:$0xff] (!%p243_p3)  }
   0xd   : > { %1424 = vmatpush3.bf16.msra.mxu0 (!%p243_p3), %v1545_v3  ;;  %1397 = vmatprep.subr.bf16.mxu1 (!%p243_p3), %v1546_v4  ;;  %v1573_v33 = vld [vmem:[%s1948_s3 + $0xa8] sm:$0xff] (!%p243_p3)   ;;  %v1576_v36 = vld [vmem:[%s1948_s3 + $0xb0] sm:$0xff] (!%p243_p3)   ;;  %v1577_v37 = vld [vmem:[%s1948_s3 + $0xb8] sm:$0xff] (!%p243_p3)  }
   0xe   : > { %s1956_s18 = smov (!%p297_p4, %s1622_s18), 1  ;;  %1425 = vmatprep.subr.bf16.mxu0 %v1547_v5 }
   0xf   : > { %s1704_s13 = smul.u32 48, %s1956_s18 }
  0x10   : > { %1398 = vmatpush3.bf16.msra.mxu1 %v1546_v4 }
  0x11   : > { %1426 = vmatpush3.bf16.msra.mxu0 %v1547_v5  ;;  %1399 = vmatprep.subr.bf16.mxu1 %v1548_v6  ;;  %s1716_s24 = scalar_lea.vmem %s1946_s1, %s1704_s13  ;;  %s1725_s28 = scalar_lea.vmem %s1945_s0, %s1704_s13 }
  0x12   : > { %1427 = vmatprep.subr.bf16.mxu0 %v1549_v7  ;;  %v1558_v11 = vld [vmem:[%s1716_s24] sm:$0xff]   ;;  %v1559_v19 = vld [vmem:[%s1716_s24 + $0x8] sm:$0xff]   ;;  %v1565_v22 = vld [vmem:[%s1716_s24 + $0x10] sm:$0xff]   ;;  %s1758_s25 = scalar_lea.vmem %s1947_s2, %s1704_s13  ;;  %s1902_s17 = scalar_lea.vmem %s1950_s5, %s1704_s13 }
  0x13   : > { %1409 = vmatprep.mubr.bf16.mxu1 %v1558_v11  ;;  %v1560_v13 = vld [vmem:[%s1725_s28] sm:$0xff]   ;;  %v1562_v20 = vld [vmem:[%s1725_s28 + $0x8] sm:$0xff]   ;;  %v1566_v23 = vld [vmem:[%s1725_s28 + $0x10] sm:$0xff]  }
  0x14   : > { %1400 = vmatpush3.bf16.msra.mxu1 %v1548_v6  ;;  %1437 = vmatprep.mubr.bf16.mxu0 %v1560_v13  ;;  %v1568_v25 = vld [vmem:[%s1716_s24 + $0x18] sm:$0xff]   ;;  %v1571_v28 = vld [vmem:[%s1716_s24 + $0x20] sm:$0xff]   ;;  %v1574_v31 = vld [vmem:[%s1716_s24 + $0x28] sm:$0xff]  }
  0x15   : > { %1428 = vmatpush3.bf16.msra.mxu0 %v1549_v7  ;;  %1401 = vmatprep.subr.bf16.mxu1 %v1550_v8  ;;  %v1569_v26 = vld [vmem:[%s1725_s28 + $0x18] sm:$0xff]   ;;  %v1572_v29 = vld [vmem:[%s1725_s28 + $0x20] sm:$0xff]   ;;  %v1575_v32 = vld [vmem:[%s1725_s28 + $0x28] sm:$0xff]  }
  0x16   : > { %1429 = vmatprep.subr.bf16.mxu0 %v1551_v9  ;;  %v1578_v34 = vld [vmem:[%s1758_s25] sm:$0xff]   ;;  %v1579_v35 = vld [vmem:[%s1758_s25 + $0x10] sm:$0xff]   ;;  %v1581_v38 = vld [vmem:[%s1758_s25 + $0x18] sm:$0xff]  }
  0x17   : > { %v1580_v39 = vld [vmem:[%s1758_s25 + $0x8] sm:$0xff]   ;;  %v1582_v40 = vld [vmem:[%s1758_s25 + $0x20] sm:$0xff]  }
  0x18   : > { %1402 = vmatpush3.bf16.msra.mxu1 %v1550_v8  ;;  %v1583_v41 = vld [vmem:[%s1758_s25 + $0x28] sm:$0xff]   ;;  %v1803_v6 = vld [vmem:[%s1949_s4] ss:$0 sm:$0xff] }
  0x19   : > { %1430 = vmatpush3.bf16.msra.mxu0 %v1551_v9  ;;  %1403 = vmatprep.subr.bf16.mxu1 %v1552_v10 }
  0x1a   : > { %1431 = vmatprep.subr.bf16.mxu0 %v1553_v12 }
  0x1c   : > { %1404 = vmatpush3.bf16.msra.mxu1 %v1552_v10 }
  0x1d   : > { %1432 = vmatpush3.bf16.msra.mxu0 %v1553_v12  ;;  %1405 = vmatprep.subr.bf16.mxu1 %v1554_v14 }
  0x1e   : > { %1433 = vmatprep.subr.bf16.mxu0 %v1555_v15 }
  0x20   : > { %1406 = vmatpush3.bf16.msra.mxu1 %v1554_v14 }
  0x21   : > { %1434 = vmatpush3.bf16.msra.mxu0 %v1555_v15  ;;  %1407 = vmatprep.subr.bf16.mxu1 %v1556_v16 }
  0x22   : > { %1435 = vmatprep.subr.bf16.mxu0 %v1557_v17 }
  0x24   : > { %1408 = vmatpush3.bf16.msra.mxu1 %v1556_v16 }
  0x25   : > { %1436 = vmatpush3.bf16.msra.mxu0 %v1557_v17  ;;  %1477 = vmatprep.subr.bf16.mxu1 %v1561_v18 }
  0x26   : > { %1449 = vmatprep.subr.bf16.mxu0 %v1561_v18 }
  0x27   : > { %1410 = vmatmul.mubr.bf16.vlgmr.msra.gmra.mrb[0].mxu1 %v1559_v19 }
  0x28   : > { %1438 = vmatmul.mubr.bf16.vlgmr.msra.gmra.mrb[0].mxu0 %v1562_v20  ;;  %1485 = vmatpush3.bf16.msra.mxu1 %v1561_v18 }
  0x29   : > { %1450 = vmatpush3.bf16.msra.mxu0 %v1561_v18  ;;  %1478 = vmatprep.subr.bf16.mxu1 %v1563_v21 }
  0x2a   : > { %1451 = vmatprep.subr.bf16.mxu0 %v1563_v21  ;;  %1413 = vmatprep.mubr.bf16.mxu1 %v1565_v22 }
  0x2b   : > { %1441 = vmatprep.mubr.bf16.mxu0 %v1566_v23 }
  0x2c   : > { %1486 = vmatpush3.bf16.msra.mxu1 %v1563_v21 }
  0x2d   : > { %1452 = vmatpush3.bf16.msra.mxu0 %v1563_v21  ;;  %1479 = vmatprep.subr.bf16.mxu1 %v1564_v24 }
  0x2e   : > { %1453 = vmatprep.subr.bf16.mxu0 %v1564_v24 }
  0x2f   : > { %1414 = vmatmul.mubr.bf16.gmra.mrb[4].mxu1 %v1568_v25 }
  0x30   : > { %1487 = vmatpush3.bf16.msra.mxu1 %v1564_v24  ;;  %1442 = vmatmul.mubr.bf16.gmra.mrb[4].mxu0 %v1569_v26 }
  0x31   : > { %1454 = vmatpush3.bf16.msra.mxu0 %v1564_v24  ;;  %1480 = vmatprep.subr.bf16.mxu1 %v1567_v27 }
  0x32   : > { %1455 = vmatprep.subr.bf16.mxu0 %v1567_v27  ;;  %1417 = vmatprep.mubr.bf16.mxu1 %v1571_v28 }
  0x33   : > { %1445 = vmatprep.mubr.bf16.mxu0 %v1572_v29 }
  0x34   : > { %1488 = vmatpush3.bf16.msra.mxu1 %v1567_v27 }
  0x35   : > { %1456 = vmatpush3.bf16.msra.mxu0 %v1567_v27  ;;  %1481 = vmatprep.subr.bf16.mxu1 %v1570_v30 }
  0x36   : > { %1457 = vmatprep.subr.bf16.mxu0 %v1570_v30 }
  0x37   : > { %1418 = vmatmul.mubr.bf16.gmra.mrb[8].mxu1 %v1574_v31 }
  0x38   : > { %1489 = vmatpush3.bf16.msra.mxu1 %v1570_v30  ;;  %1446 = vmatmul.mubr.bf16.gmra.mrb[8].mxu0 %v1575_v32 }
  0x39   : > { %1458 = vmatpush3.bf16.msra.mxu0 %v1570_v30  ;;  %1482 = vmatprep.subr.bf16.mxu1 %v1573_v33 }
  0x3a   : > { %1459 = vmatprep.subr.bf16.mxu0 %v1573_v33  ;;  %1465 = vmatprep.mubr.bf16.mxu0 %v1578_v34 }
  0x3b   : > { %1469 = vmatprep.mubr.bf16.mxu1 %v1579_v35 }
  0x3c   : > { %1490 = vmatpush3.bf16.msra.mxu1 %v1573_v33 }
  0x3d   : > { %1460 = vmatpush3.bf16.msra.mxu0 %v1573_v33  ;;  %1483 = vmatprep.subr.bf16.mxu1 %v1576_v36 }
  0x3e   : > { %1461 = vmatprep.subr.bf16.mxu0 %v1576_v36 }
  0x40   : > { %1491 = vmatpush3.bf16.msra.mxu1 %v1576_v36 }
  0x41   : > { %1462 = vmatpush3.bf16.msra.mxu0 %v1576_v36  ;;  %1484 = vmatprep.subr.bf16.mxu1 %v1577_v37 }
  0x42   : > { %1463 = vmatprep.subr.bf16.mxu0 %v1577_v37 }
  0x44   : > { %1492 = vmatpush3.bf16.msra.mxu1 %v1577_v37 }
  0x45   : > { %1464 = vmatpush3.bf16.msra.mxu0 %v1577_v37 }
  0x47   : > { %1470 = vmatmul.mubr.bf16.vlgmr.msra.gmra.mrb[12].mxu1 %v1581_v38 }
  0x48   : > { %1466 = vmatmul.mubr.bf16.vlgmr.msra.gmra.mrb[0].mxu0 %v1580_v39  ;;  %1473 = vmatprep.mubr.bf16.mxu1 %v1582_v40 }
  0x4f   : > { %1474 = vmatmul.mubr.bf16.gmra.mrb[16].mxu1 %v1583_v41 }
  0xfa   : > { %v1411_v42 = vpop.f32.mrb[0].mxu1 }
  0xfb   : > { %v512_v43 = vpop.f32.mrb[1].mxu1 }
  0xfc   : > { %v1412_v44 = vpop.f32.mrb[2].mxu1 }
  0xfd   : > { %v1790_v45 = vpop.f32.mrb[3].mxu1 }
 0x102   : > { %v1415_v46 = vpop.f32.mrb[4].mxu1 }
 0x103   : > { %v1443_v47 = vpop.f32.mrb[4].mxu0  ;;  %v528_v48 = vpop.f32.mrb[5].mxu1 }
 0x104   : > { %v702_v49 = vadd.f32 %v1443_v47, %v1415_v46  ;;  %v693_v50 = vpop.f32.mrb[5].mxu0  ;;  %v1416_v51 = vpop.f32.mrb[6].mxu1 }
 0x105   : > { %v694_v52 = vadd.f32 %v693_v50, %v528_v48  ;;  %v1444_v53 = vpop.f32.mrb[6].mxu0  ;;  %v531_v54 = vpop.f32.mrb[7].mxu1 }
 0x106   : > { %v705_v55 = vadd.f32 %v1444_v53, %v1416_v51  ;;  %v696_v56 = vpop.f32.mrb[7].mxu0 }
 0x107   : > { %v697_v57 = vadd.f32 %v696_v56, %v531_v54 }
 0x10a   : > { %v1419_v58 = vpop.f32.mrb[8].mxu1 }
 0x10b   : > { %v1447_v59 = vpop.f32.mrb[8].mxu0  ;;  %v544_v60 = vpop.f32.mrb[9].mxu1 }
 0x10c   : > { %v1792_v61 = vadd.f32 %v1447_v59, %v1419_v58  ;;  %v709_v62 = vpop.f32.mrb[9].mxu0  ;;  %v1420_v63 = vpop.f32.mrb[10].mxu1 }
 0x10d   : > { %v1794_v0 = vadd.f32 %v709_v62, %v544_v60  ;;  %v1448_v1 = vpop.f32.mrb[10].mxu0  ;;  %v547_v2 = vpop.f32.mrb[11].mxu1 }
 0x10e   : > { %v1796_v3 = vadd.f32 %v1448_v1, %v1420_v63  ;;  %v712_v4 = vpop.f32.mrb[11].mxu0 }
 0x10f   : > { %v1798_v5 = vadd.f32 %v712_v4, %v547_v2 }
 0x11a   : > { %v1471_v7 = vpop.f32.mrb[12].mxu1 }
 0x11b   : > { %v1467_v8 = vpop.f32.mrb[0].mxu0  ;;  %v924_v9 = vadd.f32 %v1471_v7, %v702_v49  ;;  %v887_v10 = vpop.f32.mrb[13].mxu1 }
 0x11c   : > { %v1493_v11 = vadd.f32 %v1467_v8, %v1411_v42  ;;  %v871_v12 = vpop.f32.mrb[1].mxu0  ;;  %v922_v13 = vadd.f32 %v887_v10, %v694_v52  ;;  %v1472_v14 = vpop.f32.mrb[14].mxu1 }
 0x11d   : > { %v1806_v15 = vadd.f32 %v1803_v6, %v924_v9  ;;  %v1494_v16 = vadd.f32 %v871_v12, %v512_v43  ;;  %v1468_v17 = vpop.f32.mrb[2].mxu0  ;;  %v925_v18 = vadd.f32 %v1472_v14, %v705_v55  ;;  %v890_v19 = vpop.f32.mrb[15].mxu1 }
 0x11e   : > { %v1809_v20 = vadd.f32 %v1493_v11, %v1803_v6  ;;  %v1812_v21 = vadd.f32 %v1803_v6, %v922_v13  ;;  %v1495_v22 = vadd.f32 %v1468_v17, %v1412_v44  ;;  %v874_v23 = vpop.f32.mrb[3].mxu0  ;;  %v923_v24 = vadd.f32 %v890_v19, %v697_v57 }
 0x11f   : > { %v967_v25 = vmul.f32 0.044715, %v1806_v15  ;;  %v1816_v26 = vadd.f32 %v1494_v16, %v1803_v6  ;;  %v1819_v27 = vadd.f32 %v1803_v6, %v925_v18  ;;  %v1496_v44 = vadd.f32 %v874_v23, %v1790_v45 }
 0x120   : > { %v963_v28 = vmul.f32 0.044715, %v1809_v20  ;;  %v965_v29 = vmul.f32 0.044715, %v1812_v21  ;;  %v1826_v32 = vadd.f32 %v1495_v22, %v1803_v6  ;;  %v1842_v50 = vadd.f32 %v1803_v6, %v923_v24 }
 0x121   : > { %v979_v30 = vmul.f32 %v967_v25, %v1806_v15  ;;  %v961_v31 = vmul.f32 0.044715, %v1816_v26  ;;  %v968_v35 = vmul.f32 0.044715, %v1819_v27  ;;  %v1848_v55 = vadd.f32 %v1496_v44, %v1803_v6 }
 0x122   : > { %v975_v33 = vmul.f32 %v963_v28, %v1809_v20  ;;  %v977_v34 = vmul.f32 %v965_v29, %v1812_v21  ;;  %v1475_v36 = vpop.f32.mrb[16].mxu1  ;;  %v964_v39 = vmul.f32 0.044715, %v1826_v32  ;;  %v966_v4 = vmul.f32 0.044715, %v1842_v50 }
 0x123   : > { %v991_v37 = vmul.f32 %v979_v30, %v1806_v15  ;;  %v973_v38 = vmul.f32 %v961_v31, %v1816_v26  ;;  %v903_v40 = vpop.f32.mrb[17].mxu1  ;;  %v980_v43 = vmul.f32 %v968_v35, %v1819_v27  ;;  %v962_v1 = vmul.f32 0.044715, %v1848_v55 }
 0x124   : > { %v987_v41 = vmul.f32 %v975_v33, %v1809_v20  ;;  %v989_v42 = vmul.f32 %v977_v34, %v1812_v21  ;;  %v1476_v46 = vpop.f32.mrb[18].mxu1  ;;  %v976_v49 = vmul.f32 %v964_v39, %v1826_v32  ;;  %v928_v7 = vadd.f32 %v1475_v36, %v1792_v61 }
 0x125   : > { %v1003_v47 = vadd.f32 %v991_v37, %v1806_v15  ;;  %v985_v48 = vmul.f32 %v973_v38, %v1816_v26  ;;  %v906_v51 = vpop.f32.mrb[19].mxu1  ;;  %v992_v54 = vmul.f32 %v980_v43, %v1819_v27  ;;  %v974_v9 = vmul.f32 %v962_v1, %v1848_v55 }
 0x126   : > { %v999_v52 = vadd.f32 %v987_v41, %v1809_v20  ;;  %v1001_v53 = vadd.f32 %v989_v42, %v1812_v21  ;;  %v988_v57 = vmul.f32 %v976_v49, %v1826_v32  ;;  %v926_v10 = vadd.f32 %v903_v40, %v1794_v0 }
 0x127   : > { %v1015_v45 = vmul.f32 0.7978846, %v1003_v47  ;;  %v997_v56 = vadd.f32 %v985_v48, %v1816_v26  ;;  %v1004_v60 = vadd.f32 %v992_v54, %v1819_v27  ;;  %v978_v11 = vmul.f32 %v966_v4, %v1842_v50 }
 0x128   : > { %v1011_v58 = vmul.f32 0.7978846, %v999_v52  ;;  %v1013_v59 = vmul.f32 0.7978846, %v1001_v53  ;;  %v1000_v63 = vadd.f32 %v988_v57, %v1826_v32  ;;  %v1861_v12 = vadd.f32 %v1803_v6, %v928_v7 }
 0x129   : > { %1584 = vtanh.f32 %v1015_v45  ;;  %v1009_v62 = vmul.f32 0.7978846, %v997_v56  ;;  %v1016_v2 = vmul.f32 0.7978846, %v1004_v60  ;;  %v929_v13 = vadd.f32 %v1476_v46, %v1796_v3 }
 0x12a   : > { %1586 = vtanh.f32 %v1011_v58  ;;  %v1012_v8 = vmul.f32 0.7978846, %v1000_v63  ;;  %v986_v14 = vmul.f32 %v974_v9, %v1848_v55  ;;  %v1866_v16 = vadd.f32 %v1803_v6, %v926_v10 }
 0x12b   : > { %1588 = vtanh.f32 %v1009_v62  ;;  %v927_v61 = vadd.f32 %v906_v51, %v1798_v5  ;;  %v990_v17 = vmul.f32 %v978_v11, %v1842_v50  ;;  %v971_v0 = vmul.f32 0.044715, %v1861_v12 }
 0x12c   : > { %1590 = vtanh.f32 %v1013_v59  ;;  %v955_v18 = vmul.f32 0.5, %v1806_v15  ;;  %v998_v19 = vadd.f32 %v986_v14, %v1848_v55  ;;  %v969_v3 = vmul.f32 0.044715, %v1866_v16 }
 0x12d   : > { %1592 = vtanh.f32 %v1012_v8  ;;  %v1875_v22 = vadd.f32 %v1803_v6, %v929_v13  ;;  %v951_v23 = vmul.f32 0.5, %v1809_v20  ;;  %v1002_v24 = vadd.f32 %v990_v17, %v1842_v50 }
 0x12e   : > { %1594 = vtanh.f32 %v1016_v2  ;;  %v983_v5 = vmul.f32 %v971_v0, %v1861_v12  ;;  %v1881_v25 = vadd.f32 %v1803_v6, %v927_v61  ;;  %v953_v28 = vmul.f32 0.5, %v1812_v21 }
 0x12f   : > { %v1010_v29 = vmul.f32 0.7978846, %v998_v19  ;;  %v981_v15 = vmul.f32 %v969_v3, %v1866_v16  ;;  %v972_v30 = vmul.f32 0.044715, %v1875_v22  ;;  %v949_v31 = vmul.f32 0.5, %v1816_v26 }
 0x130   : > { %v1014_v33 = vmul.f32 0.7978846, %v1002_v24  ;;  %v995_v34 = vmul.f32 %v983_v5, %v1861_v12  ;;  %v970_v20 = vmul.f32 0.044715, %v1881_v25  ;;  %v956_v36 = vmul.f32 0.5, %v1819_v27 }
 0x131   : > { %1596 = vtanh.f32 %v1010_v29  ;;  %v993_v6 = vmul.f32 %v981_v15, %v1866_v16  ;;  %v984_v21 = vmul.f32 %v972_v30, %v1875_v22  ;;  %v952_v42 = vmul.f32 0.5, %v1826_v32 }
 0x132   : > { %1598 = vtanh.f32 %v1014_v33  ;;  %v1007_v39 = vadd.f32 %v995_v34, %v1861_v12  ;;  %v982_v26 = vmul.f32 %v970_v20, %v1881_v25  ;;  %v950_v61 = vmul.f32 0.5, %v1848_v55 }
 0x133   : > { %v1585_v35 = vpop.eup %1584  ;;  %v1005_v43 = vadd.f32 %v993_v6, %v1866_v16  ;;  %v996_v27 = vmul.f32 %v984_v21, %v1875_v22  ;;  %v954_v0 = vmul.f32 0.5, %v1842_v50  ;;  %v959_v29 = vmul.f32 0.5, %v1861_v12 }
 0x134   : > { %v1587_v37 = vpop.eup %1586  ;;  %v1039_v38 = vadd.f32 1.0, %v1585_v35  ;;  %v1019_v48 = vmul.f32 0.7978846, %v1007_v39  ;;  %v994_v49 = vmul.f32 %v982_v26, %v1881_v25  ;;  %v957_v55 = vmul.f32 0.5, %v1866_v16 }
 0x135   : > { %v1589_v40 = vpop.eup %1588  ;;  %v1035_v41 = vadd.f32 1.0, %v1587_v37  ;;  %v1017_v32 = vmul.f32 0.7978846, %v1005_v43  ;;  %v1008_v54 = vadd.f32 %v996_v27, %v1875_v22  ;;  %v960_v20 = vmul.f32 0.5, %v1875_v22 }
 0x136   : > { %v1591_v44 = vpop.eup %1590  ;;  %v1051_v46 = vmul.f32 %v1039_v38, %v955_v18  ;;  %v1033_v47 = vadd.f32 1.0, %v1589_v40  ;;  %1600 = vtanh.f32 %v1019_v48  ;;  %v1006_v4 = vadd.f32 %v994_v49, %v1881_v25 }
 0x137   : > { %v1593_v51 = vpop.eup %1592  ;;  %v1047_v52 = vmul.f32 %v1035_v41, %v951_v23  ;;  %v1037_v53 = vadd.f32 1.0, %v1591_v44  ;;  %1602 = vtanh.f32 %v1017_v32  ;;  %v1020_v2 = vmul.f32 0.7978846, %v1008_v54 }
 0x138   : > { %v1595_v45 = vpop.eup %1594  ;;  %v1345_v56 = vpack.c.bf16 %v1051_v46, %v1051_v46  ;;  %v1045_v57 = vmul.f32 %v1033_v47, %v949_v31  ;;  %v1036_v58 = vadd.f32 1.0, %v1593_v51  ;;  %v1018_v10 = vmul.f32 0.7978846, %v1006_v4 }
 0x139   : > { %v1341_v59 = vpack.c.bf16 %v1047_v52, %v1047_v52  ;;  %v1049_v60 = vmul.f32 %v1037_v53, %v953_v28  ;;  %v1040_v62 = vadd.f32 1.0, %v1595_v45  ;;  %1604 = vtanh.f32 %v1020_v2 }
 0x13a   : > { %1112 = vst.msk [vmem:[%s1902_s17 + $0x18] sm:$0xf] %vm1105_vm0, %v1345_v56  ;;  %v1339_v63 = vpack.c.bf16 %v1045_v57, %v1045_v57  ;;  %v1048_v1 = vmul.f32 %v1036_v58, %v952_v42  ;;  %1606 = vtanh.f32 %v1018_v10  ;;  %v958_v21 = vmul.f32 0.5, %v1881_v25 }
 0x13b   : > { %1108 = vst.msk [vmem:[%s1902_s17 + $0x8] sm:$0xf] %vm1105_vm0, %v1341_v59  ;;  %v1343_v7 = vpack.c.bf16 %v1049_v60, %v1049_v60  ;;  %v1052_v8 = vmul.f32 %v1040_v62, %v956_v36  ;;  %v1597_v11 = vpop.eup %1596 }
 0x13c   : > { %1106 = vst.msk [vmem:[%s1902_s17] sm:$0xf] %vm1105_vm0, %v1339_v63  ;;  %v1342_v9 = vpack.c.bf16 %v1048_v1, %v1048_v1  ;;  %v1599_v14 = vpop.eup %1598  ;;  %v1034_v17 = vadd.f32 1.0, %v1597_v11 }
 0x13d   : > { %1110 = vst.msk [vmem:[%s1902_s17 + $0x10] sm:$0xf] %vm1105_vm0, %v1343_v7  ;;  %v1346_v13 = vpack.c.bf16 %v1052_v8, %v1052_v8  ;;  %v1038_v18 = vadd.f32 1.0, %v1599_v14 }
 0x13e   : > { %1109 = vst.msk [vmem:[%s1902_s17 + $0xc] sm:$0xf] %vm1105_vm0, %v1342_v9  ;;  %v1046_v19 = vmul.f32 %v1034_v17, %v950_v61 }
 0x13f   : > { %1113 = vst.msk [vmem:[%s1902_s17 + $0x1c] sm:$0xf] %vm1105_vm0, %v1346_v13  ;;  %v1050_v3 = vmul.f32 %v1038_v18, %v954_v0 }
 0x140   : > { %v1601_v23 = vpop.eup %1600  ;;  %v1340_v24 = vpack.c.bf16 %v1046_v19, %v1046_v19 }
 0x141   : > { %v1603_v5 = vpop.eup %1602  ;;  %v1344_v28 = vpack.c.bf16 %v1050_v3, %v1050_v3  ;;  %v1043_v15 = vadd.f32 1.0, %v1601_v23 }
 0x142   : > { %1107 = vst.msk [vmem:[%s1902_s17 + $0x4] sm:$0xf] %vm1105_vm0, %v1340_v24  ;;  %v1041_v30 = vadd.f32 1.0, %v1603_v5 }
 0x143   : > { %1111 = vst.msk [vmem:[%s1902_s17 + $0x14] sm:$0xf] %vm1105_vm0, %v1344_v28  ;;  %v1055_v50 = vmul.f32 %v1043_v15, %v959_v29  ;;  %v1605_v31 = vpop.eup %1604 }
 0x144   : > { %v1053_v33 = vmul.f32 %v1041_v30, %v957_v55  ;;  %v1044_v35 = vadd.f32 1.0, %v1605_v31  ;;  %v1607_v36 = vpop.eup %1606 }
 0x145   : > { %v1349_v34 = vpack.c.bf16 %v1055_v50, %v1055_v50  ;;  %v1042_v16 = vadd.f32 1.0, %v1607_v36 }
 0x146   : > { %v1347_v12 = vpack.c.bf16 %v1053_v33, %v1053_v33  ;;  %v1056_v6 = vmul.f32 %v1044_v35, %v960_v20 }
 0x147   : > { %1116 = vst.msk [vmem:[%s1902_s17 + $0x28] sm:$0xf] %vm1105_vm0, %v1349_v34  ;;  %v1054_v38 = vmul.f32 %v1042_v16, %v958_v21 }
 0x148   : > { %1114 = vst.msk [vmem:[%s1902_s17 + $0x20] sm:$0xf] %vm1105_vm0, %v1347_v12  ;;  %v1350_v37 = vpack.c.bf16 %v1056_v6, %v1056_v6 }
 0x149   : > { %v1348_v39 = vpack.c.bf16 %v1054_v38, %v1054_v38 }
 0x14a   : > { %1117 = vst.msk [vmem:[%s1902_s17 + $0x2c] sm:$0xf] %vm1105_vm0, %v1350_v37 }
 0x14b   : > { %1115 = vst.msk [vmem:[%s1902_s17 + $0x24] sm:$0xf] %vm1105_vm0, %v1348_v39 }
 0x14c PF: > { %s15_s20 = sadd.s32 1, %s1630_s20   ;;  %s1951_s18 = smov %s1626_s19 }
 0x14d   : > { %p12_p5 = scmp.ge.s32.totalorder %s15_s20, 4   ;;  %s1952_s19 = smov %s1954_s21 }
 0x14f   :  { %14 = sbr.rel (!%p12_p5) target bundleno = 2 (0x2), region = 78 }

// kernel: audio_encoder_forward.10
= control target key start
LH: loop header
LB: loop body
LE: loop exit
PB: predicated region body
PF: predicated region fallthrough
CT: control target
= control target key end

     0   :  { %s1199_s18 = smov 0   ;;  %s1201_s19 = smov 0   ;;  %s1357_s0 = inlined_call_operand.vmem [shape: bf16[2,48,64], index: 0, kind: input, shape index: {}]   ;;  %s1358_s1 = inlined_call_operand.vmem [shape: bf16[2,48,64], index: 1, kind: input, shape index: {}]   ;;  %s1359_s2 = inlined_call_operand.vmem [shape: bf16[2,48,64], index: 2, kind: input, shape index: {}]   ;;  %s1360_s3 = inlined_call_operand.vmem [shape: bf16[3,64,64], index: 3, kind: input, shape index: {}]   ;;  %s1361_s4 = inlined_call_operand.vmem [shape: f32[1,64], index: 4, kind: input, shape index: {}]   ;;  %s1362_s5 = inlined_call_operand.vmem [shape: bf16[2,48,64], index: 5, kind: output, shape index: {}]  }
   0x1   :  { %s1203_s20 = smov 0  }
   0x2 LB: > { %s27_s21 = sadd.s32 1, %s1161_s19  ;;  %p928_p0 = scmp.ge.s32.totalorder %s1165_s20, 1  ;;  %s1165_s20 = sphi %s1203_s20, %s15_s20   ;;  %s1161_s19 = sphi %s1201_s19, %s1364_s19   ;;  %s1157_s18 = sphi %s1199_s18, %s1363_s18  }
   0x3   : > { %p29_p1 = scmp.ge.s32.totalorder %s27_s21, 2  ;;  %p242_p2 = scmp.lt.s32.totalorder %s1165_s20, 3 }
   0x5   : > { %s1366_s21 = smov (%p29_p1, %s27_s21), 0  ;;  %p243_p3 = pnand %p928_p0, %p242_p2 }
   0x6   : > { %v1110_v0 = vld [vmem:[%s1360_s3 + $0x20] sm:$0xff] (!%p243_p3)   ;;  %v1167_v1 = vmov (!%p243_p3), 0.0   ;;  %v1111_v2 = vld [vmem:[%s1360_s3 + $0x28] sm:$0xff] (!%p243_p3)   ;;  %p297_p4 = scmp.lt.s32.totalorder (!%p243_p3), %s1157_s18, 1  ;;  %vm1168_vm0 = vmmov (!%p243_p3), 0   ;;  %v1112_v3 = vld [vmem:[%s1360_s3 + $0x30] sm:$0xff] (!%p243_p3)  }
   0x7   : > { %246 = sbr.rel (%p243_p3) target bundleno = 303 (0x12f), region = 40  ;;  %1015 = vmatprep.subr.bf16.mxu0 (!%p243_p3), %v1167_v1  ;;  %1075 = vmatprep.subr.bf16.mxu1 (!%p243_p3), %v1167_v1  ;;  %v1113_v4 = vld [vmem:[%s1360_s3 + $0x38] sm:$0xff] (!%p243_p3)   ;;  %v1116_v6 = vld [vmem:[%s1360_s3] sm:$0xff] (!%p243_p3)   ;;  %vm405_vm1 = vcmask (!%p243_p3), 523264   ;;  %v1118_v9 = vld [vmem:[%s1360_s3 + $0x8] sm:$0xff] (!%p243_p3)   ;;  %vm794_vm2 = vcmask (!%p243_p3), 519168  }
   0x8   : > { %1016 = vmatpush3.bf16.msra.mxu0 (!%p243_p3), %v1110_v0  ;;  %1079 = vmatpush3.bf16.msra.mxu1 (!%p243_p3), %v1110_v0  ;;  %v1117_v8 = vld [vmem:[%s1360_s3 + $0x40] sm:$0xff] (!%p243_p3)   ;;  %v1119_v10 = vld [vmem:[%s1360_s3 + $0x48] sm:$0xff] (!%p243_p3)   ;;  %v1121_v12 = vld [vmem:[%s1360_s3 + $0x10] sm:$0xff] (!%p243_p3)  }
   0x9   : > { %1017 = vmatprep.subr.bf16.mxu0 (!%p243_p3), %v1167_v1  ;;  %1076 = vmatprep.subr.bf16.mxu1 (!%p243_p3), %v1167_v1  ;;  %v1122_v13 = vld [vmem:[%s1360_s3 + $0x50] sm:$0xff] (!%p243_p3)   ;;  %v1123_v14 = vld [vmem:[%s1360_s3 + $0x18] sm:$0xff] (!%p243_p3)   ;;  %v979_v39 = vld [vmem:[%s1361_s4] ss:$0 sm:$0xff] (!%p243_p3) }
   0xa   : > { %1023 = vmatprep.mubr.msk.bf16.mxu0 (!%p243_p3), %vm1168_vm0, %v1167_v1  ;;  %1031 = vmatprep.mubr.msk.bf16.mxu1 (!%p243_p3), %vm1168_vm0, %v1167_v1  ;;  %v1124_v15 = vld [vmem:[%s1360_s3 + $0x58] sm:$0xff] (!%p243_p3)  }
   0xc   : > { %1018 = vmatpush3.bf16.msra.mxu0 (!%p243_p3), %v1111_v2  ;;  %1080 = vmatpush3.bf16.msra.mxu1 (!%p243_p3), %v1111_v2 }
   0xd   : > { %1019 = vmatprep.subr.bf16.mxu0 (!%p243_p3), %v1167_v1  ;;  %1077 = vmatprep.subr.bf16.mxu1 (!%p243_p3), %v1167_v1 }
   0xe   : > { %s1368_s18 = smov (!%p297_p4, %s1157_s18), 1 }
   0xf   : > { %s1234_s28 = smul.u32 24, %s1368_s18 }
  0x10   : > { %1020 = vmatpush3.bf16.msra.mxu0 %v1112_v3  ;;  %1081 = vmatpush3.bf16.msra.mxu1 %v1112_v3 }
  0x11   : > { %s314_s6 = scalar_lea.vmem %s1358_s1, %s1234_s28  ;;  %1021 = vmatprep.subr.bf16.mxu0 %v1167_v1  ;;  %1078 = vmatprep.subr.bf16.mxu1 %v1167_v1  ;;  %s1257_s15 = scalar_lea.vmem %s1357_s0, %s1234_s28 }
  0x12   : > { %v1114_v5 = vld [vmem:[%s314_s6] sm:$0xff]   ;;  %v1115_v7 = vld [vmem:[%s314_s6 + $0x10] sm:$0xff]   ;;  %s1265_s18 = scalar_lea.vmem %s1359_s2, %s1234_s28  ;;  %v1120_v11 = vld [vmem:[%s314_s6 + $0x8] sm:$0xff]   ;;  %s1334_s14 = scalar_lea.vmem %s1362_s5, %s1234_s28 }
  0x13   : > { %v1125_v16 = vld [vmem:[%s1257_s15] sm:$0xff]   ;;  %v1127_v18 = vld [vmem:[%s1257_s15 + $0x8] sm:$0xff]   ;;  %v1129_v20 = vld [vmem:[%s1257_s15 + $0x10] sm:$0xff]  }
  0x14   : > { %1022 = vmatpush3.bf16.msra.mxu0 %v1113_v4  ;;  %1082 = vmatpush3.bf16.msra.mxu1 %v1113_v4  ;;  %v1126_v17 = vld [vmem:[%s1265_s18] sm:$0xff]   ;;  %v1128_v19 = vld [vmem:[%s1265_s18 + $0x8] sm:$0xff]   ;;  %v1130_v21 = vld [vmem:[%s1265_s18 + $0x10] sm:$0xff]  }
  0x15   : > { %1035 = vmatprep.subr.bf16.mxu1 %v1167_v1  ;;  %1055 = vmatprep.subr.bf16.mxu0 %v1167_v1 }
  0x17   : > { %1024 = vmatmul.mubr.msk.bf16.vlgmr.msra.gmra.mrb[0].mxu0 %vm405_vm1, %v1114_v5  ;;  %1032 = vmatmul.mubr.msk.bf16.vlgmr.msra.gmra.mrb[0].mxu1 %vm405_vm1, %v1115_v7 }
  0x18   : > { %1036 = vmatpush3.bf16.msra.mxu1 %v1116_v6  ;;  %1056 = vmatpush3.bf16.msra.mxu0 %v1117_v8 }
  0x19   : > { %1037 = vmatprep.subr.bf16.mxu1 %v1167_v1  ;;  %1057 = vmatprep.subr.bf16.mxu0 %v1167_v1 }
  0x1a   : > { %1027 = vmatprep.mubr.msk.bf16.mxu0 %vm1168_vm0, %v1167_v1  ;;  %1043 = vmatprep.mubr.msk.bf16.mxu1 %vm1168_vm0, %v1167_v1 }
  0x1c   : > { %1038 = vmatpush3.bf16.msra.mxu1 %v1118_v9  ;;  %1058 = vmatpush3.bf16.msra.mxu0 %v1119_v10 }
  0x1d   : > { %1039 = vmatprep.subr.bf16.mxu1 %v1167_v1  ;;  %1059 = vmatprep.subr.bf16.mxu0 %v1167_v1 }
  0x1f   : > { %1028 = vmatmul.mubr.msk.bf16.gmra.mrb[4].mxu0 %vm405_vm1, %v1120_v11 }
  0x20   : > { %1040 = vmatpush3.bf16.msra.mxu1 %v1121_v12  ;;  %1060 = vmatpush3.bf16.msra.mxu0 %v1122_v13 }
  0x21   : > { %1041 = vmatprep.subr.bf16.mxu1 %v1167_v1  ;;  %1061 = vmatprep.subr.bf16.mxu0 %v1167_v1 }
  0x22   : > { %1063 = vmatprep.mubr.msk.bf16.mxu0 %vm1168_vm0, %v1167_v1 }
  0x24   : > { %1042 = vmatpush3.bf16.msra.mxu1 %v1123_v14  ;;  %1062 = vmatpush3.bf16.msra.mxu0 %v1124_v15 }
  0x27   : > { %1044 = vmatmul.mubr.msk.bf16.vlgmr.msra.gmra.mrb[4].mxu1 %vm405_vm1, %v1125_v16  ;;  %1064 = vmatmul.mubr.msk.bf16.vlgmr.msra.gmra.mrb[8].mxu0 %vm405_vm1, %v1126_v17 }
  0x28   : > { %1047 = vmatprep.mubr.msk.bf16.mxu1 %vm1168_vm0, %v1167_v1  ;;  %1067 = vmatprep.mubr.msk.bf16.mxu0 %vm1168_vm0, %v1167_v1 }
  0x2f   : > { %1048 = vmatmul.mubr.msk.bf16.gmra.mrb[8].mxu1 %vm405_vm1, %v1127_v18  ;;  %1068 = vmatmul.mubr.msk.bf16.gmra.mrb[12].mxu0 %vm405_vm1, %v1128_v19 }
  0x30   : > { %1051 = vmatprep.mubr.msk.bf16.mxu1 %vm1168_vm0, %v1167_v1  ;;  %1071 = vmatprep.mubr.msk.bf16.mxu0 %vm1168_vm0, %v1167_v1 }
  0x37   : > { %1052 = vmatmul.mubr.msk.bf16.gmra.mrb[12].mxu1 %vm405_vm1, %v1129_v20  ;;  %1072 = vmatmul.mubr.msk.bf16.gmra.mrb[16].mxu0 %vm405_vm1, %v1130_v21 }
  0xea   : > { %v449_v22 = vpop.f32.mrb[0].mxu0  ;;  %v465_v23 = vpop.f32.mrb[0].mxu1 }
  0xeb   : > { %v1025_v24 = vpop.f32.mrb[1].mxu0  ;;  %v1033_v25 = vpop.f32.mrb[1].mxu1 }
  0xec   : > { %v452_v26 = vpop.f32.mrb[2].mxu0  ;;  %v468_v27 = vpop.f32.mrb[2].mxu1 }
  0xed   : > { %v1026_v28 = vpop.f32.mrb[3].mxu0  ;;  %v1034_v29 = vpop.f32.mrb[3].mxu1 }
  0xf2   : > { %v457_v30 = vpop.f32.mrb[4].mxu0 }
  0xf3   : > { %v1029_v31 = vpop.f32.mrb[5].mxu0 }
  0xf4   : > { %v460_v32 = vpop.f32.mrb[6].mxu0 }
  0xf5   : > { %v1030_v33 = vpop.f32.mrb[7].mxu0 }
  0xfa   : > { %v554_v34 = vpop.f32.mrb[4].mxu1  ;;  %v674_v35 = vpop.f32.mrb[8].mxu0 }
  0xfb   : > { %v555_v36 = vadd.f32 %v554_v34, %v449_v22  ;;  %v1045_v37 = vpop.f32.mrb[5].mxu1  ;;  %v1065_v38 = vpop.f32.mrb[9].mxu0 }
  0xfc   : > { %v557_v40 = vpop.f32.mrb[6].mxu1  ;;  %v677_v41 = vpop.f32.mrb[10].mxu0 }
  0xfd   : > { %v697_v42 = vadd.f32 %v674_v35, %v555_v36  ;;  %v558_v43 = vadd.f32 %v557_v40, %v452_v26  ;;  %v1046_v44 = vpop.f32.mrb[7].mxu1  ;;  %v1066_v45 = vpop.f32.mrb[11].mxu0 }
  0xff   : > { %v710_v46 = vadd.f32 %v979_v39, %v697_v42  ;;  %v698_v47 = vadd.f32 %v677_v41, %v558_v43 }
 0x101   : > { %v722_v48 = vmul.f32 0.044715, %v710_v46  ;;  %v1323_v49 = vadd.f32 %v979_v39, %v698_v47 }
 0x102   : > { %v562_v50 = vpop.f32.mrb[8].mxu1  ;;  %v682_v51 = vpop.f32.mrb[12].mxu0 }
 0x103   : > { %v728_v52 = vmul.f32 %v722_v48, %v710_v46  ;;  %v723_v53 = vmul.f32 0.044715, %v1323_v49  ;;  %v563_v54 = vadd.f32 %v562_v50, %v457_v30  ;;  %v1049_v55 = vpop.f32.mrb[9].mxu1  ;;  %v1069_v56 = vpop.f32.mrb[13].mxu0  ;;  %v717_v47 = vmul.f32 0.5, %v1323_v49 }
 0x104   : > { %v565_v57 = vpop.f32.mrb[10].mxu1  ;;  %v685_v58 = vpop.f32.mrb[14].mxu0 }
 0x105   : > { %v734_v59 = vmul.f32 %v728_v52, %v710_v46  ;;  %v729_v60 = vmul.f32 %v723_v53, %v1323_v49  ;;  %v699_v61 = vadd.f32 %v682_v51, %v563_v54  ;;  %v566_v62 = vadd.f32 %v565_v57, %v460_v32  ;;  %v1050_v63 = vpop.f32.mrb[11].mxu1  ;;  %v1070_v0 = vpop.f32.mrb[15].mxu0 }
 0x107   : > { %v740_v1 = vadd.f32 %v734_v59, %v710_v46  ;;  %v735_v2 = vmul.f32 %v729_v60, %v1323_v49  ;;  %v712_v3 = vadd.f32 %v979_v39, %v699_v61  ;;  %v700_v4 = vadd.f32 %v685_v58, %v566_v62 }
 0x109   : > { %v746_v5 = vmul.f32 0.7978846, %v740_v1  ;;  %v741_v6 = vadd.f32 %v735_v2, %v1323_v49  ;;  %v724_v7 = vmul.f32 0.044715, %v712_v3  ;;  %v713_v8 = vadd.f32 %v979_v39, %v700_v4 }
 0x10a   : > { %v570_v9 = vpop.f32.mrb[12].mxu1  ;;  %v690_v10 = vpop.f32.mrb[16].mxu0  ;;  %v718_v54 = vmul.f32 0.5, %v712_v3 }
 0x10b   : > { %1131 = vtanh.f32 %v746_v5  ;;  %v747_v11 = vmul.f32 0.7978846, %v741_v6  ;;  %v730_v12 = vmul.f32 %v724_v7, %v712_v3  ;;  %v571_v13 = vadd.f32 %v570_v9, %v465_v23  ;;  %v1053_v14 = vpop.f32.mrb[13].mxu1  ;;  %v1073_v15 = vpop.f32.mrb[17].mxu0 }
 0x10c   : > { %v725_v16 = vmul.f32 0.044715, %v713_v8  ;;  %v573_v17 = vpop.f32.mrb[14].mxu1  ;;  %v693_v18 = vpop.f32.mrb[18].mxu0  ;;  %v719_v58 = vmul.f32 0.5, %v713_v8 }
 0x10d   : > { %1133 = vtanh.f32 %v747_v11  ;;  %v736_v19 = vmul.f32 %v730_v12, %v712_v3  ;;  %v701_v20 = vadd.f32 %v690_v10, %v571_v13  ;;  %v574_v21 = vadd.f32 %v573_v17, %v468_v27  ;;  %v1054_v22 = vpop.f32.mrb[15].mxu1  ;;  %v1074_v24 = vpop.f32.mrb[19].mxu0 }
 0x10e   : > { %v731_v25 = vmul.f32 %v725_v16, %v713_v8  ;;  %v716_v27 = vmul.f32 0.5, %v710_v46 }
 0x10f   : > { %v742_v26 = vadd.f32 %v736_v19, %v712_v3  ;;  %v714_v28 = vadd.f32 %v979_v39, %v701_v20  ;;  %v702_v29 = vadd.f32 %v693_v18, %v574_v21 }
 0x110   : > { %v737_v30 = vmul.f32 %v731_v25, %v713_v8 }
 0x111   : > { %v748_v31 = vmul.f32 0.7978846, %v742_v26  ;;  %v726_v32 = vmul.f32 0.044715, %v714_v28  ;;  %v715_v33 = vadd.f32 %v979_v39, %v702_v29  ;;  %v720_v0 = vmul.f32 0.5, %v714_v28 }
 0x112   : > { %v743_v23 = vadd.f32 %v737_v30, %v713_v8 }
 0x113   : > { %1135 = vtanh.f32 %v748_v31  ;;  %v732_v34 = vmul.f32 %v726_v32, %v714_v28  ;;  %v727_v35 = vmul.f32 0.044715, %v715_v33  ;;  %v721_v3 = vmul.f32 0.5, %v715_v33 }
 0x114   : > { %v749_v36 = vmul.f32 0.7978846, %v743_v23 }
 0x115   : > { %v1132_v37 = vpop.eup %1131  ;;  %v738_v38 = vmul.f32 %v732_v34, %v714_v28  ;;  %v733_v40 = vmul.f32 %v727_v35, %v715_v33 }
 0x116   : > { %v758_v41 = vadd.f32 1.0, %v1132_v37  ;;  %1137 = vtanh.f32 %v749_v36 }
 0x117   : > { %v1134_v42 = vpop.eup %1133  ;;  %v744_v43 = vadd.f32 %v738_v38, %v714_v28  ;;  %v739_v44 = vmul.f32 %v733_v40, %v715_v33 }
 0x118   : > { %v764_v45 = vmul.f32 %v758_v41, %v716_v27  ;;  %v759_v48 = vadd.f32 1.0, %v1134_v42 }
 0x119   : > { %v750_v39 = vmul.f32 0.7978846, %v744_v43  ;;  %v745_v50 = vadd.f32 %v739_v44, %v715_v33 }
 0x11a   : > { %v988_v46 = vpack.c.bf16 %v764_v45, %v764_v45  ;;  %v765_v51 = vmul.f32 %v759_v48, %v717_v47 }
 0x11b   : > { %1139 = vtanh.f32 %v750_v39  ;;  %v751_v52 = vmul.f32 0.7978846, %v745_v50 }
 0x11c   : > { %795 = vst.msk [vmem:[%s1334_s14] sm:$0xf] %vm794_vm2, %v988_v46  ;;  %v989_v53 = vpack.c.bf16 %v765_v51, %v765_v51 }
 0x11d   : > { %v1136_v49 = vpop.eup %1135  ;;  %1141 = vtanh.f32 %v751_v52 }
 0x11e   : > { %796 = vst.msk [vmem:[%s1334_s14 + $0x4] sm:$0xf] %vm794_vm2, %v989_v53  ;;  %v760_v55 = vadd.f32 1.0, %v1136_v49 }
 0x120   : > { %v1138_v56 = vpop.eup %1137  ;;  %v766_v57 = vmul.f32 %v760_v55, %v718_v54 }
 0x121   : > { %v761_v59 = vadd.f32 1.0, %v1138_v56 }
 0x122   : > { %v990_v60 = vpack.c.bf16 %v766_v57, %v766_v57 }
 0x123   : > { %v767_v61 = vmul.f32 %v761_v59, %v719_v58 }
 0x124   : > { %797 = vst.msk [vmem:[%s1334_s14 + $0x8] sm:$0xf] %vm794_vm2, %v990_v60 }
 0x125   : > { %v1140_v62 = vpop.eup %1139  ;;  %v991_v63 = vpack.c.bf16 %v767_v61, %v767_v61 }
 0x126   : > { %v762_v1 = vadd.f32 1.0, %v1140_v62 }
 0x127   : > { %v1142_v2 = vpop.eup %1141  ;;  %798 = vst.msk [vmem:[%s1334_s14 + $0xc] sm:$0xf] %vm794_vm2, %v991_v63 }
 0x128   : > { %v768_v4 = vmul.f32 %v762_v1, %v720_v0  ;;  %v763_v5 = vadd.f32 1.0, %v1142_v2 }
 0x12a   : > { %v992_v6 = vpack.c.bf16 %v768_v4, %v768_v4  ;;  %v769_v7 = vmul.f32 %v763_v5, %v721_v3 }
 0x12c   : > { %799 = vst.msk [vmem:[%s1334_s14 + $0x10] sm:$0xf] %vm794_vm2, %v992_v6  ;;  %v993_v8 = vpack.c.bf16 %v769_v7, %v769_v7 }
 0x12e   : > { %800 = vst.msk [vmem:[%s1334_s14 + $0x14] sm:$0xf] %vm794_vm2, %v993_v8 }
 0x12f PF: > { %s15_s20 = sadd.s32 1, %s1165_s20   ;;  %s1363_s18 = smov %s1161_s19 }
 0x130   : > { %p12_p5 = scmp.ge.s32.totalorder %s15_s20, 4   ;;  %s1364_s19 = smov %s1366_s21 }
 0x132   :  { %14 = sbr.rel (!%p12_p5) target bundleno = 2 (0x2), region = 78 }

// kernel: audio_encoder_forward.11
= control target key start
LH: loop header
LB: loop body
LE: loop exit
PB: predicated region body
PF: predicated region fallthrough
CT: control target
= control target key end

     0   :  { %s1443_s13 = smov 0   ;;  %s1445_s14 = smov 0   ;;  %s1655_s0 = inlined_call_operand.vmem [shape: bf16[2,48,64], index: 0, kind: input, shape index: {}]   ;;  %s1656_s1 = inlined_call_operand.vmem [shape: f32[1,64], index: 1, kind: input, shape index: {}]   ;;  %s1657_s2 = inlined_call_operand.vmem [shape: f32[1,64], index: 2, kind: input, shape index: {}]   ;;  %s1658_s3 = inlined_call_operand.vmem [shape: bf16[64,64], index: 3, kind: input, shape index: {}]   ;;  %s1659_s4 = inlined_call_operand.vmem [shape: f32[1,64], index: 4, kind: input, shape index: {}]   ;;  %s1660_s5 = inlined_call_operand.vmem [shape: bf16[64,64], index: 5, kind: input, shape index: {}]   ;;  %s1661_s6 = inlined_call_operand.vmem [shape: bf16[64,64], index: 6, kind: input, shape index: {}]   ;;  %s1662_s7 = inlined_call_operand.vmem [shape: f32[1,64], index: 7, kind: input, shape index: {}]   ;;  %s1663_s8 = inlined_call_operand.vmem [shape: bf16[2,48,64], index: 8, kind: output, shape index: {0}]   ;;  %s1664_s9 = inlined_call_operand.vmem [shape: bf16[2,48,64], index: 9, kind: output, shape index: {1}]   ;;  %s1665_s10 = inlined_call_operand.vmem [shape: bf16[2,48,64], index: 10, kind: output, shape index: {2}]  }
   0x1   :  { %s1447_s15 = smov 0  }
   0x2 LB: > { %s33_s16 = sadd.s32 1, %s1380_s14  ;;  %p1140_p0 = scmp.ge.s32.totalorder %s1384_s15, 1  ;;  %s1384_s15 = sphi %s1447_s15, %s21_s15   ;;  %s1380_s14 = sphi %s1445_s14, %s1667_s14   ;;  %s1376_s13 = sphi %s1443_s13, %s1666_s13  }
   0x3   : > { %p35_p1 = scmp.ge.s32.totalorder %s33_s16, 2  ;;  %p342_p2 = scmp.lt.s32.totalorder %s1384_s15, 3 }
   0x5   : > { %s1669_s16 = smov (%p35_p1, %s33_s16), 0  ;;  %p343_p3 = pnand %p1140_p0, %p342_p2 }
   0x6   : > { %p407_p4 = scmp.lt.s32.totalorder (!%p343_p3), %s1376_s13, 1  ;;  %vm461_vm0 = vcmask (!%p343_p3), 523264   ;;  %v1338_v45 = vld [vmem:[%s1658_s3] sm:$0xff] (!%p343_p3)   ;;  %v1386_v46 = vmov (!%p343_p3), 0.0   ;;  %v1339_v47 = vld [vmem:[%s1658_s3 + $0x8] sm:$0xff] (!%p343_p3)   ;;  %v1340_v48 = vld [vmem:[%s1658_s3 + $0x10] sm:$0xff] (!%p343_p3)  }
   0x7   : > { %346 = sbr.rel (%p343_p3) target bundleno = 593 (0x251), region = 52  ;;  %1243 = vmatprep.subr.bf16.mxu0 (!%p343_p3), %v1386_v46  ;;  %1303 = vmatprep.subr.bf16.mxu1 (!%p343_p3), %v1386_v46  ;;  %v1341_v49 = vld [vmem:[%s1658_s3 + $0x18] sm:$0xff] (!%p343_p3)   ;;  %vm1387_vm1 = vmmov (!%p343_p3), 0   ;;  %vm697_vm2 = vcmask (!%p343_p3), 519168  }
   0x8   : > { %1244 = vmatpush3.bf16.msra.mxu0 (!%p343_p3), %v1338_v45  ;;  %1307 = vmatpush3.bf16.msra.mxu1 (!%p343_p3), %v1338_v45 }
   0x9   : > { %1245 = vmatprep.subr.bf16.mxu0 (!%p343_p3), %v1386_v46  ;;  %1304 = vmatprep.subr.bf16.mxu1 (!%p343_p3), %v1386_v46 }
   0xa   : > { %1251 = vmatprep.mubr.msk.bf16.mxu0 (!%p343_p3), %vm1387_vm1, %v1386_v46  ;;  %1259 = vmatprep.mubr.msk.bf16.mxu1 (!%p343_p3), %vm1387_vm1, %v1386_v46 }
   0xc   : > { %1246 = vmatpush3.bf16.msra.mxu0 (!%p343_p3), %v1339_v47  ;;  %1308 = vmatpush3.bf16.msra.mxu1 (!%p343_p3), %v1339_v47 }
   0xd   : > { %1247 = vmatprep.subr.bf16.mxu0 (!%p343_p3), %v1386_v46  ;;  %1305 = vmatprep.subr.bf16.mxu1 (!%p343_p3), %v1386_v46 }
   0xe   : > { %s1671_s13 = smov (!%p407_p4, %s1376_s13), 1 }
   0xf   : > { %s1461_s17 = smul.u32 24, %s1671_s13 }
  0x10   : > { %1248 = vmatpush3.bf16.msra.mxu0 %v1340_v48  ;;  %1309 = vmatpush3.bf16.msra.mxu1 %v1340_v48 }
  0x11   : > { %s414_s20 = scalar_lea.vmem %s1655_s0, %s1461_s17  ;;  %1249 = vmatprep.subr.bf16.mxu0 %v1386_v46  ;;  %1306 = vmatprep.subr.bf16.mxu1 %v1386_v46  ;;  %s424_s21 = scalar_lea.vmem %s1663_s8, %s1461_s17 }
  0x12   : > { %v1209_v0 = vld [vmem:[%s414_s20] sm:$0xff]   ;;  %v1221_v1 = vld [vmem:[%s414_s20 + $0x10] sm:$0xff]   ;;  %v1220_v2 = vld [vmem:[%s414_s20 + $0x8] sm:$0xff]   ;;  %s1614_s26 = scalar_lea.vmem %s1665_s10, %s1461_s17  ;;  %s1620_s29 = scalar_lea.vmem %s1664_s9, %s1461_s17 }
  0x13   : > { %v1210_v3 = vunpack.c.l.bf16 %v1209_v0  ;;  %v1218_v4 = vunpack.c.l.bf16 %v1221_v1  ;;  %v1211_v5 = vunpack.c.h.bf16 %v1209_v0  ;;  %v1219_v6 = vunpack.c.h.bf16 %v1221_v1 }
  0x14   : > { %v1214_v11 = vunpack.c.l.bf16 %v1220_v2  ;;  %v1215_v12 = vunpack.c.h.bf16 %v1220_v2  ;;  %1250 = vmatpush3.bf16.msra.mxu0 %v1341_v49  ;;  %1310 = vmatpush3.bf16.msra.mxu1 %v1341_v49 }
  0x15   : > { %v462_v7 = vsel %vm461_vm0, %v1210_v3, 0.0  ;;  %v474_v8 = vsel %vm461_vm0, %v1218_v4, 0.0  ;;  %v465_v9 = vsel %vm461_vm0, %v1211_v5, 0.0  ;;  %v477_v10 = vsel %vm461_vm0, %v1219_v6, 0.0  ;;  %1283 = vmatprep.subr.bf16.mxu0 %v1386_v46  ;;  %1263 = vmatprep.subr.bf16.mxu1 %v1386_v46 }
  0x16   : > { %463 = vadd.xlane.f32.xlu0 %v462_v7  ;;  %475 = vadd.xlane.f32.xlu1 %v474_v8  ;;  %v468_v13 = vsel %vm461_vm0, %v1214_v11, 0.0  ;;  %v471_v14 = vsel %vm461_vm0, %v1215_v12, 0.0 }
  0x1a   : > { %466 = vadd.xlane.f32.xlu0 %v465_v9  ;;  %478 = vadd.xlane.f32.xlu1 %v477_v10 }
  0x1e   : > { %469 = vadd.xlane.f32.xlu0 %v468_v13  ;;  %472 = vadd.xlane.f32.xlu1 %v471_v14 }
  0xa3   : > { %v464_v15 = vpop.xlane.xlu0 %463  ;;  %v476_v16 = vpop.xlane.xlu1 %475 }
  0xa4   : > { %v481_v17 = vmul.f32 0.015625, %v464_v15  ;;  %v485_v18 = vmul.f32 0.015625, %v476_v16 }
  0xa6   : > { %v1473_v19 = vsub.f32 %v1210_v3, %v481_v17  ;;  %v1475_v20 = vsub.f32 %v1218_v4, %v485_v18 }
  0xa7   : > { %v467_v21 = vpop.xlane.xlu0 %466  ;;  %v479_v22 = vpop.xlane.xlu1 %478 }
  0xa8   : > { %v482_v23 = vmul.f32 0.015625, %v467_v21  ;;  %v486_v24 = vmul.f32 0.015625, %v479_v22  ;;  %v493_v25 = vmul.f32 %v1473_v19, %v1473_v19  ;;  %v497_v26 = vmul.f32 %v1475_v20, %v1475_v20  ;;  %v1342_v22 = vld [vmem:[%s1661_s6] sm:$0xff]  }
  0xaa   : > { %v1481_v27 = vsub.f32 %v1211_v5, %v482_v23  ;;  %v1483_v28 = vsub.f32 %v1219_v6, %v486_v24  ;;  %v499_v29 = vsel %vm461_vm0, %v493_v25, 0.0  ;;  %v511_v32 = vsel %vm461_vm0, %v497_v26, 0.0  ;;  %v1145_v6 = vld [vmem:[%s1656_s1] ss:$0 sm:$0xff] }
  0xab   : > { %500 = vadd.xlane.f32.xlu0 %v499_v29  ;;  %v470_v30 = vpop.xlane.xlu0 %469  ;;  %v473_v31 = vpop.xlane.xlu1 %472 }
  0xac   : > { %v483_v33 = vmul.f32 0.015625, %v470_v30  ;;  %v484_v34 = vmul.f32 0.015625, %v473_v31  ;;  %v494_v35 = vmul.f32 %v1481_v27, %v1481_v27  ;;  %v498_v36 = vmul.f32 %v1483_v28, %v1483_v28  ;;  %v1344_v30 = vld [vmem:[%s1661_s6 + $0x8] sm:$0xff]  }
  0xae   : > { %v1491_v37 = vsub.f32 %v1214_v11, %v483_v33  ;;  %v1493_v38 = vsub.f32 %v1215_v12, %v484_v34  ;;  %v502_v39 = vsel %vm461_vm0, %v494_v35, 0.0  ;;  %v514_v40 = vsel %vm461_vm0, %v498_v36, 0.0  ;;  %v1146_v12 = vld [vmem:[%s1657_s2] ss:$0 sm:$0xff]  ;;  %v1345_v35 = vld [vmem:[%s1660_s5 + $0x8] sm:$0xff]   ;;  %v1346_v36 = vld [vmem:[%s1661_s6 + $0x10] sm:$0xff]  }
  0xaf   : > { %512 = vadd.xlane.f32.xlu0 %v511_v32  ;;  %503 = vadd.xlane.f32.xlu1 %v502_v39  ;;  %v1348_v39 = vld [vmem:[%s1661_s6 + $0x18] sm:$0xff]  }
  0xb0   : > { %v495_v41 = vmul.f32 %v1491_v37, %v1491_v37  ;;  %v496_v42 = vmul.f32 %v1493_v38, %v1493_v38 }
  0xb2   : > { %v505_v43 = vsel %vm461_vm0, %v495_v41, 0.0  ;;  %v508_v44 = vsel %vm461_vm0, %v496_v42, 0.0  ;;  %v1147_v41 = vld [vmem:[%s1659_s4] ss:$0 sm:$0xff] }
  0xb3   : > { %515 = vadd.xlane.f32.xlu1 %v514_v40  ;;  %506 = vadd.xlane.f32.xlu0 %v505_v43  ;;  %v1349_v40 = vld [vmem:[%s1660_s5 + $0x18] sm:$0xff]  }
  0xb7   : > { %509 = vadd.xlane.f32.xlu1 %v508_v44 }
 0x138   : > { %v501_v50 = vpop.xlane.xlu0 %500 }
 0x139   : > { %v517_v51 = vmul.f32 0.015625, %v501_v50 }
 0x13b   : > { %v523_v52 = vadd.f32 1e-05, %v517_v51 }
 0x13c   : > { %v504_v53 = vpop.xlane.xlu1 %503  ;;  %v513_v54 = vpop.xlane.xlu0 %512 }
 0x13d   : > { %1350 = vrsqrt.f32 %v523_v52  ;;  %v518_v55 = vmul.f32 0.015625, %v504_v53  ;;  %v521_v56 = vmul.f32 0.015625, %v513_v54 }
 0x13f   : > { %v524_v57 = vadd.f32 1e-05, %v518_v55  ;;  %v527_v58 = vadd.f32 1e-05, %v521_v56 }
 0x140   : > { %v516_v59 = vpop.xlane.xlu1 %515  ;;  %v507_v60 = vpop.xlane.xlu0 %506 }
 0x141   : > { %1352 = vrsqrt.f32 %v524_v57  ;;  %v522_v61 = vmul.f32 0.015625, %v516_v59  ;;  %v519_v62 = vmul.f32 0.015625, %v507_v60 }
 0x142   : > { %1354 = vrsqrt.f32 %v527_v58 }
 0x143   : > { %v528_v63 = vadd.f32 1e-05, %v522_v61  ;;  %v525_v0 = vadd.f32 1e-05, %v519_v62 }
 0x144   : > { %v510_v1 = vpop.xlane.xlu1 %509 }
 0x145   : > { %1356 = vrsqrt.f32 %v528_v63  ;;  %v520_v2 = vmul.f32 0.015625, %v510_v1 }
 0x146   : > { %1358 = vrsqrt.f32 %v525_v0 }
 0x147   : > { %v1351_v3 = vpop.eup %1350  ;;  %v526_v4 = vadd.f32 1e-05, %v520_v2  ;;  %v1174_v2 = vld [vmem:[%s1662_s7] ss:$0 sm:$0xff] }
 0x148   : > { %v535_v5 = vmul.f32 %v1351_v3, %v1473_v19 }
 0x149   : > { %1360 = vrsqrt.f32 %v526_v4 }
 0x14a   : > { %v547_v10 = vmul.f32 %v1145_v6, %v535_v5 }
 0x14b   : > { %v1353_v7 = vpop.eup %1352 }
 0x14c   : > { %v1355_v8 = vpop.eup %1354  ;;  %v536_v9 = vmul.f32 %v1353_v7, %v1481_v27  ;;  %v559_v17 = vadd.f32 %v1146_v12, %v547_v10 }
 0x14d   : > { %v539_v11 = vmul.f32 %v1355_v8, %v1475_v20 }
 0x14e   : > { %v548_v13 = vmul.f32 %v1145_v6, %v536_v9 }
 0x14f   : > { %v1357_v14 = vpop.eup %1356  ;;  %v551_v19 = vmul.f32 %v1145_v6, %v539_v11 }
 0x150   : > { %v1359_v15 = vpop.eup %1358  ;;  %v540_v16 = vmul.f32 %v1357_v14, %v1483_v28  ;;  %v560_v18 = vadd.f32 %v1146_v12, %v548_v13  ;;  %v1343_v28 = vld [vmem:[%s1660_s5] sm:$0xff]  }
 0x151   : > { %v537_v21 = vmul.f32 %v1359_v15, %v1491_v37  ;;  %v563_v26 = vadd.f32 %v1146_v12, %v551_v19 }
 0x152   : > { %v565_v23 = vpack.c.bf16 %v560_v18, %v559_v17  ;;  %v552_v20 = vmul.f32 %v1145_v6, %v540_v16 }
 0x153   : > { %v1361_v24 = vpop.eup %1360  ;;  %v549_v29 = vmul.f32 %v1145_v6, %v537_v21 }
 0x154   : > { %v538_v25 = vmul.f32 %v1361_v24, %v1493_v38  ;;  %1252 = vmatmul.mubr.msk.bf16.vlgmr.msra.gmra.mrb[0].mxu0 %vm461_vm0, %v565_v23  ;;  %v564_v27 = vadd.f32 %v1146_v12, %v552_v20  ;;  %v1347_v38 = vld [vmem:[%s1660_s5 + $0x10] sm:$0xff]  }
 0x155   : > { %1284 = vmatpush3.bf16.msra.mxu0 %v1342_v22  ;;  %1255 = vmatprep.mubr.msk.bf16.mxu0 %vm1387_vm1, %v1386_v46  ;;  %v561_v33 = vadd.f32 %v1146_v12, %v549_v29 }
 0x156   : > { %v567_v31 = vpack.c.bf16 %v564_v27, %v563_v26  ;;  %1285 = vmatprep.subr.bf16.mxu0 %v1386_v46  ;;  %v550_v32 = vmul.f32 %v1145_v6, %v538_v25 }
 0x158   : > { %1260 = vmatmul.mubr.msk.bf16.vlgmr.msra.gmra.mrb[0].mxu1 %vm461_vm0, %v567_v31  ;;  %v562_v34 = vadd.f32 %v1146_v12, %v550_v32 }
 0x159   : > { %1264 = vmatpush3.bf16.msra.mxu1 %v1343_v28  ;;  %1286 = vmatpush3.bf16.msra.mxu0 %v1344_v30 }
 0x15a   : > { %1265 = vmatprep.subr.bf16.mxu1 %v1386_v46  ;;  %v566_v37 = vpack.c.bf16 %v562_v34, %v561_v33  ;;  %1287 = vmatprep.subr.bf16.mxu0 %v1386_v46 }
 0x15b   : > { %1271 = vmatprep.mubr.msk.bf16.mxu1 %vm1387_vm1, %v1386_v46 }
 0x15c   : > { %1256 = vmatmul.mubr.msk.bf16.gmra.mrb[4].mxu0 %vm461_vm0, %v566_v37 }
 0x15d   : > { %1266 = vmatpush3.bf16.msra.mxu1 %v1345_v35  ;;  %1288 = vmatpush3.bf16.msra.mxu0 %v1346_v36 }
 0x15e   : > { %1267 = vmatprep.subr.bf16.mxu1 %v1386_v46  ;;  %1289 = vmatprep.subr.bf16.mxu0 %v1386_v46 }
 0x15f   : > { %1291 = vmatprep.mubr.msk.bf16.mxu0 %vm1387_vm1, %v1386_v46 }
 0x161   : > { %1268 = vmatpush3.bf16.msra.mxu1 %v1347_v38  ;;  %1290 = vmatpush3.bf16.msra.mxu0 %v1348_v39 }
 0x162   : > { %1269 = vmatprep.subr.bf16.mxu1 %v1386_v46 }
 0x164   : > { %1292 = vmatmul.mubr.msk.bf16.vlgmr.msra.gmra.mrb[8].mxu0 %vm461_vm0, %v565_v23 }
 0x165   : > { %1270 = vmatpush3.bf16.msra.mxu1 %v1349_v40  ;;  %1295 = vmatprep.mubr.msk.bf16.mxu0 %vm1387_vm1, %v1386_v46 }
 0x168   : > { %1272 = vmatmul.mubr.msk.bf16.vlgmr.msra.gmra.mrb[4].mxu1 %vm461_vm0, %v565_v23 }
 0x169   : > { %1275 = vmatprep.mubr.msk.bf16.mxu1 %vm1387_vm1, %v1386_v46 }
 0x16c   : > { %1296 = vmatmul.mubr.msk.bf16.gmra.mrb[12].mxu0 %vm461_vm0, %v566_v37 }
 0x16d   : > { %1299 = vmatprep.mubr.msk.bf16.mxu0 %vm1387_vm1, %v1386_v46 }
 0x170   : > { %1276 = vmatmul.mubr.msk.bf16.gmra.mrb[8].mxu1 %vm461_vm0, %v566_v37 }
 0x171   : > { %1279 = vmatprep.mubr.msk.bf16.mxu1 %vm1387_vm1, %v1386_v46 }
 0x174   : > { %1300 = vmatmul.mubr.msk.bf16.gmra.mrb[16].mxu0 %vm461_vm0, %v567_v31 }
 0x178   : > { %1280 = vmatmul.mubr.msk.bf16.gmra.mrb[12].mxu1 %vm461_vm0, %v567_v31 }
 0x227   : > { %v650_v42 = vpop.f32.mrb[0].mxu0 }
 0x228   : > { %v651_v43 = vadd.f32 %v1147_v41, %v650_v42  ;;  %v1253_v44 = vpop.f32.mrb[1].mxu0 }
 0x229   : > { %v653_v45 = vpop.f32.mrb[2].mxu0 }
 0x22a   : > { %v1190_v47 = vpack.c.bf16 %v651_v43, %v651_v43  ;;  %v654_v48 = vadd.f32 %v1147_v41, %v653_v45  ;;  %v1254_v46 = vpop.f32.mrb[3].mxu0 }
 0x22b   : > { %v666_v49 = vpop.f32.mrb[0].mxu1 }
 0x22c   : > { %698 = vst.msk [vmem:[%s424_s21] sm:$0xf] %vm697_vm2, %v1190_v47  ;;  %v1191_v50 = vpack.c.bf16 %v654_v48, %v654_v48  ;;  %v667_v51 = vadd.f32 %v1147_v41, %v666_v49  ;;  %v1261_v52 = vpop.f32.mrb[1].mxu1 }
 0x22d   : > { %v669_v53 = vpop.f32.mrb[2].mxu1 }
 0x22e   : > { %699 = vst.msk [vmem:[%s424_s21 + $0x4] sm:$0xf] %vm697_vm2, %v1191_v50  ;;  %v1194_v54 = vpack.c.bf16 %v667_v51, %v667_v51  ;;  %v670_v55 = vadd.f32 %v1147_v41, %v669_v53  ;;  %v1262_v56 = vpop.f32.mrb[3].mxu1 }
 0x22f   : > { %v658_v57 = vpop.f32.mrb[4].mxu0 }
 0x230   : > { %702 = vst.msk [vmem:[%s424_s21 + $0x10] sm:$0xf] %vm697_vm2, %v1194_v54  ;;  %v1195_v58 = vpack.c.bf16 %v670_v55, %v670_v55  ;;  %v659_v59 = vadd.f32 %v1147_v41, %v658_v57  ;;  %v1257_v60 = vpop.f32.mrb[5].mxu0 }
 0x231   : > { %v661_v61 = vpop.f32.mrb[6].mxu0 }
 0x232   : > { %703 = vst.msk [vmem:[%s424_s21 + $0x14] sm:$0xf] %vm697_vm2, %v1195_v58  ;;  %v1192_v62 = vpack.c.bf16 %v659_v59, %v659_v59  ;;  %v662_v63 = vadd.f32 %v1147_v41, %v661_v61  ;;  %v1258_v0 = vpop.f32.mrb[7].mxu0 }
 0x234   : > { %700 = vst.msk [vmem:[%s424_s21 + $0x8] sm:$0xf] %vm697_vm2, %v1192_v62  ;;  %v1193_v1 = vpack.c.bf16 %v662_v63, %v662_v63 }
 0x236   : > { %701 = vst.msk [vmem:[%s424_s21 + $0xc] sm:$0xf] %vm697_vm2, %v1193_v1 }
 0x237   : > { %v896_v3 = vpop.f32.mrb[8].mxu0 }
 0x238   : > { %v897_v4 = vadd.f32 %v1174_v2, %v896_v3  ;;  %v1293_v5 = vpop.f32.mrb[9].mxu0 }
 0x239   : > { %v899_v6 = vpop.f32.mrb[10].mxu0 }
 0x23a   : > { %v1202_v7 = vpack.c.bf16 %v897_v4, %v897_v4  ;;  %v900_v8 = vadd.f32 %v1174_v2, %v899_v6  ;;  %v1294_v9 = vpop.f32.mrb[11].mxu0 }
 0x23b   : > { %v770_v10 = vpop.f32.mrb[4].mxu1 }
 0x23c   : > { %943 = vst.msk [vmem:[%s1614_s26] sm:$0xf] %vm697_vm2, %v1202_v7  ;;  %v1203_v11 = vpack.c.bf16 %v900_v8, %v900_v8  ;;  %v1196_v12 = vpack.c.bf16 %v770_v10, %v770_v10  ;;  %v1273_v13 = vpop.f32.mrb[5].mxu1 }
 0x23d   : > { %v773_v14 = vpop.f32.mrb[6].mxu1 }
 0x23e   : > { %944 = vst.msk [vmem:[%s1614_s26 + $0x4] sm:$0xf] %vm697_vm2, %v1203_v11  ;;  %817 = vst.msk [vmem:[%s1620_s29] sm:$0xf] %vm697_vm2, %v1196_v12  ;;  %v1197_v15 = vpack.c.bf16 %v773_v14, %v773_v14  ;;  %v1274_v16 = vpop.f32.mrb[7].mxu1 }
 0x23f   : > { %v904_v17 = vpop.f32.mrb[12].mxu0 }
 0x240   : > { %818 = vst.msk [vmem:[%s1620_s29 + $0x4] sm:$0xf] %vm697_vm2, %v1197_v15  ;;  %v905_v18 = vadd.f32 %v1174_v2, %v904_v17  ;;  %v1297_v19 = vpop.f32.mrb[13].mxu0 }
 0x241   : > { %v907_v21 = vpop.f32.mrb[14].mxu0 }
 0x242   : > { %v1204_v22 = vpack.c.bf16 %v905_v18, %v905_v18  ;;  %v908_v23 = vadd.f32 %v1174_v2, %v907_v21  ;;  %v1298_v20 = vpop.f32.mrb[15].mxu0 }
 0x243   : > { %v778_v24 = vpop.f32.mrb[8].mxu1 }
 0x244   : > { %945 = vst.msk [vmem:[%s1614_s26 + $0x8] sm:$0xf] %vm697_vm2, %v1204_v22  ;;  %v1205_v25 = vpack.c.bf16 %v908_v23, %v908_v23  ;;  %v1198_v26 = vpack.c.bf16 %v778_v24, %v778_v24  ;;  %v1277_v27 = vpop.f32.mrb[9].mxu1 }
 0x245   : > { %v781_v29 = vpop.f32.mrb[10].mxu1 }
 0x246   : > { %946 = vst.msk [vmem:[%s1614_s26 + $0xc] sm:$0xf] %vm697_vm2, %v1205_v25  ;;  %819 = vst.msk [vmem:[%s1620_s29 + $0x8] sm:$0xf] %vm697_vm2, %v1198_v26  ;;  %v1199_v28 = vpack.c.bf16 %v781_v29, %v781_v29  ;;  %v1278_v30 = vpop.f32.mrb[11].mxu1 }
 0x247   : > { %v912_v31 = vpop.f32.mrb[16].mxu0 }
 0x248   : > { %820 = vst.msk [vmem:[%s1620_s29 + $0xc] sm:$0xf] %vm697_vm2, %v1199_v28  ;;  %v913_v32 = vadd.f32 %v1174_v2, %v912_v31  ;;  %v1301_v33 = vpop.f32.mrb[17].mxu0 }
 0x249   : > { %v915_v34 = vpop.f32.mrb[18].mxu0 }
 0x24a   : > { %v1206_v35 = vpack.c.bf16 %v913_v32, %v913_v32  ;;  %v916_v36 = vadd.f32 %v1174_v2, %v915_v34  ;;  %v1302_v37 = vpop.f32.mrb[19].mxu0 }
 0x24b   : > { %v786_v38 = vpop.f32.mrb[12].mxu1 }
 0x24c   : > { %947 = vst.msk [vmem:[%s1614_s26 + $0x10] sm:$0xf] %vm697_vm2, %v1206_v35  ;;  %v1207_v39 = vpack.c.bf16 %v916_v36, %v916_v36  ;;  %v1200_v40 = vpack.c.bf16 %v786_v38, %v786_v38  ;;  %v1281_v41 = vpop.f32.mrb[13].mxu1 }
 0x24d   : > { %v789_v42 = vpop.f32.mrb[14].mxu1 }
 0x24e   : > { %948 = vst.msk [vmem:[%s1614_s26 + $0x14] sm:$0xf] %vm697_vm2, %v1207_v39  ;;  %821 = vst.msk [vmem:[%s1620_s29 + $0x10] sm:$0xf] %vm697_vm2, %v1200_v40  ;;  %v1201_v43 = vpack.c.bf16 %v789_v42, %v789_v42  ;;  %v1282_v44 = vpop.f32.mrb[15].mxu1 }
 0x250   : > { %822 = vst.msk [vmem:[%s1620_s29 + $0x14] sm:$0xf] %vm697_vm2, %v1201_v43 }
 0x251 PF: > { %s21_s15 = sadd.s32 1, %s1384_s15   ;;  %s1666_s13 = smov %s1380_s14 }
 0x252   : > { %p18_p5 = scmp.ge.s32.totalorder %s21_s15, 4   ;;  %s1667_s14 = smov %s1669_s16 }
 0x254   :  { %20 = sbr.rel (!%p18_p5) target bundleno = 2 (0x2), region = 106 }

// kernel: audio_encoder_forward.12
= control target key start
LH: loop header
LB: loop body
LE: loop exit
PB: predicated region body
PF: predicated region fallthrough
CT: control target
= control target key end

     0   :  { %s2449_s21 = smov 0   ;;  %s2451_s22 = smov 0   ;;  %s2987_s0 = inlined_call_operand.vmem [shape: bf16[2,48,64], index: 0, kind: input, shape index: {}]   ;;  %s2988_s1 = inlined_call_operand.vmem [shape: bf16[2,48,64], index: 1, kind: input, shape index: {}]   ;;  %s2989_s2 = inlined_call_operand.vmem [shape: bf16[2,48,64], index: 2, kind: input, shape index: {}]   ;;  %s2990_s3 = inlined_call_operand.vmem [shape: bf16[2,48,64], index: 3, kind: input, shape index: {}]   ;;  %s2991_s4 = inlined_call_operand.vmem [shape: bf16[64,64], index: 4, kind: input, shape index: {}]   ;;  %s2992_s5 = inlined_call_operand.vmem [shape: f32[1,64], index: 5, kind: input, shape index: {}]   ;;  %s2993_s6 = inlined_call_operand.vmem [shape: bf16[2,48,64], index: 6, kind: output, shape index: {}]  }
   0x1   :  { %s2453_s23 = smov 0  }
   0x2 LB: > { %s28_s24 = sadd.s32 1, %s2400_s22  ;;  %p1892_p0 = scmp.ge.s32.totalorder %s2404_s23, 1  ;;  %s2404_s23 = sphi %s2453_s23, %s16_s23   ;;  %s2400_s22 = sphi %s2451_s22, %s2995_s22   ;;  %s2396_s21 = sphi %s2449_s21, %s2994_s21  }
   0x3   : > { %p30_p1 = scmp.ge.s32.totalorder %s28_s24, 2  ;;  %p270_p2 = scmp.lt.s32.totalorder %s2404_s23, 3 }
   0x5   : > { %s2997_s24 = smov (%p30_p1, %s28_s24), 0  ;;  %p271_p3 = pnand %p1892_p0, %p270_p2 }
   0x6   : > { %p328_p4 = scmp.lt.s32.totalorder (!%p271_p3), %s2396_s21, 1  ;;  %v2406_v0 = vmov (!%p271_p3), 0.0   ;;  %vm2407_vm0 = vmmov (!%p271_p3), 0   ;;  %vm414_vm1 = vcmask (!%p271_p3), 130048   ;;  %v368_v10 = vlaneseq (!%p271_p3)  ;;  %s2408_s11 = smov (!%p271_p3), 112  }
   0x7   : > { %274 = sbr.rel (%p271_p3) target bundleno = 1835 (0x72b), region = 44  ;;  %2049 = vmatprep.subr.bf16.mxu0 (!%p271_p3), %v2406_v0  ;;  %2055 = vmatprep.mubr.msk.bf16.mxu0 (!%p271_p3), %vm2407_vm0, %v2406_v0  ;;  %vm490_vm3 = vcmask (!%p271_p3), 392192   ;;  %s2409_s12 = smov (!%p271_p3), 96   ;;  %vm965_vm4 = vcmask (!%p271_p3), 261248   ;;  %vm1278_vm5 = vcmask (!%p271_p3), 392448   ;;  %vm1591_vm6 = vcmask (!%p271_p3), 523648  }
   0x8   : > { %2067 = vmatprep.subr.bf16.mxu1 (!%p271_p3), %v2406_v0  ;;  %2073 = vmatprep.mubr.msk.bf16.mxu1 (!%p271_p3), %vm2407_vm0, %v2406_v0  ;;  %v369_v11 = vand.u32 (!%p271_p3), 127, %v368_v10  ;;  %s2410_s13 = smov (!%p271_p3), 80   ;;  %s2411_s14 = smov (!%p271_p3), 16   ;;  %vm1655_vm7 = vcmask (!%p271_p3), 523264   ;;  %vm1752_vm8 = vcmask (!%p271_p3), 519168  }
   0x9   : > { %s2412_s19 = smov (!%p271_p3), 32  }
   0xa   : > { %vm370_vm2 = vcmp.ge.s32.totalorder (!%p271_p3), %v369_v11, 45 }
   0xb   : > { %v2509_v12 = vsel (!%p271_p3), %vm370_vm2, -1e+30, %v2406_v0 }
   0xe   : > { %s2999_s21 = smov (!%p328_p4, %s2396_s21), 1 }
   0xf   : > { %s2473_s25 = smul.u32 24, %s2999_s21 }
  0x11   : > { %s2479_s28 = scalar_lea.vmem %s2989_s2, %s2473_s25  ;;  %s2489_s7 = scalar_lea.vmem %s2988_s1, %s2473_s25 }
  0x12   : > { %v2246_v1 = vld [vmem:[%s2479_s28] sm:$0xff]   ;;  %v2247_v2 = vld [vmem:[%s2479_s28 + $0x8] sm:$0xff]   ;;  %v2248_v4 = vld [vmem:[%s2479_s28 + $0x10] sm:$0xff]   ;;  %s2550_s10 = scalar_lea.vmem %s2990_s3, %s2473_s25 }
  0x13   : > { %v425_v3 = vsel %vm414_vm1, %v2246_v1, 0  ;;  %v428_v5 = vsel %vm414_vm1, %v2247_v2, 0  ;;  %v431_v6 = vsel %vm414_vm1, %v2248_v4, 0  ;;  %v2249_v7 = vld [vmem:[%s2489_s7] sm:$0xff]   ;;  %v2250_v8 = vld [vmem:[%s2489_s7 + $0x8] sm:$0xff]   ;;  %v2251_v9 = vld [vmem:[%s2489_s7 + $0x10] sm:$0xff]  }
  0x14   : > { %2050 = vmatpush3.bf16.xpose.msra.mxu0 %v425_v3  ;;  %v2263_v62 = vld [vmem:[%s2550_s10] sm:$0xff]   ;;  %v2266_v63 = vld [vmem:[%s2550_s10 + $0x8] sm:$0xff]   ;;  %v2267_v1 = vld [vmem:[%s2550_s10 + $0x10] sm:$0xff]  }
  0x15   : > { %2051 = vmatprep.subr.bf16.mxu0 %v2406_v0  ;;  %2068 = vmatpush3.bf16.msra.mxu1 %v2263_v62  ;;  %v2252_v2 = vld [vmem:[%s2479_s28 + $0x8] sm:$0xff]   ;;  %v2253_v3 = vld [vmem:[%s2479_s28] sm:$0xff]  }
  0x16   : > { %2069 = vmatprep.subr.bf16.mxu1 %v2406_v0  ;;  %v2255_v4 = vld [vmem:[%s2479_s28] sm:$0xff]   ;;  %v2264_v11 = vld [vmem:[%s2479_s28 + $0x8] sm:$0xff]  }
  0x17   : > { %v2261_v10 = vld [vmem:[%s2479_s28] sm:$0xff]  }
  0x19   : > { %2070 = vmatpush3.bf16.msra.mxu1 %v2266_v63 }
  0x1a   : > { %2071 = vmatprep.subr.bf16.mxu1 %v2406_v0 }
  0x1c   : > { %2052 = vmatpush3.bf16.xpose.msra.mxu0 %v428_v5 }
  0x1d   : > { %2053 = vmatprep.subr.bf16.mxu0 %v2406_v0  ;;  %2072 = vmatpush3.bf16.msra.mxu1 %v2267_v1 }
  0x1e   : > { %2085 = vmatprep.subr.bf16.mxu1 %v2406_v0 }
  0x24   : > { %2054 = vmatpush3.bf16.xpose.msra.mxu0 %v431_v6  ;;  %v2257_v6 = vld [vmem:[%s2479_s28 + $0x8] sm:$0xff]  }
  0x25   : > { %2103 = vmatprep.subr.bf16.mxu0 %v2406_v0 }
  0x2b   : > { %2056 = vmatmul.mubr.msk.bf16.vlgmr.msra.gmra.mrb[0].mxu0 %vm414_vm1, %v2249_v7 }
  0x2c   : > { %2059 = vmatprep.mubr.msk.bf16.mxu0 %vm2407_vm0, %v2406_v0 }
  0x33   : > { %2060 = vmatmul.mubr.msk.bf16.gmra.mrb[4].mxu0 %vm414_vm1, %v2250_v8  ;;  %v2259_v8 = vld [vmem:[%s2479_s28 + $0x10] sm:$0xff]  }
  0x34   : > { %2063 = vmatprep.mubr.msk.bf16.mxu0 %vm2407_vm0, %v2406_v0 }
  0x3b   : > { %2064 = vmatmul.mubr.msk.bf16.gmra.mrb[8].mxu0 %vm414_vm1, %v2251_v9 }
  0x3c   : > { %2109 = vmatprep.mubr.msk.bf16.mxu0 %vm2407_vm0, %v2406_v0 }
  0xfe   : > { %v467_v13 = vpop.f32.mrb[0].mxu0 }
  0xff   : > { %v468_v14 = vadd.f32 %v467_v13, %v2509_v12  ;;  %v2057_v15 = vpop.f32.mrb[1].mxu0  ;;  %v2268_v13 = vld [vmem:[%s2479_s28 + $0x10] sm:$0xff]  }
 0x100   : > { %v470_v16 = vpop.f32.mrb[2].mxu0  ;;  %v2271_v15 = vld [vmem:[%s2489_s7 + $0x8] sm:$0xff]  }
 0x101   : > { %v471_v17 = vadd.f32 %v470_v16, %v2509_v12  ;;  %v2058_v18 = vpop.f32.mrb[3].mxu0  ;;  %v491_v19 = vsel %vm490_vm3, %v468_v14, -inf }
 0x102   : > { %492 = vmax.xlane.f32.xlu0 %v491_v19  ;;  %v2256_v18 = vld [vmem:[%s2489_s7] sm:$0xff]   ;;  %v2258_v19 = vld [vmem:[%s2489_s7 + $0x8] sm:$0xff]  }
 0x103   : > { %v494_v20 = vsel %vm490_vm3, %v471_v17, -inf }
 0x106   : > { %495 = vmax.xlane.f32.xlu0 %v494_v20  ;;  %v475_v21 = vpop.f32.mrb[4].mxu0  ;;  %v2260_v20 = vld [vmem:[%s2489_s7 + $0x10] sm:$0xff]  }
 0x107   : > { %v476_v22 = vadd.f32 %v475_v21, %v2509_v12  ;;  %v2061_v23 = vpop.f32.mrb[5].mxu0  ;;  %v2262_v21 = vld [vmem:[%s2489_s7] sm:$0xff]  }
 0x108   : > { %v478_v24 = vpop.f32.mrb[6].mxu0  ;;  %v2269_v23 = vld [vmem:[%s2489_s7 + $0x10] sm:$0xff]  }
 0x109   : > { %v479_v25 = vadd.f32 %v478_v24, %v2509_v12  ;;  %v2062_v26 = vpop.f32.mrb[7].mxu0  ;;  %v497_v27 = vsel %vm490_vm3, %v476_v22, -inf  ;;  %v2270_v24 = vld [vmem:[%s2489_s7] sm:$0xff]  }
 0x10a   : > { %498 = vmax.xlane.f32.xlu1 %v497_v27 }
 0x10b   : > { %v500_v28 = vsel %vm490_vm3, %v479_v25, -inf }
 0x10e   : > { %501 = vmax.xlane.f32.xlu1 %v500_v28  ;;  %v483_v29 = vpop.f32.mrb[8].mxu0 }
 0x10f   : > { %v484_v30 = vadd.f32 %v483_v29, %v2509_v12  ;;  %v2065_v31 = vpop.f32.mrb[9].mxu0 }
 0x110   : > { %v486_v32 = vpop.f32.mrb[10].mxu0 }
 0x111   : > { %v2521_v33 = vadd.f32 %v486_v32, %v2509_v12  ;;  %v503_v34 = vsel %vm490_vm3, %v484_v30, -inf  ;;  %v2066_v35 = vpop.f32.mrb[11].mxu0 }
 0x112   : > { %504 = vmax.xlane.f32.xlu0 %v503_v34 }
 0x113   : > { %v506_v36 = vsel %vm490_vm3, %v2521_v33, -inf }
 0x114   : > { %507 = vmax.xlane.f32.xlu1 %v506_v36 }
 0x18f   : > { %v493_v37 = vpop.xlane.xlu0 %492 }
 0x190   : > { %v509_v38 = vsub.f32 %v468_v14, %v493_v37 }
 0x192   : > { %v515_v39 = vmul.f32 1.442695, %v509_v38 }
 0x193   : > { %v496_v40 = vpop.xlane.xlu0 %495 }
 0x194   : > { %2286 = vpow2.f32 %v515_v39  ;;  %v510_v41 = vsub.f32 %v471_v17, %v496_v40  ;;  %v2254_v17 = vld [vmem:[%s2479_s28 + $0x10] sm:$0xff]   ;;  %s2413_s28 = smov 48  }
 0x196   : > { %v517_v42 = vmul.f32 1.442695, %v510_v41 }
 0x197   : > { %v499_v43 = vpop.xlane.xlu1 %498 }
 0x198   : > { %2288 = vpow2.f32 %v517_v42  ;;  %v511_v44 = vsub.f32 %v476_v22, %v499_v43  ;;  %v2265_v22 = vld [vmem:[%s2489_s7 + $0x8] sm:$0xff]  }
 0x19a   : > { %v519_v45 = vmul.f32 1.442695, %v511_v44 }
 0x19b   : > { %v502_v46 = vpop.xlane.xlu1 %501 }
 0x19c   : > { %2290 = vpow2.f32 %v519_v45  ;;  %v512_v47 = vsub.f32 %v479_v25, %v502_v46  ;;  %v2272_v25 = vld [vmem:[%s2489_s7 + $0x10] sm:$0xff]   ;;  %s2952_s7 = scalar_lea.vmem %s2987_s0, %s2473_s25 }
 0x19e   : > { %v2526_v48 = vpop.eup %2286  ;;  %v521_v49 = vmul.f32 1.442695, %v512_v47 }
 0x19f   : > { %v505_v50 = vpop.xlane.xlu0 %504  ;;  %v527_v51 = vsel %vm490_vm3, %v2526_v48, 0.0 }
 0x1a0   : > { %2292 = vpow2.f32 %v521_v49  ;;  %v513_v52 = vsub.f32 %v484_v30, %v505_v50  ;;  %528 = vadd.xlane.f32.xlu0 %v527_v51 }
 0x1a1   : > { %v508_v5 = vpop.xlane.xlu1 %507 }
 0x1a2   : > { %v2530_v53 = vpop.eup %2288  ;;  %v523_v54 = vmul.f32 1.442695, %v513_v52  ;;  %v514_v7 = vsub.f32 %v2521_v33, %v508_v5 }
 0x1a3   : > { %v530_v55 = vsel %vm490_vm3, %v2530_v53, 0.0 }
 0x1a4   : > { %2294 = vpow2.f32 %v523_v54  ;;  %531 = vadd.xlane.f32.xlu1 %v530_v55  ;;  %v525_v9 = vmul.f32 1.442695, %v514_v7  ;;  %v2275_v7 = vld [vmem:[%s2550_s10 + $0x10] sm:$0xff]  }
 0x1a6   : > { %v2534_v56 = vpop.eup %2290  ;;  %2296 = vpow2.f32 %v525_v9 }
 0x1a7   : > { %v533_v57 = vsel %vm490_vm3, %v2534_v56, 0.0 }
 0x1a8   : > { %534 = vadd.xlane.f32.xlu0 %v533_v57 }
 0x1aa   : > { %v2538_v58 = vpop.eup %2292 }
 0x1ab   : > { %v536_v59 = vsel %vm490_vm3, %v2538_v58, 0.0 }
 0x1ac   : > { %537 = vadd.xlane.f32.xlu1 %v536_v59 }
 0x1ae   : > { %v2542_v60 = vpop.eup %2294 }
 0x1af   : > { %v539_v61 = vsel %vm490_vm3, %v2542_v60, 0.0 }
 0x1b0   : > { %540 = vadd.xlane.f32.xlu0 %v539_v61  ;;  %v2574_v14 = vpop.eup %2296 }
 0x1b1   : > { %v542_v16 = vsel %vm490_vm3, %v2574_v14, 0.0 }
 0x1bd   : > { %706 = vrot.lane.b32.xlu1 %v2252_v2, %s2408_s11 }
 0x1c6   : > { %704 = vrot.lane.b32.xlu0 %v2253_v3, %s2408_s11  ;;  %v2273_v3 = vld [vmem:[%s2550_s10] sm:$0xff]  }
 0x1ca   : > { %1017 = vrot.lane.b32.xlu0 %v2255_v4, %s2409_s12  ;;  %v2274_v4 = vld [vmem:[%s2550_s10 + $0x8] sm:$0xff]  }
 0x1ce   : > { %1019 = vrot.lane.b32.xlu0 %v2257_v6, %s2409_s12 }
 0x1d2   : > { %1021 = vrot.lane.b32.xlu0 %v2259_v8, %s2409_s12 }
 0x1d6   : > { %1330 = vrot.lane.b32.xlu0 %v2261_v10, %s2410_s13 }
 0x1da   : > { %1332 = vrot.lane.b32.xlu0 %v2264_v11, %s2410_s13 }
 0x1de   : > { %1334 = vrot.lane.b32.xlu0 %v2268_v13, %s2410_s13 }
 0x1e1   : > { %543 = vadd.xlane.f32.xlu1 %v542_v16 }
 0x1e2   : > { %1311 = vrot.lane.b32.xlu0 %v2271_v15, %s2410_s13 }
 0x1e6   : > { %875 = vrot.lane.b32.xlu0 %v2273_v3, %s2408_s11 }
 0x1ea   : > { %879 = vrot.lane.b32.xlu0 %v2275_v7, %s2408_s11 }
 0x1f2   : > { %708 = vrot.lane.b32.xlu1 %v2254_v17, %s2408_s11 }
 0x1f6   : > { %683 = vrot.lane.b32.xlu1 %v2256_v18, %s2408_s11 }
 0x1fa   : > { %685 = vrot.lane.b32.xlu1 %v2258_v19, %s2408_s11 }
 0x1fe   : > { %687 = vrot.lane.b32.xlu1 %v2260_v20, %s2408_s11 }
 0x202   : > { %996 = vrot.lane.b32.xlu1 %v2262_v21, %s2409_s12 }
 0x206   : > { %998 = vrot.lane.b32.xlu1 %v2265_v22, %s2409_s12 }
 0x20a   : > { %1000 = vrot.lane.b32.xlu1 %v2269_v23, %s2409_s12 }
 0x20e   : > { %1309 = vrot.lane.b32.xlu1 %v2270_v24, %s2410_s13 }
 0x212   : > { %1313 = vrot.lane.b32.xlu1 %v2272_v25, %s2410_s13 }
 0x216   : > { %877 = vrot.lane.b32.xlu1 %v2274_v4, %s2408_s11 }
 0x22d   : > { %v529_v26 = vpop.xlane.xlu0 %528 }
 0x22e   : > { %2298 = vrcp.f32 %v529_v26 }
 0x231   : > { %v532_v27 = vpop.xlane.xlu1 %531 }
 0x232   : > { %2300 = vrcp.f32 %v532_v27 }
 0x235   : > { %v535_v28 = vpop.xlane.xlu0 %534 }
 0x236   : > { %2302 = vrcp.f32 %v535_v28 }
 0x238   : > { %v2299_v30 = vpop.eup %2298 }
 0x239   : > { %v538_v29 = vpop.xlane.xlu1 %537  ;;  %v551_v33 = vmul.f32 %v2299_v30, %v2526_v48 }
 0x23a   : > { %2304 = vrcp.f32 %v538_v29 }
 0x23c   : > { %v2301_v31 = vpop.eup %2300 }
 0x23d   : > { %v541_v32 = vpop.xlane.xlu0 %540  ;;  %v552_v34 = vmul.f32 %v2301_v31, %v2530_v53  ;;  %v707_v42 = vpop.permute.xlu1 %706 }
 0x23e   : > { %v723_v44 = vsel %vm414_vm1, %v707_v42, 0  ;;  %2306 = vrcp.f32 %v541_v32 }
 0x23f   : > { %v557_v35 = vpack.c.bf16 %v552_v34, %v551_v33 }
 0x240   : > { %v2303_v37 = vpop.eup %2302 }
 0x241   : > { %v705_v36 = vpop.permute.xlu0 %704  ;;  %2074 = vmatmul.mubr.msk.bf16.vlgmr.msra.gmra.mrb[0].mxu1 %vm490_vm3, %v557_v35  ;;  %v553_v40 = vmul.f32 %v2303_v37, %v2534_v56 }
 0x242   : > { %v720_v38 = vsel %vm414_vm1, %v705_v36, 0  ;;  %2077 = vmatprep.mubr.msk.bf16.mxu1 %vm2407_vm0, %v2406_v0 }
 0x243   : > { %2086 = vmatpush3.bf16.xpose.msra.mxu1 %v720_v38 }
 0x244   : > { %v2305_v39 = vpop.eup %2304  ;;  %2087 = vmatprep.subr.bf16.mxu1 %v2406_v0 }
 0x245   : > { %v554_v41 = vmul.f32 %v2305_v39, %v2538_v58  ;;  %v1018_v53 = vpop.permute.xlu0 %1017 }
 0x246   : > { %v1033_v55 = vsel %vm414_vm1, %v1018_v53, 0 }
 0x247   : > { %v558_v43 = vpack.c.bf16 %v554_v41, %v553_v40 }
 0x248   : > { %v2307_v48 = vpop.eup %2306 }
 0x249   : > { %2078 = vmatmul.mubr.msk.bf16.gmra.mrb[4].mxu1 %vm490_vm3, %v558_v43  ;;  %v555_v50 = vmul.f32 %v2307_v48, %v2542_v60  ;;  %v1020_v56 = vpop.permute.xlu0 %1019 }
 0x24a   : > { %2081 = vmatprep.mubr.msk.bf16.mxu1 %vm2407_vm0, %v2406_v0  ;;  %v1036_v58 = vsel %vm414_vm1, %v1020_v56, 0 }
 0x24b   : > { %2088 = vmatpush3.bf16.xpose.msra.mxu1 %v723_v44 }
 0x24c   : > { %2089 = vmatprep.subr.bf16.mxu1 %v2406_v0 }
 0x24d   : > { %v1022_v59 = vpop.permute.xlu0 %1021 }
 0x24e   : > { %v1039_v61 = vsel %vm414_vm1, %v1022_v59, 0 }
 0x251   : > { %v1331_v62 = vpop.permute.xlu0 %1330 }
 0x252   : > { %v1346_v1 = vsel %vm414_vm1, %v1331_v62, 0 }
 0x255   : > { %v1333_v2 = vpop.permute.xlu0 %1332 }
 0x256   : > { %v1349_v6 = vsel %vm414_vm1, %v1333_v2, 0 }
 0x259   : > { %v1335_v8 = vpop.permute.xlu0 %1334 }
 0x25a   : > { %v1352_v10 = vsel %vm414_vm1, %v1335_v8, 0 }
 0x25d   : > { %v1312_v13 = vpop.permute.xlu0 %1311 }
 0x261   : > { %v876_v25 = vpop.permute.xlu0 %875 }
 0x262   : > { %2104 = vmatpush3.bf16.msra.mxu0 %v876_v25 }
 0x263   : > { %2105 = vmatprep.subr.bf16.mxu0 %v2406_v0 }
 0x265   : > { %v880_v27 = vpop.permute.xlu0 %879 }
 0x26e   : > { %v544_v45 = vpop.xlane.xlu1 %543 }
 0x26f   : > { %2308 = vrcp.f32 %v544_v45 }
 0x272   : > { %v709_v46 = vpop.permute.xlu1 %708 }
 0x273   : > { %v726_v47 = vsel %vm414_vm1, %v709_v46, 0 }
 0x274   : > { %2090 = vmatpush3.bf16.xpose.msra.mxu1 %v726_v47 }
 0x275   : > { %2121 = vmatprep.subr.bf16.mxu1 %v2406_v0 }
 0x276   : > { %v684_v54 = vpop.permute.xlu1 %683 }
 0x279   : > { %v2309_v49 = vpop.eup %2308 }
 0x27a   : > { %v556_v51 = vmul.f32 %v2309_v49, %v2574_v14  ;;  %v686_v57 = vpop.permute.xlu1 %685 }
 0x27c   : > { %v559_v52 = vpack.c.bf16 %v556_v51, %v555_v50 }
 0x27e   : > { %2082 = vmatmul.mubr.msk.bf16.gmra.mrb[8].mxu1 %vm490_vm3, %v559_v52  ;;  %v688_v60 = vpop.permute.xlu1 %687 }
 0x27f   : > { %2091 = vmatprep.mubr.msk.bf16.mxu1 %vm2407_vm0, %v2406_v0 }
 0x282   : > { %v997_v63 = vpop.permute.xlu1 %996 }
 0x286   : > { %2092 = vmatmul.mubr.msk.bf16.vlgmr.msra.gmra.mrb[12].mxu1 %vm414_vm1, %v684_v54  ;;  %v999_v5 = vpop.permute.xlu1 %998 }
 0x287   : > { %2122 = vmatpush3.bf16.xpose.msra.mxu1 %v1033_v55  ;;  %2095 = vmatprep.mubr.msk.bf16.mxu1 %vm2407_vm0, %v2406_v0 }
 0x288   : > { %2123 = vmatprep.subr.bf16.mxu1 %v2406_v0 }
 0x28a   : > { %v1001_v9 = vpop.permute.xlu1 %1000 }
 0x28e   : > { %2096 = vmatmul.mubr.msk.bf16.gmra.mrb[16].mxu1 %vm414_vm1, %v686_v57  ;;  %v1310_v11 = vpop.permute.xlu1 %1309 }
 0x28f   : > { %2124 = vmatpush3.bf16.xpose.msra.mxu1 %v1036_v58  ;;  %2099 = vmatprep.mubr.msk.bf16.mxu1 %vm2407_vm0, %v2406_v0 }
 0x290   : > { %2125 = vmatprep.subr.bf16.mxu1 %v2406_v0 }
 0x292   : > { %v1314_v14 = vpop.permute.xlu1 %1313 }
 0x296   : > { %2100 = vmatmul.mubr.msk.bf16.gmra.mrb[20].mxu1 %vm414_vm1, %v688_v60  ;;  %v878_v26 = vpop.permute.xlu1 %877 }
 0x297   : > { %2126 = vmatpush3.bf16.xpose.msra.mxu1 %v1039_v61  ;;  %2127 = vmatprep.mubr.msk.bf16.mxu1 %vm2407_vm0, %v2406_v0 }
 0x298   : > { %2157 = vmatprep.subr.bf16.mxu1 %v2406_v0  ;;  %2106 = vmatpush3.bf16.msra.mxu0 %v878_v26 }
 0x299   : > { %2107 = vmatprep.subr.bf16.mxu0 %v2406_v0 }
 0x29c   : > { %2108 = vmatpush3.bf16.msra.mxu0 %v880_v27 }
 0x29d   : > { %2139 = vmatprep.subr.bf16.mxu0 %v2406_v0 }
 0x29e   : > { %2128 = vmatmul.mubr.msk.bf16.vlgmr.msra.gmra.mrb[24].mxu1 %vm414_vm1, %v997_v63 }
 0x29f   : > { %2158 = vmatpush3.bf16.xpose.msra.mxu1 %v1346_v1  ;;  %2131 = vmatprep.mubr.msk.bf16.mxu1 %vm2407_vm0, %v2406_v0 }
 0x2a0   : > { %2159 = vmatprep.subr.bf16.mxu1 %v2406_v0 }
 0x2a6   : > { %2132 = vmatmul.mubr.msk.bf16.gmra.mrb[28].mxu1 %vm414_vm1, %v999_v5 }
 0x2a7   : > { %2160 = vmatpush3.bf16.xpose.msra.mxu1 %v1349_v6  ;;  %2135 = vmatprep.mubr.msk.bf16.mxu1 %vm2407_vm0, %v2406_v0 }
 0x2a8   : > { %2161 = vmatprep.subr.bf16.mxu1 %v2406_v0 }
 0x2ae   : > { %2136 = vmatmul.mubr.msk.bf16.gmra.mrb[32].mxu1 %vm414_vm1, %v1001_v9 }
 0x2af   : > { %2162 = vmatpush3.bf16.xpose.msra.mxu1 %v1352_v10  ;;  %2163 = vmatprep.mubr.msk.bf16.mxu1 %vm2407_vm0, %v2406_v0 }
 0x2b0   : > { %2193 = vmatprep.subr.bf16.mxu1 %v2406_v0 }
 0x2b6   : > { %2164 = vmatmul.mubr.msk.bf16.vlgmr.msra.gmra.mrb[36].mxu1 %vm414_vm1, %v1310_v11 }
 0x2b7   : > { %2167 = vmatprep.mubr.msk.bf16.mxu1 %vm2407_vm0, %v2406_v0 }
 0x2be   : > { %2168 = vmatmul.mubr.msk.bf16.gmra.mrb[40].mxu1 %vm414_vm1, %v1312_v13 }
 0x2bf   : > { %2171 = vmatprep.mubr.msk.bf16.mxu1 %vm2407_vm0, %v2406_v0 }
 0x2c6   : > { %2172 = vmatmul.mubr.msk.bf16.gmra.mrb[44].mxu1 %vm414_vm1, %v1314_v14 }
 0x2c7   : > { %2201 = vmatprep.mubr.msk.bf16.mxu1 %vm2407_vm0, %v2406_v0 }
 0x314   : > { %v627_v15 = vpop.f32.mrb[0].mxu1 }
 0x315   : > { %v2075_v16 = vpop.f32.mrb[1].mxu1 }
 0x316   : > { %v630_v17 = vpop.f32.mrb[2].mxu1 }
 0x317   : > { %v650_v18 = vpack.c.bf16 %v630_v17, %v627_v15  ;;  %v2076_v19 = vpop.f32.mrb[3].mxu1 }
 0x319   : > { %653 = vst.msk [vmem:[#allocation2] sm:$0xff] %vm414_vm1, %v650_v18 }
 0x31c   : > { %v635_v20 = vpop.f32.mrb[4].mxu1 }
 0x31d   : > { %v2079_v21 = vpop.f32.mrb[5].mxu1 }
 0x31e   : > { %v638_v22 = vpop.f32.mrb[6].mxu1 }
 0x31f   : > { %v651_v23 = vpack.c.bf16 %v638_v22, %v635_v20  ;;  %v2080_v24 = vpop.f32.mrb[7].mxu1 }
 0x321   : > { %654 = vst.msk [vmem:[#allocation2 + $0x8] sm:$0xff] %vm414_vm1, %v651_v23 }
 0x351   : > { %v643_v28 = vpop.f32.mrb[8].mxu1 }
 0x352   : > { %v2083_v29 = vpop.f32.mrb[9].mxu1 }
 0x353   : > { %v646_v30 = vpop.f32.mrb[10].mxu1 }
 0x354   : > { %v652_v31 = vpack.c.bf16 %v646_v30, %v643_v28  ;;  %v2084_v32 = vpop.f32.mrb[11].mxu1 }
 0x356   : > { %655 = vst.msk [vmem:[#allocation2 + $0x10] sm:$0xff] %vm414_vm1, %v652_v31 }
 0x359   : > { %v762_v33 = vpop.f32.mrb[12].mxu1 }
 0x35a   : > { %v2672_v34 = vadd.f32 %v762_v33, %v2509_v12  ;;  %v2093_v35 = vpop.f32.mrb[13].mxu1 }
 0x35b   : > { %v765_v36 = vpop.f32.mrb[14].mxu1 }
 0x35c   : > { %v2675_v37 = vadd.f32 %v765_v36, %v2509_v12  ;;  %v2094_v38 = vpop.f32.mrb[15].mxu1  ;;  %v785_v39 = vsel %vm490_vm3, %v2672_v34, -inf }
 0x35d   : > { %786 = vmax.xlane.f32.xlu0 %v785_v39 }
 0x35e   : > { %v788_v40 = vsel %vm490_vm3, %v2675_v37, -inf }
 0x35f   : > { %789 = vmax.xlane.f32.xlu1 %v788_v40 }
 0x361   : > { %v770_v41 = vpop.f32.mrb[16].mxu1 }
 0x362   : > { %v2682_v42 = vadd.f32 %v770_v41, %v2509_v12  ;;  %v2097_v43 = vpop.f32.mrb[17].mxu1 }
 0x363   : > { %v773_v44 = vpop.f32.mrb[18].mxu1 }
 0x364   : > { %v2685_v45 = vadd.f32 %v773_v44, %v2509_v12  ;;  %v2098_v46 = vpop.f32.mrb[19].mxu1  ;;  %v791_v47 = vsel %vm490_vm3, %v2682_v42, -inf }
 0x365   : > { %792 = vmax.xlane.f32.xlu0 %v791_v47  ;;  %v2276_v47 = vld [vmem:[%s2550_s10] sm:$0xff]  }
 0x366   : > { %v794_v48 = vsel %vm490_vm3, %v2685_v45, -inf }
 0x369   : > { %795 = vmax.xlane.f32.xlu0 %v794_v48  ;;  %v778_v49 = vpop.f32.mrb[20].mxu1  ;;  %v2277_v48 = vld [vmem:[%s2550_s10 + $0x8] sm:$0xff]  }
 0x36a   : > { %v2692_v50 = vadd.f32 %v778_v49, %v2509_v12  ;;  %v2101_v51 = vpop.f32.mrb[21].mxu1 }
 0x36b   : > { %v781_v52 = vpop.f32.mrb[22].mxu1 }
 0x36c   : > { %v2695_v53 = vadd.f32 %v781_v52, %v2509_v12  ;;  %v2102_v54 = vpop.f32.mrb[23].mxu1  ;;  %v797_v55 = vsel %vm490_vm3, %v2692_v50, -inf }
 0x36d   : > { %798 = vmax.xlane.f32.xlu0 %v797_v55 }
 0x36e   : > { %v800_v56 = vsel %vm490_vm3, %v2695_v53, -inf }
 0x36f   : > { %801 = vmax.xlane.f32.xlu1 %v800_v56 }
 0x371   : > { %v1075_v57 = vpop.f32.mrb[24].mxu1 }
 0x372   : > { %v2702_v58 = vadd.f32 %v1075_v57, %v2509_v12  ;;  %v2129_v59 = vpop.f32.mrb[25].mxu1 }
 0x373   : > { %v1078_v60 = vpop.f32.mrb[26].mxu1 }
 0x374   : > { %v2705_v61 = vadd.f32 %v1078_v60, %v2509_v12  ;;  %v2130_v62 = vpop.f32.mrb[27].mxu1  ;;  %v1098_v63 = vsel %vm490_vm3, %v2702_v58, -inf }
 0x375   : > { %1099 = vmax.xlane.f32.xlu0 %v1098_v63 }
 0x376   : > { %v1101_v1 = vsel %vm490_vm3, %v2705_v61, -inf }
 0x377   : > { %1102 = vmax.xlane.f32.xlu1 %v1101_v1 }
 0x379   : > { %v1083_v2 = vpop.f32.mrb[28].mxu1 }
 0x37a   : > { %v2712_v3 = vadd.f32 %v1083_v2, %v2509_v12  ;;  %v2133_v4 = vpop.f32.mrb[29].mxu1 }
 0x37b   : > { %v1086_v5 = vpop.f32.mrb[30].mxu1 }
 0x37c   : > { %v2715_v6 = vadd.f32 %v1086_v5, %v2509_v12  ;;  %v2134_v7 = vpop.f32.mrb[31].mxu1  ;;  %v1104_v8 = vsel %vm490_vm3, %v2712_v3, -inf }
 0x37d   : > { %1105 = vmax.xlane.f32.xlu0 %v1104_v8 }
 0x37e   : > { %v1107_v9 = vsel %vm490_vm3, %v2715_v6, -inf }
 0x37f   : > { %1108 = vmax.xlane.f32.xlu1 %v1107_v9 }
 0x381   : > { %v1091_v10 = vpop.f32.mrb[32].mxu1 }
 0x382   : > { %v2722_v11 = vadd.f32 %v1091_v10, %v2509_v12  ;;  %v2137_v13 = vpop.f32.mrb[33].mxu1 }
 0x383   : > { %v1094_v14 = vpop.f32.mrb[34].mxu1 }
 0x384   : > { %v2725_v15 = vadd.f32 %v1094_v14, %v2509_v12  ;;  %v2138_v16 = vpop.f32.mrb[35].mxu1  ;;  %v1110_v17 = vsel %vm490_vm3, %v2722_v11, -inf }
 0x385   : > { %1111 = vmax.xlane.f32.xlu0 %v1110_v17 }
 0x386   : > { %v1113_v18 = vsel %vm490_vm3, %v2725_v15, -inf }
 0x387   : > { %1114 = vmax.xlane.f32.xlu1 %v1113_v18 }
 0x389   : > { %v1388_v19 = vpop.f32.mrb[36].mxu1 }
 0x38a   : > { %v2732_v20 = vadd.f32 %v1388_v19, %v2509_v12  ;;  %v2165_v21 = vpop.f32.mrb[37].mxu1 }
 0x38b   : > { %v1391_v22 = vpop.f32.mrb[38].mxu1 }
 0x38c   : > { %v2735_v23 = vadd.f32 %v1391_v22, %v2509_v12  ;;  %v2166_v24 = vpop.f32.mrb[39].mxu1  ;;  %v1411_v25 = vsel %vm490_vm3, %v2732_v20, -inf }
 0x38d   : > { %1412 = vmax.xlane.f32.xlu0 %v1411_v25 }
 0x38e   : > { %v1414_v26 = vsel %vm490_vm3, %v2735_v23, -inf }
 0x38f   : > { %1415 = vmax.xlane.f32.xlu1 %v1414_v26 }
 0x391   : > { %v1396_v27 = vpop.f32.mrb[40].mxu1 }
 0x392   : > { %v2742_v28 = vadd.f32 %v1396_v27, %v2509_v12  ;;  %v2169_v29 = vpop.f32.mrb[41].mxu1 }
 0x393   : > { %v1399_v30 = vpop.f32.mrb[42].mxu1 }
 0x394   : > { %v2745_v31 = vadd.f32 %v1399_v30, %v2509_v12  ;;  %v1417_v32 = vsel %vm490_vm3, %v2742_v28, -inf  ;;  %v2170_v33 = vpop.f32.mrb[43].mxu1 }
 0x395   : > { %1418 = vmax.xlane.f32.xlu0 %v1417_v32 }
 0x396   : > { %v1420_v35 = vsel %vm490_vm3, %v2745_v31, -inf }
 0x397   : > { %1421 = vmax.xlane.f32.xlu1 %v1420_v35 }
 0x399   : > { %v1404_v36 = vpop.f32.mrb[44].mxu1 }
 0x39a   : > { %v2752_v38 = vadd.f32 %v1404_v36, %v2509_v12  ;;  %v2173_v39 = vpop.f32.mrb[45].mxu1 }
 0x39b   : > { %v1407_v40 = vpop.f32.mrb[46].mxu1 }
 0x39c   : > { %v2755_v41 = vadd.f32 %v1407_v40, %v2509_v12  ;;  %v1423_v43 = vsel %vm490_vm3, %v2752_v38, -inf  ;;  %v2174_v44 = vpop.f32.mrb[47].mxu1 }
 0x39d   : > { %1424 = vmax.xlane.f32.xlu0 %v1423_v43 }
 0x39e   : > { %v1426_v46 = vsel %vm490_vm3, %v2755_v41, -inf }
 0x39f   : > { %1427 = vmax.xlane.f32.xlu1 %v1426_v46 }
 0x3b0   : > { %1188 = vrot.lane.b32.xlu1 %v2276_v47, %s2409_s12 }
 0x3b3   : > { %1190 = vrot.lane.b32.xlu0 %v2277_v48, %s2409_s12 }
 0x3ea   : > { %v787_v49 = vpop.xlane.xlu0 %786 }
 0x3eb   : > { %v803_v51 = vsub.f32 %v2672_v34, %v787_v49 }
 0x3ec   : > { %v790_v12 = vpop.xlane.xlu1 %789 }
 0x3ed   : > { %v809_v52 = vmul.f32 1.442695, %v803_v51  ;;  %v804_v54 = vsub.f32 %v2675_v37, %v790_v12 }
 0x3ef   : > { %2310 = vpow2.f32 %v809_v52  ;;  %v811_v55 = vmul.f32 1.442695, %v804_v54 }
 0x3f1   : > { %2312 = vpow2.f32 %v811_v55 }
 0x3f2   : > { %v793_v56 = vpop.xlane.xlu0 %792 }
 0x3f3   : > { %v805_v57 = vsub.f32 %v2682_v42, %v793_v56 }
 0x3f5   : > { %v813_v59 = vmul.f32 1.442695, %v805_v57 }
 0x3f6   : > { %v796_v60 = vpop.xlane.xlu0 %795 }
 0x3f7   : > { %2314 = vpow2.f32 %v813_v59  ;;  %v806_v62 = vsub.f32 %v2685_v45, %v796_v60 }
 0x3f9   : > { %v2769_v63 = vpop.eup %2310  ;;  %v815_v1 = vmul.f32 1.442695, %v806_v62 }
 0x3fa   : > { %v799_v2 = vpop.xlane.xlu0 %798  ;;  %v821_v34 = vsel %vm490_vm3, %v2769_v63, 0.0 }
 0x3fb   : > { %v2773_v4 = vpop.eup %2312  ;;  %2316 = vpow2.f32 %v815_v1  ;;  %v807_v37 = vsub.f32 %v2692_v50, %v799_v2  ;;  %822 = vadd.xlane.f32.xlu0 %v821_v34 }
 0x3fc   : > { %v802_v5 = vpop.xlane.xlu1 %801  ;;  %v824_v42 = vsel %vm490_vm3, %v2773_v4, 0.0 }
 0x3fd   : > { %v817_v7 = vmul.f32 1.442695, %v807_v37  ;;  %v808_v45 = vsub.f32 %v2695_v53, %v802_v5  ;;  %825 = vadd.xlane.f32.xlu1 %v824_v42 }
 0x3ff   : > { %2318 = vpow2.f32 %v817_v7  ;;  %v819_v8 = vmul.f32 1.442695, %v808_v45 }
 0x401   : > { %v2779_v9 = vpop.eup %2314  ;;  %2320 = vpow2.f32 %v819_v8 }
 0x402   : > { %v1100_v10 = vpop.xlane.xlu0 %1099  ;;  %v827_v13 = vsel %vm490_vm3, %v2779_v9, 0.0 }
 0x403   : > { %v1116_v50 = vsub.f32 %v2702_v58, %v1100_v10  ;;  %828 = vadd.xlane.f32.xlu0 %v827_v13 }
 0x404   : > { %v1103_v14 = vpop.xlane.xlu1 %1102 }
 0x405   : > { %v2784_v16 = vpop.eup %2316  ;;  %v1122_v17 = vmul.f32 1.442695, %v1116_v50  ;;  %v1117_v18 = vsub.f32 %v2705_v61, %v1103_v14  ;;  %v2278_v14 = vld [vmem:[%s2550_s10 + $0x10] sm:$0xff]  }
 0x406   : > { %v830_v53 = vsel %vm490_vm3, %v2784_v16, 0.0 }
 0x407   : > { %2322 = vpow2.f32 %v1122_v17  ;;  %v1124_v19 = vmul.f32 1.442695, %v1117_v18  ;;  %831 = vadd.xlane.f32.xlu1 %v830_v53  ;;  %v2279_v18 = vld [vmem:[%s2550_s10] sm:$0xff]  }
 0x409   : > { %v2789_v21 = vpop.eup %2318  ;;  %2324 = vpow2.f32 %v1124_v19  ;;  %v2280_v19 = vld [vmem:[%s2550_s10 + $0x8] sm:$0xff]  }
 0x40a   : > { %v1106_v22 = vpop.xlane.xlu0 %1105  ;;  %v833_v58 = vsel %vm490_vm3, %v2789_v21, 0.0 }
 0x40b   : > { %v2793_v24 = vpop.eup %2320  ;;  %v1118_v25 = vsub.f32 %v2712_v3, %v1106_v22  ;;  %834 = vadd.xlane.f32.xlu0 %v833_v58  ;;  %v2281_v58 = vld [vmem:[%s2550_s10 + $0x10] sm:$0xff]  }
 0x40c   : > { %v1109_v26 = vpop.xlane.xlu1 %1108  ;;  %v836_v61 = vsel %vm490_vm3, %v2793_v24, 0.0 }
 0x40d   : > { %v1126_v27 = vmul.f32 1.442695, %v1118_v25  ;;  %v1119_v29 = vsub.f32 %v2715_v6, %v1109_v26  ;;  %837 = vadd.xlane.f32.xlu1 %v836_v61 }
 0x40f   : > { %2326 = vpow2.f32 %v1126_v27  ;;  %v1128_v30 = vmul.f32 1.442695, %v1119_v29 }
 0x411   : > { %v2799_v32 = vpop.eup %2322  ;;  %2328 = vpow2.f32 %v1128_v30 }
 0x412   : > { %v1112_v33 = vpop.xlane.xlu0 %1111  ;;  %v1134_v35 = vsel %vm490_vm3, %v2799_v32, 0.0 }
 0x413   : > { %v2803_v36 = vpop.eup %2324  ;;  %v1120_v3 = vsub.f32 %v2722_v11, %v1112_v33  ;;  %1135 = vadd.xlane.f32.xlu1 %v1134_v35 }
 0x414   : > { %v1115_v39 = vpop.xlane.xlu1 %1114  ;;  %v1137_v40 = vsel %vm490_vm3, %v2803_v36, 0.0 }
 0x415   : > { %v1130_v6 = vmul.f32 1.442695, %v1120_v3  ;;  %v1121_v43 = vsub.f32 %v2725_v15, %v1115_v39  ;;  %1138 = vadd.xlane.f32.xlu0 %v1137_v40 }
 0x417   : > { %2330 = vpow2.f32 %v1130_v6  ;;  %v1132_v44 = vmul.f32 1.442695, %v1121_v43 }
 0x419   : > { %v2809_v46 = vpop.eup %2326  ;;  %2332 = vpow2.f32 %v1132_v44 }
 0x41a   : > { %v1413_v47 = vpop.xlane.xlu0 %1412  ;;  %v1140_v48 = vsel %vm490_vm3, %v2809_v46, 0.0 }
 0x41b   : > { %v2813_v49 = vpop.eup %2328  ;;  %v1429_v11 = vsub.f32 %v2732_v20, %v1413_v47  ;;  %1141 = vadd.xlane.f32.xlu1 %v1140_v48 }
 0x41c   : > { %v1416_v51 = vpop.xlane.xlu1 %1415  ;;  %v1143_v15 = vsel %vm490_vm3, %v2813_v49, 0.0 }
 0x41d   : > { %v1435_v12 = vmul.f32 1.442695, %v1429_v11  ;;  %v1430_v52 = vsub.f32 %v2735_v23, %v1416_v51 }
 0x41f   : > { %2334 = vpow2.f32 %v1435_v12  ;;  %v1437_v54 = vmul.f32 1.442695, %v1430_v52  ;;  %1144 = vadd.xlane.f32.xlu1 %v1143_v15 }
 0x421   : > { %v2819_v55 = vpop.eup %2330  ;;  %2336 = vpow2.f32 %v1437_v54 }
 0x422   : > { %v1419_v56 = vpop.xlane.xlu0 %1418  ;;  %v1146_v57 = vsel %vm490_vm3, %v2819_v55, 0.0 }
 0x423   : > { %v2823_v59 = vpop.eup %2332  ;;  %v1431_v20 = vsub.f32 %v2742_v28, %v1419_v56  ;;  %1147 = vadd.xlane.f32.xlu1 %v1146_v57 }
 0x424   : > { %v1422_v60 = vpop.xlane.xlu1 %1421  ;;  %v1149_v1 = vsel %vm490_vm3, %v2823_v59, 0.0 }
 0x425   : > { %v1439_v23 = vmul.f32 1.442695, %v1431_v20  ;;  %v1432_v62 = vsub.f32 %v2745_v31, %v1422_v60 }
 0x427   : > { %2338 = vpow2.f32 %v1439_v23  ;;  %v1441_v2 = vmul.f32 1.442695, %v1432_v62  ;;  %1150 = vadd.xlane.f32.xlu1 %v1149_v1 }
 0x429   : > { %v2829_v34 = vpop.eup %2334  ;;  %2340 = vpow2.f32 %v1441_v2 }
 0x42a   : > { %v1425_v37 = vpop.xlane.xlu0 %1424  ;;  %v1447_v5 = vsel %vm490_vm3, %v2829_v34, 0.0 }
 0x42b   : > { %v2833_v42 = vpop.eup %2336  ;;  %v1433_v28 = vsub.f32 %v2752_v38, %v1425_v37  ;;  %1448 = vadd.xlane.f32.xlu0 %v1447_v5 }
 0x42c   : > { %v1450_v31 = vsel %vm490_vm3, %v2833_v42, 0.0  ;;  %v1428_v17 = vpop.xlane.xlu1 %1427 }
 0x42d   : > { %v1443_v7 = vmul.f32 1.442695, %v1433_v28  ;;  %1451 = vadd.xlane.f32.xlu1 %v1450_v31  ;;  %v1434_v53 = vsub.f32 %v2755_v41, %v1428_v17 }
 0x42e   : > { %v1191_v61 = vpop.permute.xlu0 %1190 }
 0x42f   : > { %2342 = vpow2.f32 %v1443_v7  ;;  %v1445_v22 = vmul.f32 1.442695, %v1434_v53 }
 0x430   : > { %v1189_v27 = vpop.permute.xlu1 %1188 }
 0x431   : > { %v2838_v45 = vpop.eup %2338  ;;  %2344 = vpow2.f32 %v1445_v22 }
 0x432   : > { %v1453_v8 = vsel %vm490_vm3, %v2838_v45, 0.0 }
 0x433   : > { %v2842_v10 = vpop.eup %2340  ;;  %1454 = vadd.xlane.f32.xlu1 %v1453_v8 }
 0x434   : > { %v1456_v38 = vsel %vm490_vm3, %v2842_v10, 0.0 }
 0x437   : > { %1457 = vadd.xlane.f32.xlu1 %v1456_v38 }
 0x439   : > { %v2846_v13 = vpop.eup %2342 }
 0x43a   : > { %v1459_v50 = vsel %vm490_vm3, %v2846_v13, 0.0 }
 0x43b   : > { %1460 = vadd.xlane.f32.xlu1 %v1459_v50  ;;  %v2859_v25 = vpop.eup %2344 }
 0x43c   : > { %v1462_v26 = vsel %vm490_vm3, %v2859_v25, 0.0 }
 0x441   : > { %1192 = vrot.lane.b32.xlu0 %v2278_v14, %s2409_s12  ;;  %s2963_s12 = scalar_lea.vmem %s2993_s6, %s2473_s25 }
 0x44c   : > { %1501 = vrot.lane.b32.xlu1 %v2279_v18, %s2410_s13 }
 0x450   : > { %1503 = vrot.lane.b32.xlu1 %v2280_v19, %s2410_s13 }
 0x454   : > { %1505 = vrot.lane.b32.xlu1 %v2281_v58, %s2410_s13 }
 0x460   : > { %1463 = vadd.xlane.f32.xlu0 %v1462_v26 }
 0x488   : > { %v823_v29 = vpop.xlane.xlu0 %822 }
 0x489   : > { %2346 = vrcp.f32 %v823_v29 }
 0x48a   : > { %v826_v41 = vpop.xlane.xlu1 %825 }
 0x48b   : > { %2348 = vrcp.f32 %v826_v41 }
 0x490   : > { %v829_v30 = vpop.xlane.xlu0 %828 }
 0x491   : > { %2350 = vrcp.f32 %v829_v30 }
 0x493   : > { %v2347_v33 = vpop.eup %2346 }
 0x494   : > { %v832_v35 = vpop.xlane.xlu1 %831  ;;  %v845_v39 = vmul.f32 %v2347_v33, %v2769_v63 }
 0x495   : > { %v2349_v3 = vpop.eup %2348  ;;  %2352 = vrcp.f32 %v832_v35 }
 0x496   : > { %v846_v40 = vmul.f32 %v2349_v3, %v2773_v4 }
 0x498   : > { %v851_v6 = vpack.c.bf16 %v846_v40, %v845_v39  ;;  %v835_v43 = vpop.xlane.xlu0 %834 }
 0x499   : > { %2354 = vrcp.f32 %v835_v43 }
 0x49a   : > { %2110 = vmatmul.mubr.msk.bf16.vlgmr.msra.gmra.mrb[12].mxu0 %vm490_vm3, %v851_v6  ;;  %v838_v44 = vpop.xlane.xlu1 %837 }
 0x49b   : > { %2140 = vmatpush3.bf16.msra.mxu0 %v1189_v27  ;;  %2356 = vrcp.f32 %v838_v44  ;;  %2113 = vmatprep.mubr.msk.bf16.mxu0 %vm2407_vm0, %v2406_v0  ;;  %v2351_v47 = vpop.eup %2350 }
 0x49c   : > { %2141 = vmatprep.subr.bf16.mxu0 %v2406_v0  ;;  %v847_v63 = vmul.f32 %v2351_v47, %v2779_v9 }
 0x49f   : > { %v2353_v48 = vpop.eup %2352  ;;  %2142 = vmatpush3.bf16.msra.mxu0 %v1191_v61 }
 0x4a0   : > { %v848_v4 = vmul.f32 %v2353_v48, %v2784_v16  ;;  %2143 = vmatprep.subr.bf16.mxu0 %v2406_v0  ;;  %v1136_v12 = vpop.xlane.xlu1 %1135 }
 0x4a2   : > { %v852_v11 = vpack.c.bf16 %v848_v4, %v847_v63  ;;  %v1139_v57 = vpop.xlane.xlu0 %1138 }
 0x4a3   : > { %v2355_v51 = vpop.eup %2354  ;;  %2358 = vrcp.f32 %v1139_v57 }
 0x4a4   : > { %2114 = vmatmul.mubr.msk.bf16.gmra.mrb[16].mxu0 %vm490_vm3, %v852_v11  ;;  %v849_v56 = vmul.f32 %v2355_v51, %v2789_v21  ;;  %2360 = vrcp.f32 %v1136_v12 }
 0x4a5   : > { %v2357_v52 = vpop.eup %2356  ;;  %2117 = vmatprep.mubr.msk.bf16.mxu0 %vm2407_vm0, %v2406_v0 }
 0x4a6   : > { %v850_v15 = vmul.f32 %v2357_v52, %v2793_v24 }
 0x4a8   : > { %v1142_v54 = vpop.xlane.xlu1 %1141  ;;  %v853_v9 = vpack.c.bf16 %v850_v15, %v849_v56  ;;  %v2282_v15 = vld [vmem:[%s2991_s4] sm:$0xff]  }
 0x4a9   : > { %2194 = vmatpush3.bf16.msra.mxu1 %v2282_v15 }
 0x4aa   : > { %2195 = vmatprep.subr.bf16.mxu1 %v2406_v0 }
 0x4ac   : > { %2118 = vmatmul.mubr.msk.bf16.gmra.mrb[20].mxu0 %vm490_vm3, %v853_v9  ;;  %v1145_v16 = vpop.xlane.xlu1 %1144 }
 0x4ad   : > { %2145 = vmatprep.mubr.msk.bf16.mxu0 %vm2407_vm0, %v2406_v0  ;;  %2362 = vrcp.f32 %v1145_v16  ;;  %v2359_v60 = vpop.eup %2358 }
 0x4ae   : > { %2364 = vrcp.f32 %v1142_v54  ;;  %v2361_v24 = vpop.eup %2360  ;;  %v1159_v1 = vmul.f32 %v2359_v60, %v2803_v36  ;;  %v2283_v54 = vld [vmem:[%s2991_s4 + $0x8] sm:$0xff]  }
 0x4af   : > { %v1158_v21 = vmul.f32 %v2361_v24, %v2799_v32  ;;  %2196 = vmatpush3.bf16.msra.mxu1 %v2283_v54 }
 0x4b0   : > { %v1148_v20 = vpop.xlane.xlu1 %1147  ;;  %2197 = vmatprep.subr.bf16.mxu1 %v2406_v0 }
 0x4b1   : > { %v1164_v5 = vpack.c.bf16 %v1159_v1, %v1158_v21 }
 0x4b4   : > { %v1151_v23 = vpop.xlane.xlu1 %1150 }
 0x4b5   : > { %2366 = vrcp.f32 %v1151_v23 }
 0x4b6   : > { %2368 = vrcp.f32 %v1148_v20 }
 0x4b7   : > { %v2363_v28 = vpop.eup %2362 }
 0x4b8   : > { %v1449_v62 = vpop.xlane.xlu0 %1448  ;;  %v2365_v7 = vpop.eup %2364  ;;  %v1161_v36 = vmul.f32 %v2363_v28, %v2813_v49 }
 0x4b9   : > { %v1160_v32 = vmul.f32 %v2365_v7, %v2809_v46  ;;  %v2285_v7 = vld [vmem:[%s2991_s4 + $0x18] sm:$0xff]  }
 0x4ba   : > { %v1452_v2 = vpop.xlane.xlu1 %1451 }
 0x4bb   : > { %2370 = vrcp.f32 %v1452_v2  ;;  %v1165_v38 = vpack.c.bf16 %v1161_v36, %v1160_v32  ;;  %v2284_v2 = vld [vmem:[%s2991_s4 + $0x10] sm:$0xff]  }
 0x4bc   : > { %v1193_v37 = vpop.permute.xlu0 %1192  ;;  %2372 = vrcp.f32 %v1449_v62  ;;  %2198 = vmatpush3.bf16.msra.mxu1 %v2284_v2 }
 0x4bd   : > { %2144 = vmatpush3.bf16.msra.mxu0 %v1193_v37  ;;  %2199 = vmatprep.subr.bf16.mxu1 %v2406_v0 }
 0x4be   : > { %2175 = vmatprep.subr.bf16.mxu0 %v2406_v0 }
 0x4bf   : > { %v2367_v50 = vpop.eup %2366 }
 0x4c0   : > { %2146 = vmatmul.mubr.msk.bf16.vlgmr.msra.gmra.mrb[24].mxu0 %vm490_vm3, %v1164_v5  ;;  %v1455_v31 = vpop.xlane.xlu1 %1454  ;;  %v2369_v17 = vpop.eup %2368  ;;  %v1163_v18 = vmul.f32 %v2367_v50, %v2823_v59  ;;  %2200 = vmatpush3.bf16.msra.mxu1 %v2285_v7 }
 0x4c1   : > { %2149 = vmatprep.mubr.msk.bf16.mxu0 %vm2407_vm0, %v2406_v0  ;;  %v1162_v19 = vmul.f32 %v2369_v17, %v2819_v55 }
 0x4c3   : > { %v1166_v49 = vpack.c.bf16 %v1163_v18, %v1162_v19 }
 0x4c4   : > { %v1458_v8 = vpop.xlane.xlu1 %1457 }
 0x4c5   : > { %2374 = vrcp.f32 %v1458_v8  ;;  %v2371_v46 = vpop.eup %2370 }
 0x4c6   : > { %2376 = vrcp.f32 %v1455_v31  ;;  %v2373_v58 = vpop.eup %2372  ;;  %v1472_v59 = vmul.f32 %v2371_v46, %v2833_v42 }
 0x4c7   : > { %v1471_v55 = vmul.f32 %v2373_v58, %v2829_v34 }
 0x4c8   : > { %2150 = vmatmul.mubr.msk.bf16.gmra.mrb[28].mxu0 %vm490_vm3, %v1165_v38  ;;  %v1461_v14 = vpop.xlane.xlu1 %1460 }
 0x4c9   : > { %2153 = vmatprep.mubr.msk.bf16.mxu0 %vm2407_vm0, %v2406_v0  ;;  %v1477_v61 = vpack.c.bf16 %v1472_v59, %v1471_v55  ;;  %2378 = vrcp.f32 %v1461_v14 }
 0x4cc   : > { %v1502_v53 = vpop.permute.xlu1 %1501 }
 0x4cd   : > { %2176 = vmatpush3.bf16.msra.mxu0 %v1502_v53 }
 0x4ce   : > { %2177 = vmatprep.subr.bf16.mxu0 %v2406_v0 }
 0x4cf   : > { %v2375_v27 = vpop.eup %2374 }
 0x4d0   : > { %2154 = vmatmul.mubr.msk.bf16.gmra.mrb[32].mxu0 %vm490_vm3, %v1166_v49  ;;  %v1504_v22 = vpop.permute.xlu1 %1503  ;;  %v2377_v29 = vpop.eup %2376  ;;  %v1474_v41 = vmul.f32 %v2375_v27, %v2842_v10 }
 0x4d1   : > { %2178 = vmatpush3.bf16.msra.mxu0 %v1504_v22  ;;  %2181 = vmatprep.mubr.msk.bf16.mxu0 %vm2407_vm0, %v2406_v0  ;;  %v1473_v30 = vmul.f32 %v2377_v29, %v2838_v45 }
 0x4d2   : > { %2179 = vmatprep.subr.bf16.mxu0 %v2406_v0 }
 0x4d3   : > { %v1478_v33 = vpack.c.bf16 %v1474_v41, %v1473_v30  ;;  %v2379_v42 = vpop.eup %2378 }
 0x4d4   : > { %v1506_v26 = vpop.permute.xlu1 %1505  ;;  %v1475_v3 = vmul.f32 %v2379_v42, %v2846_v13 }
 0x4d5   : > { %2180 = vmatpush3.bf16.msra.mxu0 %v1506_v26 }
 0x4d8   : > { %2182 = vmatmul.mubr.msk.bf16.vlgmr.msra.gmra.mrb[36].mxu0 %vm490_vm3, %v1477_v61 }
 0x4d9   : > { %2185 = vmatprep.mubr.msk.bf16.mxu0 %vm2407_vm0, %v2406_v0 }
 0x4e0   : > { %2186 = vmatmul.mubr.msk.bf16.gmra.mrb[40].mxu0 %vm490_vm3, %v1478_v33 }
 0x4e1   : > { %2189 = vmatprep.mubr.msk.bf16.mxu0 %vm2407_vm0, %v2406_v0 }
 0x4ed   : > { %v1464_v34 = vpop.xlane.xlu0 %1463 }
 0x4ee   : > { %2380 = vrcp.f32 %v1464_v34 }
 0x4f8   : > { %v2381_v35 = vpop.eup %2380 }
 0x4f9   : > { %v1476_v39 = vmul.f32 %v2381_v35, %v2859_v25 }
 0x4fb   : > { %v1479_v40 = vpack.c.bf16 %v1476_v39, %v1475_v3  ;;  %v1981_v39 = vld [vmem:[%s2952_s7] sm:$0xff]  }
 0x4fd   : > { %2190 = vmatmul.mubr.msk.bf16.gmra.mrb[44].mxu0 %vm490_vm3, %v1479_v40  ;;  %v1982_v40 = vunpack.c.l.bf16 %v1981_v39 }
 0x56d   : > { %v927_v10 = vpop.f32.mrb[12].mxu0 }
 0x56e   : > { %v2111_v45 = vpop.f32.mrb[13].mxu0 }
 0x56f   : > { %v930_v6 = vpop.f32.mrb[14].mxu0 }
 0x570   : > { %v950_v43 = vpack.c.bf16 %v930_v6, %v927_v10  ;;  %v2112_v44 = vpop.f32.mrb[15].mxu0  ;;  %v1983_v10 = vunpack.c.h.bf16 %v1981_v39  ;;  %v1992_v6 = vld [vmem:[%s2952_s7 + $0x8] sm:$0xff]  }
 0x572   : > { %956 = vrot.lane.b32.xlu1 %v950_v43, %s2411_s14 }
 0x577   : > { %v935_v47 = vpop.f32.mrb[16].mxu0 }
 0x578   : > { %v2115_v48 = vpop.f32.mrb[17].mxu0 }
 0x579   : > { %v938_v63 = vpop.f32.mrb[18].mxu0 }
 0x57a   : > { %v951_v4 = vpack.c.bf16 %v938_v63, %v935_v47  ;;  %v2116_v11 = vpop.f32.mrb[19].mxu0  ;;  %v1986_v63 = vunpack.c.l.bf16 %v1992_v6 }
 0x57c   : > { %958 = vrot.lane.b32.xlu1 %v951_v4, %s2411_s14 }
 0x57f   : > { %v943_v13 = vpop.f32.mrb[20].mxu0 }
 0x580   : > { %v2119_v25 = vpop.f32.mrb[21].mxu0 }
 0x581   : > { %v946_v51 = vpop.f32.mrb[22].mxu0 }
 0x582   : > { %v952_v12 = vpack.c.bf16 %v946_v51, %v943_v13  ;;  %v2120_v52 = vpop.f32.mrb[23].mxu0  ;;  %v1987_v51 = vunpack.c.h.bf16 %v1992_v6 }
 0x593   : > { %v1240_v56 = vpop.f32.mrb[24].mxu0 }
 0x594   : > { %v2147_v57 = vpop.f32.mrb[25].mxu0 }
 0x595   : > { %v1243_v9 = vpop.f32.mrb[26].mxu0 }
 0x596   : > { %v1263_v16 = vpack.c.bf16 %v1243_v9, %v1240_v56  ;;  %v2148_v20 = vpop.f32.mrb[27].mxu0 }
 0x598   : > { %1269 = vrot.lane.b32.xlu0 %v1263_v16, %s2412_s19 }
 0x59b   : > { %v1248_v60 = vpop.f32.mrb[28].mxu0 }
 0x59c   : > { %v2151_v23 = vpop.f32.mrb[29].mxu0 }
 0x59d   : > { %v1251_v62 = vpop.f32.mrb[30].mxu0 }
 0x59e   : > { %v1264_v24 = vpack.c.bf16 %v1251_v62, %v1248_v60  ;;  %v2152_v1 = vpop.f32.mrb[31].mxu0  ;;  %v1993_v62 = vld [vmem:[%s2952_s7 + $0x10] sm:$0xff]  }
 0x59f   : > { %v1991_v1 = vunpack.c.h.bf16 %v1993_v62 }
 0x5a3   : > { %v1256_v21 = vpop.f32.mrb[32].mxu0 }
 0x5a4   : > { %v2155_v37 = vpop.f32.mrb[33].mxu0 }
 0x5a5   : > { %v1259_v5 = vpop.f32.mrb[34].mxu0 }
 0x5a6   : > { %v1265_v28 = vpack.c.bf16 %v1259_v5, %v1256_v21  ;;  %v2156_v31 = vpop.f32.mrb[35].mxu0 }
 0x5ab   : > { %v1553_v36 = vpop.f32.mrb[36].mxu0 }
 0x5ac   : > { %v2183_v8 = vpop.f32.mrb[37].mxu0 }
 0x5ad   : > { %v1556_v32 = vpop.f32.mrb[38].mxu0 }
 0x5ae   : > { %v1576_v38 = vpack.c.bf16 %v1556_v32, %v1553_v36  ;;  %v2184_v50 = vpop.f32.mrb[39].mxu0 }
 0x5b0   : > { %1582 = vrot.lane.b32.xlu1 %v1576_v38, %s2413_s28 }
 0x5b3   : > { %v1561_v14 = vpop.f32.mrb[40].mxu0 }
 0x5b4   : > { %1271 = vrot.lane.b32.xlu1 %v1264_v24, %s2412_s19  ;;  %v2187_v17 = vpop.f32.mrb[41].mxu0  ;;  %v1990_v24 = vunpack.c.l.bf16 %v1993_v62 }
 0x5b5   : > { %v1564_v18 = vpop.f32.mrb[42].mxu0 }
 0x5b6   : > { %v1577_v53 = vpack.c.bf16 %v1564_v18, %v1561_v14  ;;  %v2188_v19 = vpop.f32.mrb[43].mxu0 }
 0x5b8   : > { %1584 = vrot.lane.b32.xlu1 %v1577_v53, %s2413_s28 }
 0x5bc   : > { %960 = vrot.lane.b32.xlu1 %v952_v12, %s2411_s14 }
 0x5c0   : > { %1273 = vrot.lane.b32.xlu1 %v1265_v28, %s2412_s19 }
 0x5d0   : > { %v1569_v49 = vpop.f32.mrb[44].mxu0 }
 0x5d1   : > { %v2191_v46 = vpop.f32.mrb[45].mxu0 }
 0x5d2   : > { %v1572_v22 = vpop.f32.mrb[46].mxu0 }
 0x5d3   : > { %v1578_v58 = vpack.c.bf16 %v1572_v22, %v1569_v49  ;;  %v2192_v59 = vpop.f32.mrb[47].mxu0 }
 0x5d5   : > { %1586 = vrot.lane.b32.xlu0 %v1578_v58, %s2413_s28 }
 0x5e4   : > { %v957_v55 = vpop.permute.xlu1 %956 }
 0x5e5   : > { %966 = vst.msk [vmem:[#allocation2] sm:$0xff] %vm965_vm4, %v957_v55 }
 0x5ee   : > { %v959_v26 = vpop.permute.xlu1 %958 }
 0x5ef   : > { %967 = vst.msk [vmem:[#allocation2 + $0x8] sm:$0xff] %vm965_vm4, %v959_v26 }
 0x60a   : > { %v1270_v61 = vpop.permute.xlu0 %1269 }
 0x60b   : > { %1279 = vst.msk [vmem:[#allocation2] sm:$0xff] %vm1278_vm5, %v1270_v61 }
 0x622   : > { %v1583_v27 = vpop.permute.xlu1 %1582 }
 0x623   : > { %1592 = vst.msk [vmem:[#allocation2] sm:$0xff] %vm1591_vm6, %v1583_v27 }
 0x626   : > { %v1272_v29 = vpop.permute.xlu1 %1271 }
 0x627   : > { %1280 = vst.msk [vmem:[#allocation2 + $0x8] sm:$0xff] %vm1278_vm5, %v1272_v29 }
 0x62a   : > { %v1585_v41 = vpop.permute.xlu1 %1584  ;;  %v1620_v30 = vld [vmem:[#allocation2] sm:$0xff] }
 0x62b   : > { %1593 = vst.msk [vmem:[#allocation2 + $0x8] sm:$0xff] %vm1591_vm6, %v1585_v41  ;;  %2202 = vmatmul.mubr.msk.bf16.vlgmr.msra.gmra.mrb[48].mxu1 %vm1655_vm7, %v1620_v30 }
 0x62c   : > { %2205 = vmatprep.mubr.msk.bf16.mxu1 %vm2407_vm0, %v2406_v0 }
 0x62e   : > { %v961_v33 = vpop.permute.xlu1 %960 }
 0x62f   : > { %968 = vst.msk [vmem:[#allocation2 + $0x10] sm:$0xff] %vm965_vm4, %v961_v33 }
 0x632   : > { %v1274_v34 = vpop.permute.xlu1 %1273  ;;  %v1621_v42 = vld [vmem:[#allocation2 + $0x8] sm:$0xff] }
 0x633   : > { %1281 = vst.msk [vmem:[#allocation2 + $0x10] sm:$0xff] %vm1278_vm5, %v1274_v34  ;;  %2206 = vmatmul.mubr.msk.bf16.gmra.mrb[52].mxu1 %vm1655_vm7, %v1621_v42 }
 0x634   : > { %2209 = vmatprep.mubr.msk.bf16.mxu1 %vm2407_vm0, %v2406_v0  ;;  %v1958_v0 = vld [vmem:[%s2992_s5] ss:$0 sm:$0xff] }
 0x635   : > { %v1614_v45 = vadd.f32 %v1982_v40, %v1958_v0  ;;  %v1615_v43 = vadd.f32 %v1983_v10, %v1958_v0  ;;  %v1616_v52 = vadd.f32 %v1986_v63, %v1958_v0  ;;  %v1617_v15 = vadd.f32 %v1987_v51, %v1958_v0 }
 0x636   : > { %v1618_v21 = vadd.f32 %v1990_v24, %v1958_v0  ;;  %v1619_v2 = vadd.f32 %v1991_v1, %v1958_v0 }
 0x647   : > { %v1587_v35 = vpop.permute.xlu0 %1586 }
 0x648   : > { %1594 = vst.msk [vmem:[#allocation2 + $0x10] sm:$0xff] %vm1591_vm6, %v1587_v35 }
 0x64f   : > { %v1622_v3 = vld [vmem:[#allocation2 + $0x10] sm:$0xff] }
 0x650   : > { %2210 = vmatmul.mubr.msk.bf16.gmra.mrb[56].mxu1 %vm1655_vm7, %v1622_v3 }
 0x6fe   : > { %v1699_v44 = vpop.f32.mrb[48].mxu1 }
 0x6ff   : > { %v1722_v47 = vadd.f32 %v1699_v44, %v1614_v45  ;;  %v2203_v48 = vpop.f32.mrb[49].mxu1 }
 0x700   : > { %v1702_v4 = vpop.f32.mrb[50].mxu1 }
 0x701   : > { %v1974_v11 = vpack.c.bf16 %v1722_v47, %v1722_v47  ;;  %v1723_v13 = vadd.f32 %v1702_v4, %v1615_v43  ;;  %v2204_v25 = vpop.f32.mrb[51].mxu1 }
 0x703   : > { %1753 = vst.msk [vmem:[%s2963_s12] sm:$0xf] %vm1752_vm8, %v1974_v11  ;;  %v1975_v12 = vpack.c.bf16 %v1723_v13, %v1723_v13 }
 0x705   : > { %1754 = vst.msk [vmem:[%s2963_s12 + $0x4] sm:$0xf] %vm1752_vm8, %v1975_v12 }
 0x706   : > { %v1707_v54 = vpop.f32.mrb[52].mxu1 }
 0x707   : > { %v1724_v56 = vadd.f32 %v1707_v54, %v1616_v52  ;;  %v2207_v57 = vpop.f32.mrb[53].mxu1 }
 0x708   : > { %v1710_v9 = vpop.f32.mrb[54].mxu1 }
 0x709   : > { %v1976_v16 = vpack.c.bf16 %v1724_v56, %v1724_v56  ;;  %v1725_v20 = vadd.f32 %v1710_v9, %v1617_v15  ;;  %v2208_v60 = vpop.f32.mrb[55].mxu1 }
 0x70b   : > { %1755 = vst.msk [vmem:[%s2963_s12 + $0x8] sm:$0xf] %vm1752_vm8, %v1976_v16  ;;  %v1977_v23 = vpack.c.bf16 %v1725_v20, %v1725_v20 }
 0x70d   : > { %1756 = vst.msk [vmem:[%s2963_s12 + $0xc] sm:$0xf] %vm1752_vm8, %v1977_v23 }
 0x723   : > { %v1715_v37 = vpop.f32.mrb[56].mxu1 }
 0x724   : > { %v1726_v5 = vadd.f32 %v1715_v37, %v1618_v21  ;;  %v2211_v28 = vpop.f32.mrb[57].mxu1 }
 0x725   : > { %v1718_v31 = vpop.f32.mrb[58].mxu1 }
 0x726   : > { %v1978_v7 = vpack.c.bf16 %v1726_v5, %v1726_v5  ;;  %v1727_v36 = vadd.f32 %v1718_v31, %v1619_v2  ;;  %v2212_v8 = vpop.f32.mrb[59].mxu1 }
 0x728   : > { %1757 = vst.msk [vmem:[%s2963_s12 + $0x10] sm:$0xf] %vm1752_vm8, %v1978_v7  ;;  %v1979_v32 = vpack.c.bf16 %v1727_v36, %v1727_v36 }
 0x72a   : > { %1758 = vst.msk [vmem:[%s2963_s12 + $0x14] sm:$0xf] %vm1752_vm8, %v1979_v32 }
 0x72b PF: > { %s16_s23 = sadd.s32 1, %s2404_s23   ;;  %s2994_s21 = smov %s2400_s22 }
 0x72c   : > { %p13_p5 = scmp.ge.s32.totalorder %s16_s23, 4   ;;  %s2995_s22 = smov %s2997_s24 }
 0x72e   :  { %15 = sbr.rel (!%p13_p5) target bundleno = 2 (0x2), region = 83 }

// kernel: audio_encoder_forward.17
= control target key start
LH: loop header
LB: loop body
LE: loop exit
PB: predicated region body
PF: predicated region fallthrough
CT: control target
= control target key end

     0   :  { %s528_s12 = smov 0   ;;  %s530_s13 = smov 0   ;;  %s604_s0 = inlined_call_operand.vmem [shape: bf16[2,48,64], index: 0, kind: input, shape index: {}]   ;;  %s605_s1 = inlined_call_operand.vmem [shape: f32[1,64], index: 1, kind: input, shape index: {}]   ;;  %s606_s2 = inlined_call_operand.vmem [shape: f32[1,64], index: 2, kind: input, shape index: {}]   ;;  %s607_s3 = inlined_call_operand.vmem [shape: f32[2,48,64], index: 3, kind: output, shape index: {}]  }
   0x1   :  { %s532_s14 = smov 0  }
   0x2 LB: > { %s25_s15 = sadd.s32 1, %s502_s13  ;;  %p425_p0 = scmp.ge.s32.totalorder %s506_s14, 1  ;;  %s506_s14 = sphi %s532_s14, %s13_s14   ;;  %s502_s13 = sphi %s530_s13, %s609_s13   ;;  %s498_s12 = sphi %s528_s12, %s608_s12  }
   0x3   : > { %p27_p1 = scmp.ge.s32.totalorder %s25_s15, 2  ;;  %p158_p2 = scmp.lt.s32.totalorder %s506_s14, 3 }
   0x5   : > { %s611_s15 = smov (%p27_p1, %s25_s15), 0  ;;  %p159_p3 = pnand %p425_p0, %p158_p2 }
   0x6   : > { %p191_p4 = scmp.lt.s32.totalorder (!%p159_p3), %s498_s12, 1  ;;  %vm224_vm0 = vcmask (!%p159_p3), 523264   ;;  %v428_v63 = vld [vmem:[%s605_s1] ss:$0 sm:$0xff] (!%p159_p3) }
   0x7   : > { %162 = sbr.rel (%p159_p3) target bundleno = 347 (0x15b), region = 32 }
   0xe   : > { %s613_s12 = smov (!%p191_p4, %s498_s12), 1 }
   0xf   : > { %s446_s16 = smul.u32 24, %s613_s12 }
  0x10   : > { %s447_s20 = smul.u32 48, %s613_s12 }
  0x11   : > { %s198_s19 = scalar_lea.vmem %s604_s0, %s446_s16 }
  0x12   : > { %v433_v0 = vld [vmem:[%s198_s19] sm:$0xff]   ;;  %v444_v1 = vld [vmem:[%s198_s19 + $0x8] sm:$0xff]   ;;  %v445_v6 = vld [vmem:[%s198_s19 + $0x10] sm:$0xff]   ;;  %s208_s27 = scalar_lea.vmem %s607_s3, %s447_s20 }
  0x13   : > { %v434_v2 = vunpack.c.l.bf16 %v433_v0  ;;  %v438_v3 = vunpack.c.l.bf16 %v444_v1  ;;  %v435_v4 = vunpack.c.h.bf16 %v433_v0  ;;  %v439_v5 = vunpack.c.h.bf16 %v444_v1 }
  0x14   : > { %v442_v11 = vunpack.c.l.bf16 %v445_v6  ;;  %v443_v12 = vunpack.c.h.bf16 %v445_v6 }
  0x15   : > { %v225_v7 = vsel %vm224_vm0, %v434_v2, 0.0  ;;  %v231_v8 = vsel %vm224_vm0, %v438_v3, 0.0  ;;  %v228_v9 = vsel %vm224_vm0, %v435_v4, 0.0  ;;  %v234_v10 = vsel %vm224_vm0, %v439_v5, 0.0 }
  0x16   : > { %226 = vadd.xlane.f32.xlu0 %v225_v7  ;;  %232 = vadd.xlane.f32.xlu1 %v231_v8  ;;  %v237_v13 = vsel %vm224_vm0, %v442_v11, 0.0  ;;  %v240_v14 = vsel %vm224_vm0, %v443_v12, 0.0 }
  0x1a   : > { %229 = vadd.xlane.f32.xlu0 %v228_v9  ;;  %235 = vadd.xlane.f32.xlu1 %v234_v10 }
  0x1e   : > { %238 = vadd.xlane.f32.xlu0 %v237_v13  ;;  %241 = vadd.xlane.f32.xlu1 %v240_v14 }
  0xa3   : > { %v227_v15 = vpop.xlane.xlu0 %226  ;;  %v233_v16 = vpop.xlane.xlu1 %232 }
  0xa4   : > { %v244_v17 = vmul.f32 0.015625, %v227_v15  ;;  %v246_v18 = vmul.f32 0.015625, %v233_v16 }
  0xa6   : > { %v250_v19 = vsub.f32 %v434_v2, %v244_v17  ;;  %v558_v20 = vsub.f32 %v438_v3, %v246_v18  ;;  %v429_v2 = vld [vmem:[%s606_s2] ss:$0 sm:$0xff] }
  0xa7   : > { %v230_v21 = vpop.xlane.xlu0 %229  ;;  %v236_v22 = vpop.xlane.xlu1 %235 }
  0xa8   : > { %v245_v23 = vmul.f32 0.015625, %v230_v21  ;;  %v247_v24 = vmul.f32 0.015625, %v236_v22  ;;  %v256_v25 = vmul.f32 %v250_v19, %v250_v19  ;;  %v258_v26 = vmul.f32 %v558_v20, %v558_v20 }
  0xaa   : > { %v251_v27 = vsub.f32 %v435_v4, %v245_v23  ;;  %v562_v28 = vsub.f32 %v439_v5, %v247_v24  ;;  %v262_v29 = vsel %vm224_vm0, %v256_v25, 0.0  ;;  %v268_v32 = vsel %vm224_vm0, %v258_v26, 0.0 }
  0xab   : > { %263 = vadd.xlane.f32.xlu0 %v262_v29  ;;  %v239_v30 = vpop.xlane.xlu0 %238  ;;  %v242_v31 = vpop.xlane.xlu1 %241 }
  0xac   : > { %v248_v33 = vmul.f32 0.015625, %v239_v30  ;;  %v249_v34 = vmul.f32 0.015625, %v242_v31  ;;  %v257_v35 = vmul.f32 %v251_v27, %v251_v27  ;;  %v259_v36 = vmul.f32 %v562_v28, %v562_v28 }
  0xae   : > { %v254_v37 = vsub.f32 %v442_v11, %v248_v33  ;;  %v568_v38 = vsub.f32 %v443_v12, %v249_v34  ;;  %v265_v39 = vsel %vm224_vm0, %v257_v35, 0.0  ;;  %v271_v40 = vsel %vm224_vm0, %v259_v36, 0.0 }
  0xaf   : > { %269 = vadd.xlane.f32.xlu0 %v268_v32  ;;  %266 = vadd.xlane.f32.xlu1 %v265_v39 }
  0xb0   : > { %v260_v41 = vmul.f32 %v254_v37, %v254_v37  ;;  %v261_v42 = vmul.f32 %v568_v38, %v568_v38 }
  0xb2   : > { %v274_v43 = vsel %vm224_vm0, %v260_v41, 0.0  ;;  %v277_v44 = vsel %vm224_vm0, %v261_v42, 0.0 }
  0xb3   : > { %272 = vadd.xlane.f32.xlu1 %v271_v40  ;;  %275 = vadd.xlane.f32.xlu0 %v274_v43 }
  0xb7   : > { %278 = vadd.xlane.f32.xlu1 %v277_v44 }
 0x138   : > { %v264_v45 = vpop.xlane.xlu0 %263 }
 0x139   : > { %v280_v46 = vmul.f32 0.015625, %v264_v45 }
 0x13b   : > { %v286_v47 = vadd.f32 1e-05, %v280_v46 }
 0x13c   : > { %v267_v48 = vpop.xlane.xlu1 %266  ;;  %v270_v49 = vpop.xlane.xlu0 %269 }
 0x13d   : > { %472 = vrsqrt.f32 %v286_v47  ;;  %v281_v50 = vmul.f32 0.015625, %v267_v48  ;;  %v282_v51 = vmul.f32 0.015625, %v270_v49 }
 0x13f   : > { %v287_v52 = vadd.f32 1e-05, %v281_v50  ;;  %v288_v53 = vadd.f32 1e-05, %v282_v51 }
 0x140   : > { %v273_v54 = vpop.xlane.xlu1 %272  ;;  %v276_v55 = vpop.xlane.xlu0 %275 }
 0x141   : > { %474 = vrsqrt.f32 %v287_v52  ;;  %v283_v56 = vmul.f32 0.015625, %v273_v54  ;;  %v284_v57 = vmul.f32 0.015625, %v276_v55 }
 0x142   : > { %476 = vrsqrt.f32 %v288_v53 }
 0x143   : > { %v289_v58 = vadd.f32 1e-05, %v283_v56  ;;  %v290_v59 = vadd.f32 1e-05, %v284_v57 }
 0x144   : > { %v279_v60 = vpop.xlane.xlu1 %278 }
 0x145   : > { %478 = vrsqrt.f32 %v289_v58  ;;  %v285_v61 = vmul.f32 0.015625, %v279_v60 }
 0x146   : > { %480 = vrsqrt.f32 %v290_v59 }
 0x147   : > { %v473_v62 = vpop.eup %472  ;;  %v291_v0 = vadd.f32 1e-05, %v285_v61 }
 0x148   : > { %v298_v1 = vmul.f32 %v473_v62, %v250_v19 }
 0x149   : > { %482 = vrsqrt.f32 %v291_v0 }
 0x14a   : > { %v310_v3 = vmul.f32 %v428_v63, %v298_v1 }
 0x14b   : > { %v475_v4 = vpop.eup %474 }
 0x14c   : > { %v477_v5 = vpop.eup %476  ;;  %v322_v6 = vadd.f32 %v429_v2, %v310_v3  ;;  %v299_v7 = vmul.f32 %v475_v4, %v251_v27 }
 0x14d   : > { %v300_v8 = vmul.f32 %v477_v5, %v558_v20 }
 0x14e   : > { %328 = vst.msk [vmem:[%s208_s27] sm:$0xff] %vm224_vm0, %v322_v6  ;;  %v311_v9 = vmul.f32 %v428_v63, %v299_v7 }
 0x14f   : > { %v479_v10 = vpop.eup %478  ;;  %v312_v11 = vmul.f32 %v428_v63, %v300_v8 }
 0x150   : > { %v481_v12 = vpop.eup %480  ;;  %v323_v13 = vadd.f32 %v429_v2, %v311_v9  ;;  %v301_v14 = vmul.f32 %v479_v10, %v562_v28 }
 0x151   : > { %v324_v15 = vadd.f32 %v429_v2, %v312_v11  ;;  %v302_v16 = vmul.f32 %v481_v12, %v254_v37 }
 0x152   : > { %329 = vst.msk [vmem:[%s208_s27 + $0x8] sm:$0xff] %vm224_vm0, %v323_v13  ;;  %v313_v17 = vmul.f32 %v428_v63, %v301_v14 }
 0x153   : > { %v483_v18 = vpop.eup %482  ;;  %330 = vst.msk [vmem:[%s208_s27 + $0x10] sm:$0xff] %vm224_vm0, %v324_v15  ;;  %v314_v19 = vmul.f32 %v428_v63, %v302_v16 }
 0x154   : > { %v325_v21 = vadd.f32 %v429_v2, %v313_v17  ;;  %v303_v20 = vmul.f32 %v483_v18, %v568_v38 }
 0x155   : > { %v326_v22 = vadd.f32 %v429_v2, %v314_v19 }
 0x156   : > { %331 = vst.msk [vmem:[%s208_s27 + $0x18] sm:$0xff] %vm224_vm0, %v325_v21  ;;  %v315_v23 = vmul.f32 %v428_v63, %v303_v20 }
 0x157   : > { %332 = vst.msk [vmem:[%s208_s27 + $0x20] sm:$0xff] %vm224_vm0, %v326_v22 }
 0x158   : > { %v327_v24 = vadd.f32 %v429_v2, %v315_v23 }
 0x15a   : > { %333 = vst.msk [vmem:[%s208_s27 + $0x28] sm:$0xff] %vm224_vm0, %v327_v24 }
 0x15b PF: > { %s13_s14 = sadd.s32 1, %s506_s14   ;;  %s608_s12 = smov %s502_s13 }
 0x15c   : > { %p10_p5 = scmp.ge.s32.totalorder %s13_s14, 4   ;;  %s609_s13 = smov %s611_s15 }
 0x15e   :  { %12 = sbr.rel (!%p10_p5) target bundleno = 2 (0x2), region = 62 }

// kernel: audio_encoder_forward.13
= control target key start
LH: loop header
LB: loop body
LE: loop exit
PB: predicated region body
PF: predicated region fallthrough
CT: control target
= control target key end

     0   :  { %s1418_s24 = smov 0   ;;  %s1420_s25 = smov 0   ;;  %s1711_s0 = inlined_call_operand.vmem [shape: bf16[2,48,64], index: 0, kind: input, shape index: {}]   ;;  %s1712_s1 = inlined_call_operand.vmem [shape: f32[1,64], index: 1, kind: input, shape index: {}]   ;;  %s1713_s2 = inlined_call_operand.vmem [shape: f32[1,64], index: 2, kind: input, shape index: {}]   ;;  %s1714_s3 = inlined_call_operand.vmem [shape: bf16[64,256], index: 3, kind: input, shape index: {}]   ;;  %s1715_s4 = inlined_call_operand.vmem [shape: f32[1,256], index: 4, kind: input, shape index: {}]   ;;  %s1716_s5 = inlined_call_operand.vmem [shape: bf16[256,64], index: 5, kind: input, shape index: {}]   ;;  %s1717_s6 = inlined_call_operand.vmem [shape: f32[1,64], index: 6, kind: input, shape index: {}]   ;;  %s1718_s7 = inlined_call_operand.vmem [shape: bf16[2,48,64], index: 7, kind: output, shape index: {}]  }
   0x1   :  { %s1422_s26 = smov 0  }
   0x2 LB: > { %s36_s27 = sadd.s32 1, %s1371_s25  ;;  %p1168_p0 = scmp.ge.s32.totalorder %s1375_s26, 1  ;;  %s1375_s26 = sphi %s1422_s26, %s17_s26   ;;  %s1371_s25 = sphi %s1420_s25, %s1720_s25   ;;  %s1367_s24 = sphi %s1418_s24, %s1719_s24  }
   0x3   : > { %p38_p1 = scmp.ge.s32.totalorder %s36_s27, 2  ;;  %p297_p2 = scmp.lt.s32.totalorder %s1375_s26, 3 }
   0x5   : > { %s1722_s27 = smov (%p38_p1, %s36_s27), 0  ;;  %p298_p3 = pnand %p1168_p0, %p297_p2 }
   0x6   : > { %p352_p4 = scmp.lt.s32.totalorder (!%p298_p3), %s1367_s24, 1  ;;  %v1173_v0 = vld [vmem:[%s1717_s6] ss:$0 sm:$0xff] (!%p298_p3)  ;;  %vm407_vm0 = vcmask (!%p298_p3), 523264   ;;  %v1289_v52 = vld [vmem:[%s1714_s3 + $0x4] ss:$8 sps:$4 sm:$0xff] (!%p298_p3)  }
   0x7   : > { %301 = sbr.rel (%p298_p3) target bundleno = 840 (0x348), region = 48  ;;  %v1291_v53 = vld [vmem:[%s1714_s3] ss:$8 sps:$4 sm:$0xff] (!%p298_p3)   ;;  %609 = vmatprep.subr.bf16.mxu0 (!%p298_p3), %v1289_v52  ;;  %v1292_v54 = vld [vmem:[%s1714_s3 + $0x14] ss:$8 sps:$4 sm:$0xff] (!%p298_p3)   ;;  %v1377_v60 = vmov (!%p298_p3), 0  }
   0x8   : > { %610 = vmatpush1.bf16.msra.mxu0 (!%p298_p3), %v1291_v53  ;;  %v1294_v55 = vld [vmem:[%s1714_s3 + $0x10] ss:$8 sps:$4 sm:$0xff] (!%p298_p3)   ;;  %v1295_v56 = vld [vmem:[%s1714_s3 + $0x24] ss:$8 sps:$4 sm:$0xff] (!%p298_p3)   ;;  %v1297_v57 = vld [vmem:[%s1714_s3 + $0x20] ss:$8 sps:$4 sm:$0xff] (!%p298_p3)   ;;  %641 = vmatprep.mubr.bf16.mxu0 (!%p298_p3), %v1377_v60 }
   0x9   : > { %611 = vmatprep.subr.bf16.mxu0 (!%p298_p3), %v1292_v54  ;;  %v1298_v58 = vld [vmem:[%s1714_s3 + $0x34] ss:$8 sps:$4 sm:$0xff] (!%p298_p3)   ;;  %v1300_v59 = vld [vmem:[%s1714_s3 + $0x30] ss:$8 sps:$4 sm:$0xff] (!%p298_p3)   ;;  %vm1022_vm1 = vcmask (!%p298_p3), 519168  }
   0xa   : > { %v1306_v52 = vld [vmem:[%s1716_s5 + $0x10] sm:$0xff] (!%p298_p3)   ;;  %v1307_v53 = vld [vmem:[%s1716_s5 + $0x58] sm:$0xff] (!%p298_p3)  }
   0xb   : > { %v1308_v54 = vld [vmem:[%s1716_s5 + $0x18] sm:$0xff] (!%p298_p3)  }
   0xc   : > { %612 = vmatpush1.bf16.msra.mxu0 (!%p298_p3), %v1294_v55  ;;  %v1309_v55 = vld [vmem:[%s1716_s5 + $0x60] sm:$0xff] (!%p298_p3)  }
   0xd   : > { %613 = vmatprep.subr.bf16.mxu0 (!%p298_p3), %v1295_v56  ;;  %v1310_v56 = vld [vmem:[%s1716_s5 + $0x20] sm:$0xff] (!%p298_p3)  }
   0xe   : > { %s1724_s24 = smov (!%p352_p4, %s1367_s24), 1 }
   0xf   : > { %s1263_s28 = smul.u32 24, %s1724_s24 }
  0x10   : > { %614 = vmatpush1.bf16.msra.mxu0 %v1297_v57  ;;  %v1311_v57 = vld [vmem:[%s1716_s5 + $0x68] sm:$0xff]  }
  0x11   : > { %s359_s10 = scalar_lea.vmem %s1711_s0, %s1263_s28  ;;  %615 = vmatprep.subr.bf16.mxu0 %v1298_v58  ;;  %v1312_v58 = vld [vmem:[%s1716_s5 + $0x28] sm:$0xff]   ;;  %s1684_s13 = scalar_lea.vmem %s1718_s7, %s1263_s28 }
  0x12   : > { %v1216_v1 = vld [vmem:[%s359_s10] sm:$0xff]   ;;  %v1227_v2 = vld [vmem:[%s359_s10 + $0x8] sm:$0xff]   ;;  %v1228_v3 = vld [vmem:[%s359_s10 + $0x10] sm:$0xff]  }
  0x13   : > { %v1217_v4 = vunpack.c.l.bf16 %v1216_v1  ;;  %v1221_v5 = vunpack.c.l.bf16 %v1227_v2  ;;  %v1218_v6 = vunpack.c.h.bf16 %v1216_v1  ;;  %v1222_v7 = vunpack.c.h.bf16 %v1227_v2 }
  0x14   : > { %v1225_v8 = vunpack.c.l.bf16 %v1228_v3  ;;  %v1226_v9 = vunpack.c.h.bf16 %v1228_v3  ;;  %616 = vmatpush1.bf16.msra.mxu0 %v1300_v59  ;;  %v1313_v59 = vld [vmem:[%s1716_s5 + $0x70] sm:$0xff]  }
  0x15   : > { %v408_v10 = vsel %vm407_vm0, %v1217_v4, 0.0  ;;  %v524_v11 = vadd.f32 %v1217_v4, %v1173_v0  ;;  %v414_v12 = vsel %vm407_vm0, %v1221_v5, 0.0  ;;  %v526_v13 = vadd.f32 %v1221_v5, %v1173_v0 }
  0x16   : > { %409 = vadd.xlane.f32.xlu0 %v408_v10  ;;  %415 = vadd.xlane.f32.xlu1 %v414_v12  ;;  %v525_v14 = vadd.f32 %v1218_v6, %v1173_v0  ;;  %v527_v15 = vadd.f32 %v1222_v7, %v1173_v0  ;;  %v411_v16 = vsel %vm407_vm0, %v1218_v6, 0.0  ;;  %v417_v17 = vsel %vm407_vm0, %v1222_v7, 0.0 }
  0x17   : > { %530 = vst.msk [vmem:[#allocation3] sm:$0xff] %vm407_vm0, %v524_v11  ;;  %532 = vst.msk [vmem:[#allocation3 + $0x10] sm:$0xff] %vm407_vm0, %v526_v13  ;;  %v528_v18 = vadd.f32 %v1225_v8, %v1173_v0  ;;  %v529_v19 = vadd.f32 %v1226_v9, %v1173_v0  ;;  %v420_v20 = vsel %vm407_vm0, %v1225_v8, 0.0  ;;  %v423_v21 = vsel %vm407_vm0, %v1226_v9, 0.0 }
  0x18   : > { %531 = vst.msk [vmem:[#allocation3 + $0x8] sm:$0xff] %vm407_vm0, %v525_v14  ;;  %533 = vst.msk [vmem:[#allocation3 + $0x18] sm:$0xff] %vm407_vm0, %v527_v15 }
  0x19   : > { %534 = vst.msk [vmem:[#allocation3 + $0x20] sm:$0xff] %vm407_vm0, %v528_v18  ;;  %535 = vst.msk [vmem:[#allocation3 + $0x28] sm:$0xff] %vm407_vm0, %v529_v19 }
  0x1a   : > { %412 = vadd.xlane.f32.xlu0 %v411_v16  ;;  %418 = vadd.xlane.f32.xlu1 %v417_v17  ;;  %v1171_v17 = vld [vmem:[%s1712_s1] ss:$0 sm:$0xff] }
  0x1e   : > { %421 = vadd.xlane.f32.xlu0 %v420_v20  ;;  %424 = vadd.xlane.f32.xlu1 %v423_v21 }
  0xa3   : > { %v410_v22 = vpop.xlane.xlu0 %409  ;;  %v416_v23 = vpop.xlane.xlu1 %415 }
  0xa4   : > { %v427_v24 = vmul.f32 0.015625, %v410_v22  ;;  %v429_v25 = vmul.f32 0.015625, %v416_v23  ;;  %v1172_v22 = vld [vmem:[%s1713_s2] ss:$0 sm:$0xff] }
  0xa6   : > { %v1459_v26 = vsub.f32 %v1217_v4, %v427_v24  ;;  %v1461_v27 = vsub.f32 %v1221_v5, %v429_v25 }
  0xa7   : > { %v413_v28 = vpop.xlane.xlu0 %412  ;;  %v419_v29 = vpop.xlane.xlu1 %418 }
  0xa8   : > { %v428_v30 = vmul.f32 0.015625, %v413_v28  ;;  %v430_v31 = vmul.f32 0.015625, %v419_v29  ;;  %v439_v32 = vmul.f32 %v1459_v26, %v1459_v26  ;;  %v441_v33 = vmul.f32 %v1461_v27, %v1461_v27 }
  0xaa   : > { %v1467_v34 = vsub.f32 %v1218_v6, %v428_v30  ;;  %v1469_v35 = vsub.f32 %v1222_v7, %v430_v31  ;;  %v445_v36 = vsel %vm407_vm0, %v439_v32, 0.0  ;;  %v451_v39 = vsel %vm407_vm0, %v441_v33, 0.0 }
  0xab   : > { %446 = vadd.xlane.f32.xlu0 %v445_v36  ;;  %v422_v37 = vpop.xlane.xlu0 %421  ;;  %v425_v38 = vpop.xlane.xlu1 %424 }
  0xac   : > { %v431_v40 = vmul.f32 0.015625, %v422_v37  ;;  %v432_v41 = vmul.f32 0.015625, %v425_v38  ;;  %v440_v42 = vmul.f32 %v1467_v34, %v1467_v34  ;;  %v442_v43 = vmul.f32 %v1469_v35, %v1469_v35 }
  0xae   : > { %v1477_v44 = vsub.f32 %v1225_v8, %v431_v40  ;;  %v1479_v45 = vsub.f32 %v1226_v9, %v432_v41  ;;  %v448_v46 = vsel %vm407_vm0, %v440_v42, 0.0  ;;  %v454_v47 = vsel %vm407_vm0, %v442_v43, 0.0 }
  0xaf   : > { %452 = vadd.xlane.f32.xlu0 %v451_v39  ;;  %449 = vadd.xlane.f32.xlu1 %v448_v46 }
  0xb0   : > { %v443_v48 = vmul.f32 %v1477_v44, %v1477_v44  ;;  %v444_v49 = vmul.f32 %v1479_v45, %v1479_v45 }
  0xb2   : > { %v457_v50 = vsel %vm407_vm0, %v443_v48, 0.0  ;;  %v460_v51 = vsel %vm407_vm0, %v444_v49, 0.0  ;;  %v1302_v48 = vld [vmem:[%s1716_s5] sm:$0xff]   ;;  %v1303_v49 = vld [vmem:[%s1716_s5 + $0x48] sm:$0xff]  }
  0xb3   : > { %455 = vadd.xlane.f32.xlu1 %v454_v47  ;;  %458 = vadd.xlane.f32.xlu0 %v457_v50  ;;  %v1301_v47 = vld [vmem:[%s1716_s5 + $0x40] sm:$0xff]   ;;  %v1304_v50 = vld [vmem:[%s1716_s5 + $0x8] sm:$0xff]  }
  0xb4   : > { %1229 = vmatprep.subr.bf16.mxu1 %v1301_v47 }
  0xb5   : > { %1230 = vmatpush3.bf16.msra.mxu1 %v1302_v48 }
  0xb6   : > { %1231 = vmatprep.subr.bf16.mxu1 %v1303_v49 }
  0xb7   : > { %461 = vadd.xlane.f32.xlu1 %v460_v51  ;;  %v1305_v51 = vld [vmem:[%s1716_s5 + $0x50] sm:$0xff]  }
  0xb9   : > { %1232 = vmatpush3.bf16.msra.mxu1 %v1304_v50 }
  0xba   : > { %1233 = vmatprep.subr.bf16.mxu1 %v1305_v51 }
  0xbd   : > { %1234 = vmatpush3.bf16.msra.mxu1 %v1306_v52 }
  0xbe   : > { %1235 = vmatprep.subr.bf16.mxu1 %v1307_v53 }
  0xc1   : > { %1236 = vmatpush3.bf16.msra.mxu1 %v1308_v54 }
  0xc2   : > { %1237 = vmatprep.subr.bf16.mxu1 %v1309_v55 }
  0xc5   : > { %1238 = vmatpush3.bf16.msra.mxu1 %v1310_v56 }
  0xc6   : > { %1239 = vmatprep.subr.bf16.mxu1 %v1311_v57 }
  0xc9   : > { %1240 = vmatpush3.bf16.msra.mxu1 %v1312_v58 }
  0xca   : > { %1241 = vmatprep.subr.bf16.mxu1 %v1313_v59 }
 0x138   : > { %v447_v61 = vpop.xlane.xlu0 %446 }
 0x139   : > { %v463_v62 = vmul.f32 0.015625, %v447_v61  ;;  %v1315_v61 = vld [vmem:[%s1716_s5 + $0x78] sm:$0xff]  }
 0x13b   : > { %v469_v63 = vadd.f32 1e-05, %v463_v62  ;;  %v1316_v62 = vld [vmem:[%s1716_s5 + $0x38] sm:$0xff]  }
 0x13c   : > { %v450_v0 = vpop.xlane.xlu1 %449  ;;  %v453_v1 = vpop.xlane.xlu0 %452 }
 0x13d   : > { %1317 = vrsqrt.f32 %v469_v63  ;;  %v464_v2 = vmul.f32 0.015625, %v450_v0  ;;  %v465_v3 = vmul.f32 0.015625, %v453_v1  ;;  %v549_v63 = vlaneseq }
 0x13f   : > { %v470_v4 = vadd.f32 1e-05, %v464_v2  ;;  %v471_v5 = vadd.f32 1e-05, %v465_v3  ;;  %v550_v0 = vshrl.u32 %v549_v63, 7 }
 0x140   : > { %v456_v6 = vpop.xlane.xlu1 %455  ;;  %v459_v7 = vpop.xlane.xlu0 %458  ;;  %v547_v2 = vld [vmem:[%s1715_s4] sm:$0x3] }
 0x141   : > { %1319 = vrsqrt.f32 %v470_v4  ;;  %v466_v8 = vmul.f32 0.015625, %v456_v6  ;;  %v467_v9 = vmul.f32 0.015625, %v459_v7  ;;  %v551_v1 = vsub.s32 0, %v550_v0 }
 0x142   : > { %1321 = vrsqrt.f32 %v471_v5  ;;  %v555_v3 = vsub.s32 1, %v550_v0 }
 0x143   : > { %v472_v10 = vadd.f32 1e-05, %v466_v8  ;;  %v473_v11 = vadd.f32 1e-05, %v467_v9  ;;  %v552_v4 = vrot.slane %v547_v2, %v551_v1 }
 0x144   : > { %v462_v12 = vpop.xlane.xlu1 %461  ;;  %v1585_v5 = vrot.slane %v547_v2, %v555_v3 }
 0x145   : > { %1323 = vrsqrt.f32 %v472_v10  ;;  %v468_v13 = vmul.f32 0.015625, %v462_v12 }
 0x146   : > { %1325 = vrsqrt.f32 %v473_v11 }
 0x147   : > { %v1318_v14 = vpop.eup %1317  ;;  %v474_v15 = vadd.f32 1e-05, %v468_v13 }
 0x148   : > { %v481_v16 = vmul.f32 %v1318_v14, %v1459_v26 }
 0x149   : > { %1327 = vrsqrt.f32 %v474_v15 }
 0x14a   : > { %v493_v20 = vmul.f32 %v1171_v17, %v481_v16 }
 0x14b   : > { %v1320_v18 = vpop.eup %1319 }
 0x14c   : > { %v1322_v19 = vpop.eup %1321  ;;  %v482_v21 = vmul.f32 %v1320_v18, %v1467_v34  ;;  %v505_v26 = vadd.f32 %v1172_v22, %v493_v20 }
 0x14d   : > { %v483_v23 = vmul.f32 %v1322_v19, %v1461_v27 }
 0x14e   : > { %v494_v24 = vmul.f32 %v1171_v17, %v482_v21 }
 0x14f   : > { %v1324_v25 = vpop.eup %1323  ;;  %v495_v30 = vmul.f32 %v1171_v17, %v483_v23 }
 0x150   : > { %v1326_v28 = vpop.eup %1325  ;;  %v506_v29 = vadd.f32 %v1172_v22, %v494_v24  ;;  %v484_v31 = vmul.f32 %v1324_v25, %v1469_v35 }
 0x151   : > { %v485_v32 = vmul.f32 %v1326_v28, %v1477_v44  ;;  %v507_v34 = vadd.f32 %v1172_v22, %v495_v30 }
 0x152   : > { %v511_v33 = vpack.c.bf16 %v506_v29, %v505_v26  ;;  %v496_v36 = vmul.f32 %v1171_v17, %v484_v31 }
 0x153   : > { %v1328_v37 = vpop.eup %1327  ;;  %v497_v39 = vmul.f32 %v1171_v17, %v485_v32 }
 0x154   : > { %514 = vst.msk [vmem:[#allocation2] sm:$0xff] %vm407_vm0, %v511_v33  ;;  %v508_v38 = vadd.f32 %v1172_v22, %v496_v36  ;;  %v486_v27 = vmul.f32 %v1328_v37, %v1479_v45 }
 0x155   : > { %v509_v42 = vadd.f32 %v1172_v22, %v497_v39 }
 0x156   : > { %v512_v40 = vpack.c.bf16 %v508_v38, %v507_v34  ;;  %v498_v41 = vmul.f32 %v1171_v17, %v486_v27 }
 0x158   : > { %515 = vst.msk [vmem:[#allocation2 + $0x8] sm:$0xff] %vm407_vm0, %v512_v40  ;;  %v510_v43 = vadd.f32 %v1172_v22, %v498_v41 }
 0x15a   : > { %v513_v46 = vpack.c.bf16 %v510_v43, %v509_v42 }
 0x15b   : > { %v536_v35 = vld [vmem:[#allocation2] sm:$0xff] }
 0x15c   : > { %516 = vst.msk [vmem:[#allocation2 + $0x10] sm:$0xff] %vm407_vm0, %v513_v46  ;;  %1182 = vmatmul.mubr.msk.bf16.vlgmr.msra.gmra.mrb[0].mxu0 %vm407_vm0, %v536_v35 }
 0x15d   : > { %651 = vmatprep.mubr.bf16.mxu0 %v1377_v60 }
 0x15f   : > { %v537_v44 = vld [vmem:[#allocation2 + $0x8] sm:$0xff] }
 0x163   : > { %v538_v45 = vld [vmem:[#allocation2 + $0x10] sm:$0xff] }
 0x164   : > { %1183 = vmatmul.mubr.msk.bf16.gmra.mrb[4].mxu0 %vm407_vm0, %v537_v44 }
 0x165   : > { %661 = vmatprep.mubr.bf16.mxu0 %v1377_v60  ;;  %v1314_v60 = vld [vmem:[%s1716_s5 + $0x30] sm:$0xff]  }
 0x166   : > { %1242 = vmatpush3.bf16.msra.mxu1 %v1314_v60 }
 0x167   : > { %1243 = vmatprep.subr.bf16.mxu1 %v1315_v61 }
 0x16a   : > { %1244 = vmatpush3.bf16.msra.mxu1 %v1316_v62 }
 0x16c   : > { %1184 = vmatmul.mubr.msk.bf16.gmra.mrb[8].mxu0 %vm407_vm0, %v538_v45 }
 0x22f   : > { %v643_v6 = vpop.f32.mrb[0].mxu0 }
 0x230   : > { %v1587_v7 = vadd.f32 %v643_v6, %v552_v4  ;;  %v645_v8 = vpop.f32.mrb[1].mxu0 }
 0x231   : > { %v1590_v9 = vadd.f32 %v645_v8, %v1585_v5  ;;  %v647_v10 = vpop.f32.mrb[2].mxu0 }
 0x232   : > { %v684_v11 = vmul.f32 0.044715, %v1587_v7  ;;  %v1593_v12 = vadd.f32 %v647_v10, %v552_v4  ;;  %v649_v13 = vpop.f32.mrb[3].mxu0 }
 0x233   : > { %v685_v14 = vmul.f32 0.044715, %v1590_v9  ;;  %v1597_v15 = vadd.f32 %v649_v13, %v1585_v5 }
 0x234   : > { %v696_v16 = vmul.f32 %v684_v11, %v1587_v7  ;;  %v686_v17 = vmul.f32 0.044715, %v1593_v12 }
 0x235   : > { %v687_v18 = vmul.f32 0.044715, %v1597_v15  ;;  %v697_v19 = vmul.f32 %v685_v14, %v1590_v9 }
 0x236   : > { %v708_v20 = vmul.f32 %v696_v16, %v1587_v7  ;;  %v698_v21 = vmul.f32 %v686_v17, %v1593_v12 }
 0x237   : > { %v653_v22 = vpop.f32.mrb[4].mxu0  ;;  %v699_v23 = vmul.f32 %v687_v18, %v1597_v15  ;;  %v709_v24 = vmul.f32 %v697_v19, %v1590_v9  ;;  %v672_v19 = vmul.f32 0.5, %v1587_v7 }
 0x238   : > { %v710_v25 = vmul.f32 %v698_v21, %v1593_v12  ;;  %v1608_v28 = vadd.f32 %v653_v22, %v552_v4  ;;  %v655_v26 = vpop.f32.mrb[5].mxu0  ;;  %v720_v29 = vadd.f32 %v708_v20, %v1587_v7  ;;  %v674_v7 = vmul.f32 0.5, %v1593_v12 }
 0x239   : > { %v1612_v30 = vadd.f32 %v655_v26, %v1585_v5  ;;  %v657_v31 = vpop.f32.mrb[6].mxu0  ;;  %v711_v32 = vmul.f32 %v699_v23, %v1597_v15  ;;  %v721_v33 = vadd.f32 %v709_v24, %v1590_v9  ;;  %v673_v26 = vmul.f32 0.5, %v1590_v9 }
 0x23a   : > { %v688_v36 = vmul.f32 0.044715, %v1608_v28  ;;  %v1617_v37 = vadd.f32 %v657_v31, %v552_v4  ;;  %v659_v34 = vpop.f32.mrb[7].mxu0  ;;  %v722_v38 = vadd.f32 %v710_v25, %v1593_v12  ;;  %v732_v39 = vmul.f32 0.7978846, %v720_v29 }
 0x23b   : > { %v689_v27 = vmul.f32 0.044715, %v1612_v30  ;;  %v1622_v40 = vadd.f32 %v659_v34, %v1585_v5  ;;  %v723_v41 = vadd.f32 %v711_v32, %v1597_v15  ;;  %v733_v42 = vmul.f32 0.7978846, %v721_v33 }
 0x23c   : > { %v700_v43 = vmul.f32 %v688_v36, %v1608_v28  ;;  %v690_v46 = vmul.f32 0.044715, %v1617_v37  ;;  %v734_v35 = vmul.f32 0.7978846, %v722_v38  ;;  %1329 = vtanh.f32 %v732_v39 }
 0x23d   : > { %v701_v44 = vmul.f32 %v689_v27, %v1612_v30  ;;  %v691_v45 = vmul.f32 0.044715, %v1622_v40  ;;  %v735_v47 = vmul.f32 0.7978846, %v723_v41  ;;  %1331 = vtanh.f32 %v733_v42 }
 0x23e   : > { %v712_v48 = vmul.f32 %v700_v43, %v1608_v28  ;;  %v702_v49 = vmul.f32 %v690_v46, %v1617_v37  ;;  %1333 = vtanh.f32 %v734_v35  ;;  %v675_v34 = vmul.f32 0.5, %v1597_v15 }
 0x23f   : > { %v713_v50 = vmul.f32 %v701_v44, %v1612_v30  ;;  %v703_v51 = vmul.f32 %v691_v45, %v1622_v40  ;;  %v663_v52 = vpop.f32.mrb[8].mxu0  ;;  %1335 = vtanh.f32 %v735_v47 }
 0x240   : > { %v714_v53 = vmul.f32 %v702_v49, %v1617_v37  ;;  %v1634_v54 = vadd.f32 %v663_v52, %v552_v4  ;;  %v665_v55 = vpop.f32.mrb[9].mxu0  ;;  %v724_v60 = vadd.f32 %v712_v48, %v1608_v28 }
 0x241   : > { %v715_v56 = vmul.f32 %v703_v51, %v1622_v40  ;;  %v1638_v57 = vadd.f32 %v665_v55, %v1585_v5  ;;  %v667_v58 = vpop.f32.mrb[10].mxu0  ;;  %v725_v59 = vadd.f32 %v713_v50, %v1612_v30  ;;  %v677_v55 = vmul.f32 0.5, %v1612_v30 }
 0x242   : > { %v692_v61 = vmul.f32 0.044715, %v1634_v54  ;;  %v1643_v62 = vadd.f32 %v667_v58, %v552_v4  ;;  %v669_v63 = vpop.f32.mrb[11].mxu0  ;;  %v726_v0 = vadd.f32 %v714_v53, %v1617_v37  ;;  %v736_v11 = vmul.f32 0.7978846, %v724_v60 }
 0x243   : > { %v693_v1 = vmul.f32 0.044715, %v1638_v57  ;;  %v1648_v2 = vadd.f32 %v669_v63, %v1585_v5  ;;  %v727_v3 = vadd.f32 %v715_v56, %v1622_v40  ;;  %v737_v6 = vmul.f32 0.7978846, %v725_v59 }
 0x244   : > { %v704_v8 = vmul.f32 %v692_v61, %v1634_v54  ;;  %v694_v10 = vmul.f32 0.044715, %v1643_v62  ;;  %v738_v13 = vmul.f32 0.7978846, %v726_v0  ;;  %v679_v56 = vmul.f32 0.5, %v1622_v40 }
 0x245   : > { %v705_v4 = vmul.f32 %v693_v1, %v1638_v57  ;;  %v695_v14 = vmul.f32 0.044715, %v1648_v2  ;;  %v739_v16 = vmul.f32 0.7978846, %v727_v3  ;;  %1337 = vtanh.f32 %v737_v6 }
 0x246   : > { %v1330_v17 = vpop.eup %1329  ;;  %v716_v18 = vmul.f32 %v704_v8, %v1634_v54  ;;  %v706_v5 = vmul.f32 %v694_v10, %v1643_v62  ;;  %1339 = vtanh.f32 %v736_v11  ;;  %v676_v59 = vmul.f32 0.5, %v1608_v28 }
 0x247   : > { %v1332_v20 = vpop.eup %1331  ;;  %v717_v21 = vmul.f32 %v705_v4, %v1638_v57  ;;  %v707_v22 = vmul.f32 %v695_v14, %v1648_v2  ;;  %v756_v23 = vadd.f32 1.0, %v1330_v17  ;;  %1341 = vtanh.f32 %v739_v16 }
 0x248   : > { %v1334_v24 = vpop.eup %1333  ;;  %v718_v25 = vmul.f32 %v706_v5, %v1643_v62  ;;  %v757_v29 = vadd.f32 1.0, %v1332_v20  ;;  %1343 = vtanh.f32 %v738_v13  ;;  %v728_v27 = vadd.f32 %v716_v18, %v1634_v54 }
 0x249   : > { %v1336_v31 = vpop.eup %1335  ;;  %v719_v32 = vmul.f32 %v707_v22, %v1648_v2  ;;  %v758_v33 = vadd.f32 1.0, %v1334_v24  ;;  %v729_v36 = vadd.f32 %v717_v21, %v1638_v57  ;;  %v768_v39 = vmul.f32 %v756_v23, %v672_v19 }
 0x24a   : > { %v759_v38 = vadd.f32 1.0, %v1336_v31  ;;  %v730_v43 = vadd.f32 %v718_v25, %v1643_v62  ;;  %v769_v46 = vmul.f32 %v757_v29, %v673_v26  ;;  %v740_v44 = vmul.f32 0.7978846, %v728_v27  ;;  %v780_v25 = vld [vmem:[#allocation3] sm:$0xff] }
 0x24b   : > { %v770_v41 = vmul.f32 %v758_v33, %v674_v7  ;;  %v731_v42 = vadd.f32 %v719_v32, %v1648_v2  ;;  %v741_v9 = vmul.f32 0.7978846, %v729_v36  ;;  %v678_v60 = vmul.f32 0.5, %v1617_v37  ;;  %v782_v33 = vld [vmem:[#allocation3 + $0x10] sm:$0xff] }
 0x24c   : > { %v771_v35 = vmul.f32 %v759_v38, %v675_v34  ;;  %v742_v47 = vmul.f32 0.7978846, %v730_v43  ;;  %v681_v14 = vmul.f32 0.5, %v1638_v57  ;;  %v683_v28 = vmul.f32 0.5, %v1648_v2  ;;  %v781_v2 = vld [vmem:[#allocation3 + $0x8] sm:$0xff] }
 0x24d   : > { %v786_v45 = vpack.c.bf16 %v770_v41, %v768_v39  ;;  %v743_v12 = vmul.f32 0.7978846, %v731_v42  ;;  %1345 = vtanh.f32 %v741_v9  ;;  %v680_v16 = vmul.f32 0.5, %v1634_v54  ;;  %v783_v39 = vld [vmem:[#allocation3 + $0x18] sm:$0xff] }
 0x24e   : > { %v787_v48 = vpack.c.bf16 %v771_v35, %v769_v46  ;;  %1347 = vtanh.f32 %v740_v44  ;;  %v682_v17 = vmul.f32 0.5, %v1643_v62 }
 0x24f   : > { %v1338_v15 = vpop.eup %1337  ;;  %1349 = vtanh.f32 %v743_v12  ;;  %v784_v12 = vld [vmem:[#allocation3 + $0x20] sm:$0xff] }
 0x250   : > { %v1340_v49 = vpop.eup %1339  ;;  %952 = vmatprep.mubr.bf16.mxu1 %v787_v48  ;;  %v761_v50 = vadd.f32 1.0, %v1338_v15  ;;  %1351 = vtanh.f32 %v742_v47 }
 0x251   : > { %v1342_v51 = vpop.eup %1341  ;;  %953 = vmatmul.mubr.bf16.vlgmr.msra.gmra.mrb[0].mxu1 %v786_v45  ;;  %v760_v52 = vadd.f32 1.0, %v1340_v49  ;;  %v785_v49 = vld [vmem:[#allocation3 + $0x28] sm:$0xff] }
 0x252   : > { %v1344_v53 = vpop.eup %1343  ;;  %v763_v58 = vadd.f32 1.0, %v1342_v51  ;;  %v773_v63 = vmul.f32 %v761_v50, %v677_v55 }
 0x253   : > { %v762_v61 = vadd.f32 1.0, %v1344_v53  ;;  %v772_v1 = vmul.f32 %v760_v52, %v676_v59 }
 0x254   : > { %v775_v0 = vmul.f32 %v763_v58, %v679_v56 }
 0x255   : > { %v774_v3 = vmul.f32 %v762_v61, %v678_v60 }
 0x256   : > { %v789_v6 = vpack.c.bf16 %v775_v0, %v773_v63 }
 0x257   : > { %v1346_v8 = vpop.eup %1345  ;;  %v788_v10 = vpack.c.bf16 %v774_v3, %v772_v1 }
 0x258   : > { %v1348_v11 = vpop.eup %1347  ;;  %960 = vmatprep.mubr.bf16.mxu1 %v789_v6  ;;  %v765_v13 = vadd.f32 1.0, %v1346_v8 }
 0x259   : > { %v1350_v4 = vpop.eup %1349  ;;  %961 = vmatmul.mubr.bf16.gmra.mrb[4].mxu1 %v788_v10  ;;  %v764_v30 = vadd.f32 1.0, %v1348_v11 }
 0x25a   : > { %v1352_v40 = vpop.eup %1351  ;;  %v767_v37 = vadd.f32 1.0, %v1350_v4  ;;  %v777_v5 = vmul.f32 %v765_v13, %v681_v14 }
 0x25b   : > { %v766_v18 = vadd.f32 1.0, %v1352_v40  ;;  %v776_v20 = vmul.f32 %v764_v30, %v680_v16 }
 0x25c   : > { %v779_v19 = vmul.f32 %v767_v37, %v683_v28 }
 0x25d   : > { %v778_v21 = vmul.f32 %v766_v18, %v682_v17 }
 0x25e   : > { %v791_v22 = vpack.c.bf16 %v779_v19, %v777_v5 }
 0x25f   : > { %v790_v23 = vpack.c.bf16 %v778_v21, %v776_v20 }
 0x260   : > { %968 = vmatprep.mubr.bf16.mxu1 %v791_v22 }
 0x261   : > { %969 = vmatmul.mubr.bf16.gmra.mrb[8].mxu1 %v790_v23 }
 0x324   : > { %v1245_v24 = vpop.f32.mrb[0].mxu1 }
 0x325   : > { %v1246_v26 = vpop.f32.mrb[1].mxu1 }
 0x326   : > { %v1247_v57 = vadd.f32 %v1246_v26, %v1245_v24  ;;  %v1248_v29 = vpop.f32.mrb[2].mxu1 }
 0x327   : > { %v1249_v31 = vpop.f32.mrb[3].mxu1 }
 0x328   : > { %v977_v54 = vadd.f32 %v1247_v57, %v780_v25  ;;  %v1250_v32 = vadd.f32 %v1249_v31, %v1248_v29 }
 0x32a   : > { %983 = vst.msk [vmem:[#allocation3] sm:$0xff] %vm407_vm0, %v977_v54  ;;  %v978_v62 = vadd.f32 %v1250_v32, %v781_v2 }
 0x32c   : > { %984 = vst.msk [vmem:[#allocation3 + $0x8] sm:$0xff] %vm407_vm0, %v978_v62  ;;  %v1251_v7 = vpop.f32.mrb[4].mxu1 }
 0x32d   : > { %v1252_v36 = vpop.f32.mrb[5].mxu1 }
 0x32e   : > { %v1253_v34 = vadd.f32 %v1252_v36, %v1251_v7  ;;  %v1254_v38 = vpop.f32.mrb[6].mxu1 }
 0x32f   : > { %v1255_v27 = vpop.f32.mrb[7].mxu1 }
 0x330   : > { %v979_v41 = vadd.f32 %v1253_v34, %v782_v33  ;;  %v1256_v42 = vadd.f32 %v1255_v27, %v1254_v38 }
 0x331   : > { %v992_v9 = vld [vmem:[#allocation3] sm:$0xff] }
 0x332   : > { %v1209_v43 = vpack.c.bf16 %v992_v9, %v992_v9  ;;  %985 = vst.msk [vmem:[#allocation3 + $0x10] sm:$0xff] %vm407_vm0, %v979_v41  ;;  %v980_v46 = vadd.f32 %v1256_v42, %v783_v39 }
 0x333   : > { %v993_v35 = vld [vmem:[#allocation3 + $0x8] sm:$0xff] }
 0x334   : > { %1023 = vst.msk [vmem:[%s1684_s13] sm:$0xf] %vm1022_vm1, %v1209_v43  ;;  %v1210_v44 = vpack.c.bf16 %v993_v35, %v993_v35  ;;  %v1257_v45 = vpop.f32.mrb[8].mxu1 }
 0x335   : > { %986 = vst.msk [vmem:[#allocation3 + $0x18] sm:$0xff] %vm407_vm0, %v980_v46  ;;  %v1258_v47 = vpop.f32.mrb[9].mxu1 }
 0x336   : > { %1024 = vst.msk [vmem:[%s1684_s13 + $0x4] sm:$0xf] %vm1022_vm1, %v1210_v44  ;;  %v1259_v48 = vadd.f32 %v1258_v47, %v1257_v45  ;;  %v1260_v15 = vpop.f32.mrb[10].mxu1 }
 0x337   : > { %v1261_v50 = vpop.f32.mrb[11].mxu1 }
 0x338   : > { %v981_v51 = vadd.f32 %v1259_v48, %v784_v12  ;;  %v1262_v52 = vadd.f32 %v1261_v50, %v1260_v15 }
 0x339   : > { %v994_v53 = vld [vmem:[#allocation3 + $0x10] sm:$0xff] }
 0x33a   : > { %v1211_v55 = vpack.c.bf16 %v994_v53, %v994_v53  ;;  %987 = vst.msk [vmem:[#allocation3 + $0x20] sm:$0xff] %vm407_vm0, %v981_v51  ;;  %v982_v56 = vadd.f32 %v1262_v52, %v785_v49 }
 0x33c   : > { %v995_v58 = vld [vmem:[#allocation3 + $0x18] sm:$0xff]  ;;  %1025 = vst.msk [vmem:[%s1684_s13 + $0x8] sm:$0xf] %vm1022_vm1, %v1211_v55 }
 0x33d   : > { %v1212_v59 = vpack.c.bf16 %v995_v58, %v995_v58  ;;  %988 = vst.msk [vmem:[#allocation3 + $0x28] sm:$0xff] %vm407_vm0, %v982_v56 }
 0x33f   : > { %1026 = vst.msk [vmem:[%s1684_s13 + $0xc] sm:$0xf] %vm1022_vm1, %v1212_v59 }
 0x341   : > { %v996_v60 = vld [vmem:[#allocation3 + $0x20] sm:$0xff] }
 0x342   : > { %v1213_v61 = vpack.c.bf16 %v996_v60, %v996_v60 }
 0x344   : > { %v997_v63 = vld [vmem:[#allocation3 + $0x28] sm:$0xff]  ;;  %1027 = vst.msk [vmem:[%s1684_s13 + $0x10] sm:$0xf] %vm1022_vm1, %v1213_v61 }
 0x345   : > { %v1214_v0 = vpack.c.bf16 %v997_v63, %v997_v63 }
 0x347   : > { %1028 = vst.msk [vmem:[%s1684_s13 + $0x14] sm:$0xf] %vm1022_vm1, %v1214_v0 }
 0x348 PF: > { %s17_s26 = sadd.s32 1, %s1375_s26   ;;  %s1719_s24 = smov %s1371_s25 }
 0x349   : > { %p14_p5 = scmp.ge.s32.totalorder %s17_s26, 4   ;;  %s1720_s25 = smov %s1722_s27 }
 0x34b   :  { %16 = sbr.rel (!%p14_p5) target bundleno = 2 (0x2), region = 95 }

</bundles_post_ra>
